<compile_context>
chip_gen: v5e
topology: v5e:2x2
jax: 0.10.0
libtpu: 0.0.40
codegen_flags: <defaults>
</compile_context>

<pallas_src>
import functools

import numpy as np
import jax
import jax.numpy as jnp
from jax import lax
from jax.experimental import pallas as pl
from jax.experimental.pallas import tpu as pltpu

FEAT_DIM = 512
POOL7 = 7
IN_CH = 3
FLAT_DIM = IN_CH * POOL7 * POOL7  # 147


# ---------------------------------------------------------------------------
# Host-side construction of the composed pooling matrices (exact PyTorch
# AdaptiveAvgPool2d floor/ceil index rule; the crop is fused in as an offset).
# ---------------------------------------------------------------------------
def _adaptive_pool_matrix(in_size, out_size, full_size=None, offset=0):
    """M (out_size, full) s.t. M @ x == AdaptiveAvgPool1d over
    x[offset : offset + in_size] with PyTorch's start/end rule."""
    full = in_size if full_size is None else full_size
    m = np.zeros((out_size, full), dtype=np.float32)
    for i in range(out_size):
        s = (i * in_size) // out_size
        e = ((i + 1) * in_size + out_size - 1) // out_size  # ceil
        m[i, offset + s: offset + e] = 1.0 / float(e - s)
    return m


def composed_pool_matrices(h, w):
    """Return (7, h) and (7, w) matrices equal to the full linear chain:
       [pool to 256 if h != 256] -> crop 35:223 / 32:220 -> pool 188->112
       -> pool 112->7 (surrogate backbone input pooling), all composed."""
    q = _adaptive_pool_matrix(112, POOL7)  # (7, 112)
    if h != 256:  # mirrors the PyTorch check on x.shape[2]
        ph = _adaptive_pool_matrix(188, 112, full_size=256, offset=35) \
            @ _adaptive_pool_matrix(h, 256)
        pw = _adaptive_pool_matrix(188, 112, full_size=256, offset=32) \
            @ _adaptive_pool_matrix(w, 256)
    else:
        ph = _adaptive_pool_matrix(188, 112, full_size=h, offset=35)
        pw = _adaptive_pool_matrix(188, 112, full_size=w, offset=32)
    mh = (q @ ph).astype(np.float32)  # (7, h)
    mw = (q @ pw).astype(np.float32)  # (7, w)
    return mh, mw


# ---------------------------------------------------------------------------
# Fused kernel: pooling -> synthetic head -> L2 normalize -> ID loss sum.
# Grid iterates over chunks of H; pooled 7x7 planes accumulate in VMEM.
# ---------------------------------------------------------------------------
def _id_loss_kernel(mh_ref, mwt_ref, w_ref, b_ref, y_ref, yh_ref, loss_ref,
                    acc_y_ref, acc_yh_ref, *, n, c, th):
    """
    mh_ref   : (7, th)              composed H-pool matrix, current H chunk
    mwt_ref  : (W, 7)               composed W-pool matrix, transposed
    w_ref    : (C, 7, 7, FEAT_DIM)  synthetic head weights
    b_ref    : (1, FEAT_DIM)        synthetic head bias
    y_ref    : (N*C, th, W)         ground-truth image rows for this chunk
    yh_ref   : (N*C, th, W)         generated image rows for this chunk
    loss_ref : (1, 1)               sum_i (1 - <feat_yhat_i, feat_y_i>)
    acc_*_ref: (N*C, 7, 7)          pooled-plane accumulators (VMEM scratch)
    """
    k = pl.program_id(0)
    last = pl.num_programs(0) - 1
    nc = n * c
    wd = y_ref.shape[-1]

    @pl.when(k == 0)
    def _():
        acc_y_ref[...] = jnp.zeros_like(acc_y_ref)
        acc_yh_ref[...] = jnp.zeros_like(acc_yh_ref)
        loss_ref[...] = jnp.zeros_like(loss_ref)

    mwt = mwt_ref[...]                                       # (W, 7)
    mhb = jnp.broadcast_to(mh_ref[...][None], (nc, POOL7, th))

    def partial7(x_ref):
        # Stage 1: contract W for all rows of this chunk in one large-M matmul.
        x = x_ref[...].reshape(nc * th, wd)
        t = jnp.dot(x, mwt, preferred_element_type=jnp.float32)   # (nc*th, 7)
        t = t.reshape(nc, th, POOL7)
        # Stage 2: partial H contraction (this chunk), batched over planes.
        return jnp.einsum('bih,bhj->bij', mhb, t,
                          preferred_element_type=jnp.float32)     # (nc, 7, 7)

    acc_y_ref[...] += partial7(y_ref)
    acc_yh_ref[...] += partial7(yh_ref)

    @pl.when(k == last)
    def _():
        w_all = w_ref[...]
        bias = b_ref[...]

        def head(acc7):
            x7 = acc7.reshape(n, c, POOL7, POOL7)
            # Synthetic head linear(C*7*7 -> 512): static unrolled sum of
            # small dots (layout-friendly, no lane-crossing flatten).
            f = jnp.zeros((n, FEAT_DIM), dtype=jnp.float32)
            for ci in range(c):
                for ii in range(POOL7):
                    f = f + jnp.dot(x7[:, ci, ii, :], w_all[ci, ii],
                                    preferred_element_type=jnp.float32)
            f = f + bias
            inv_norm = lax.rsqrt(
                jnp.sum(f * f, axis=-1, keepdims=True) + 1e-12)
            return f * inv_norm                                   # (N, 512)

        fy = head(acc_y_ref[...])    # y_feats (detach() is a fwd no-op)
        fyh = head(acc_yh_ref[...])  # y_hat_feats
        dots = jnp.sum(fy * fyh, axis=-1, keepdims=True)          # (N, 1)
        loss_ref[...] = jnp.sum(1.0 - dots, axis=0, keepdims=True)


# ---------------------------------------------------------------------------
# Wrapper: one pallas_call per loss evaluation.
# ---------------------------------------------------------------------------
def id_loss_forward(y_hat, y, w, b, avg=True):
    assert y.shape == y_hat.shape, "y and y_hat must share a shape"
    n, c, h, wd = y.shape

    mh, mw = composed_pool_matrices(h, wd)               # host-side numpy
    mh_j = jnp.asarray(mh)                               # (7, h)
    mwt = jnp.asarray(np.ascontiguousarray(mw.T))        # (w, 7)
    w4 = w.reshape(c, POOL7, POOL7, FEAT_DIM)            # same flatten order
    y3 = y.reshape(n * c, h, wd)                         # contiguous collapse
    yh3 = y_hat.reshape(n * c, h, wd)

    # H-chunk size: 128 keeps both BlockSpecs tile-aligned ((7, th) needs
    # th % 128 == 0 or th == h; (n*c, th, wd) needs th % 8 == 0 or th == h).
    th = 128 if (h % 128 == 0 and h > 128) else h
    nsteps = h // th

    kernel = functools.partial(_id_loss_kernel, n=n, c=c, th=th)

    grid_spec = pltpu.PrefetchScalarGridSpec(
        num_scalar_prefetch=0,
        grid=(nsteps,),
        in_specs=[
            pl.BlockSpec((POOL7, th), lambda k: (0, k)),                  # mh
            pl.BlockSpec((wd, POOL7), lambda k: (0, 0)),                  # mwt
            pl.BlockSpec((c, POOL7, POOL7, FEAT_DIM),
                         lambda k: (0, 0, 0, 0)),                         # w
            pl.BlockSpec((1, FEAT_DIM), lambda k: (0, 0)),                # b
            pl.BlockSpec((n * c, th, wd), lambda k: (0, k, 0)),           # y
            pl.BlockSpec((n * c, th, wd), lambda k: (0, k, 0)),           # y_hat
        ],
        out_specs=pl.BlockSpec((1, 1), lambda k: (0, 0)),
        scratch_shapes=[pltpu.VMEM((n * c, POOL7, POOL7), jnp.float32),
                        pltpu.VMEM((n * c, POOL7, POOL7), jnp.float32)],
    )

    out = pl.pallas_call(
        kernel,
        out_shape=jax.ShapeDtypeStruct((1, 1), jnp.float32),
        grid_spec=grid_spec,
        compiler_params=pltpu.CompilerParams(
            dimension_semantics=("arbitrary",),
            vmem_limit_bytes=32 * 1024 * 1024),
    )(mh_j, mwt, w4, b, y3, yh3)

    loss_sum = out[0, 0]
    if avg:
        return loss_sum / n
    return loss_sum, n


if __name__ == "__main__":
    key = jax.random.PRNGKey(0)
    k1, k2, k3, k4 = jax.random.split(key, 4)

    # Spatial 256 matches the module's "already 256" path (crop 35:223 /
    # 32:220 valid directly); h != 256 is handled by composing an extra
    # pooling matrix on the host.
    y_hat = jax.random.normal(k1, (2, IN_CH, 256, 256), dtype=jnp.float32)
    y = jax.random.normal(k2, (2, IN_CH, 256, 256), dtype=jnp.float32)

    # Deterministic synthetic backbone parameters (surrogate facenet head).
    w = jax.random.normal(k3, (FLAT_DIM, FEAT_DIM), dtype=jnp.float32)
    w = w * (1.0 / np.sqrt(FLAT_DIM))
    b = 0.01 * jax.random.normal(k4, (1, FEAT_DIM), dtype=jnp.float32)

    loss = id_loss_forward(y_hat, y, w, b, avg=True)
    jax.block_until_ready(loss)
    assert loss.shape == () and bool(jnp.isfinite(loss))
    print("KERNEL_OK")
</pallas_src>

<mosaic_0001>
module attributes {stable_mosaic.version = 11 : i64} {
  func.func @_id_loss_kernel(%arg0: i32, %arg1: memref<7x128xf32, #tpu.memory_space<vmem>>, %arg2: memref<256x7xf32, #tpu.memory_space<vmem>>, %arg3: memref<3x7x7x512xf32, #tpu.memory_space<vmem>>, %arg4: memref<1x512xf32, #tpu.memory_space<vmem>>, %arg5: memref<6x128x256xf32, #tpu.memory_space<vmem>>, %arg6: memref<6x128x256xf32, #tpu.memory_space<vmem>>, %arg7: memref<1x1xf32, #tpu.memory_space<vmem>>, %arg8: memref<6x7x7xf32, #tpu.memory_space<vmem>>, %arg9: memref<6x7x7xf32, #tpu.memory_space<vmem>>) attributes {dimension_semantics = [#tpu.dimension_semantics<arbitrary>], iteration_bounds = array<i64: 2>, scalar_prefetch = 0 : i64, scratch_operands = 2 : i64, tpu.core_type = #tpu.core_type<tc>, window_params = [{transform_indices = @transform_0, window_bounds = array<i64: 7, 128>}, {pipeline_mode = #tpu.pipeline_mode<synchronous>, transform_indices = @transform_1, window_bounds = array<i64: 256, 7>}, {pipeline_mode = #tpu.pipeline_mode<synchronous>, transform_indices = @transform_2, window_bounds = array<i64: 3, 7, 7, 512>}, {pipeline_mode = #tpu.pipeline_mode<synchronous>, transform_indices = @transform_3, window_bounds = array<i64: 1, 512>}, {transform_indices = @transform_4, window_bounds = array<i64: 6, 128, 256>}, {transform_indices = @transform_5, window_bounds = array<i64: 6, 128, 256>}, {pipeline_mode = #tpu.pipeline_mode<synchronous>, transform_indices = @transform_6, window_bounds = array<i64: 1, 1>}]} {
    %c0_i32 = arith.constant 0 : i32
    %0 = arith.cmpi eq, %arg0, %c0_i32 : i32
    %1 = arith.extui %0 : i1 to i32
    %c0_i32_0 = arith.constant 0 : i32
    %2 = arith.cmpi ne, %1, %c0_i32_0 : i32
    scf.if %2 {
      %cst_26 = arith.constant 0.000000e+00 : f32
      %27 = vector.broadcast %cst_26 : f32 to vector<6x7x7xf32>
      %c0_27 = arith.constant 0 : index
      %c0_28 = arith.constant 0 : index
      %c0_29 = arith.constant 0 : index
      %28 = vector.load %arg8[%c0_27, %c0_28, %c0_29] : memref<6x7x7xf32, #tpu.memory_space<vmem>>, vector<6x7x7xf32>
      tpu.vector_store %arg8[%c0_27, %c0_28, %c0_29], %27 {strides = array<i32>} : memref<6x7x7xf32, #tpu.memory_space<vmem>>, vector<6x7x7xf32>,
      %cst_30 = arith.constant 0.000000e+00 : f32
      %29 = vector.broadcast %cst_30 : f32 to vector<6x7x7xf32>
      %c0_31 = arith.constant 0 : index
      %c0_32 = arith.constant 0 : index
      %c0_33 = arith.constant 0 : index
      %30 = vector.load %arg9[%c0_31, %c0_32, %c0_33] : memref<6x7x7xf32, #tpu.memory_space<vmem>>, vector<6x7x7xf32>
      tpu.vector_store %arg9[%c0_31, %c0_32, %c0_33], %29 {strides = array<i32>} : memref<6x7x7xf32, #tpu.memory_space<vmem>>, vector<6x7x7xf32>,
      %cst_34 = arith.constant 0.000000e+00 : f32
      %31 = vector.broadcast %cst_34 : f32 to vector<1x1xf32>
      %c0_35 = arith.constant 0 : index
      %c0_36 = arith.constant 0 : index
      %32 = vector.load %arg7[%c0_35, %c0_36] : memref<1x1xf32, #tpu.memory_space<vmem>>, vector<1x1xf32>
      tpu.vector_store %arg7[%c0_35, %c0_36], %31 {strides = array<i32>} : memref<1x1xf32, #tpu.memory_space<vmem>>, vector<1x1xf32>,
    } else {
    }
    %c0 = arith.constant 0 : index
    %c0_1 = arith.constant 0 : index
    %3 = vector.load %arg2[%c0, %c0_1] : memref<256x7xf32, #tpu.memory_space<vmem>>, vector<256x7xf32>
    %c0_2 = arith.constant 0 : index
    %c0_3 = arith.constant 0 : index
    %4 = vector.load %arg1[%c0_2, %c0_3] : memref<7x128xf32, #tpu.memory_space<vmem>>, vector<7x128xf32>
    %5 = vector.shape_cast %4 : vector<7x128xf32> to vector<1x7x128xf32>
    %6 = vector.shape_cast %5 : vector<1x7x128xf32> to vector<1x7x128xf32>
    %7 = vector.broadcast %6 : vector<1x7x128xf32> to vector<6x7x128xf32>
    %c0_4 = arith.constant 0 : index
    %c0_5 = arith.constant 0 : index
    %c0_6 = arith.constant 0 : index
    %8 = vector.load %arg8[%c0_4, %c0_5, %c0_6] : memref<6x7x7xf32, #tpu.memory_space<vmem>>, vector<6x7x7xf32>
    %c0_7 = arith.constant 0 : index
    %c0_8 = arith.constant 0 : index
    %c0_9 = arith.constant 0 : index
    %9 = vector.load %arg5[%c0_7, %c0_8, %c0_9] : memref<6x128x256xf32, #tpu.memory_space<vmem>>, vector<6x128x256xf32>
    %10 = vector.shape_cast %9 : vector<6x128x256xf32> to vector<768x256xf32>
    %cst = arith.constant dense<0.000000e+00> : vector<768x7xf32>
    %11 = tpu.matmul %10, %3, %cst {dimension_numbers = #tpu.dot_dimension_numbers<[1], [0], [0], [1], [0, 0, 1, 1], [], []>} : vector<768x256xf32>, vector<256x7xf32>, vector<768x7xf32> -> vector<768x7xf32>
    %12 = vector.shape_cast %11 : vector<768x7xf32> to vector<6x128x7xf32>
    "tpu.trace_start"() <{level = 10 : i32, message = "bih,bhj->bij"}> : () -> ()
    %cst_10 = arith.constant dense<0.000000e+00> : vector<6x7x7xf32>
    %13 = tpu.matmul %7, %12, %cst_10 {dimension_numbers = #tpu.dot_dimension_numbers<[2], [1], [1], [2], [0, 0, 0, 1, 1, 2], [0], [0]>} : vector<6x7x128xf32>, vector<6x128x7xf32>, vector<6x7x7xf32> -> vector<6x7x7xf32>
    "tpu.trace_stop"() : () -> ()
    %14 = arith.addf %8, %13 : vector<6x7x7xf32>
    %c0_11 = arith.constant 0 : index
    %c0_12 = arith.constant 0 : index
    %c0_13 = arith.constant 0 : index
    %15 = vector.load %arg8[%c0_11, %c0_12, %c0_13] : memref<6x7x7xf32, #tpu.memory_space<vmem>>, vector<6x7x7xf32>
    tpu.vector_store %arg8[%c0_11, %c0_12, %c0_13], %14 {strides = array<i32>} : memref<6x7x7xf32, #tpu.memory_space<vmem>>, vector<6x7x7xf32>,
    %c0_14 = arith.constant 0 : index
    %c0_15 = arith.constant 0 : index
    %c0_16 = arith.constant 0 : index
    %16 = vector.load %arg9[%c0_14, %c0_15, %c0_16] : memref<6x7x7xf32, #tpu.memory_space<vmem>>, vector<6x7x7xf32>
    %c0_17 = arith.constant 0 : index
    %c0_18 = arith.constant 0 : index
    %c0_19 = arith.constant 0 : index
    %17 = vector.load %arg6[%c0_17, %c0_18, %c0_19] : memref<6x128x256xf32, #tpu.memory_space<vmem>>, vector<6x128x256xf32>
    %18 = vector.shape_cast %17 : vector<6x128x256xf32> to vector<768x256xf32>
    %cst_20 = arith.constant dense<0.000000e+00> : vector<768x7xf32>
    %19 = tpu.matmul %18, %3, %cst_20 {dimension_numbers = #tpu.dot_dimension_numbers<[1], [0], [0], [1], [0, 0, 1, 1], [], []>} : vector<768x256xf32>, vector<256x7xf32>, vector<768x7xf32> -> vector<768x7xf32>
    %20 = vector.shape_cast %19 : vector<768x7xf32> to vector<6x128x7xf32>
    "tpu.trace_start"() <{level = 10 : i32, message = "bih,bhj->bij"}> : () -> ()
    %cst_21 = arith.constant dense<0.000000e+00> : vector<6x7x7xf32>
    %21 = tpu.matmul %7, %20, %cst_21 {dimension_numbers = #tpu.dot_dimension_numbers<[2], [1], [1], [2], [0, 0, 0, 1, 1, 2], [0], [0]>} : vector<6x7x128xf32>, vector<6x128x7xf32>, vector<6x7x7xf32> -> vector<6x7x7xf32>
    "tpu.trace_stop"() : () -> ()
    %22 = arith.addf %16, %21 : vector<6x7x7xf32>
    %c0_22 = arith.constant 0 : index
    %c0_23 = arith.constant 0 : index
    %c0_24 = arith.constant 0 : index
    %23 = vector.load %arg9[%c0_22, %c0_23, %c0_24] : memref<6x7x7xf32, #tpu.memory_space<vmem>>, vector<6x7x7xf32>
    tpu.vector_store %arg9[%c0_22, %c0_23, %c0_24], %22 {strides = array<i32>} : memref<6x7x7xf32, #tpu.memory_space<vmem>>, vector<6x7x7xf32>,
    %c1_i32 = arith.constant 1 : i32
    %24 = arith.cmpi eq, %arg0, %c1_i32 : i32
    %25 = arith.extui %24 : i1 to i32
    %c0_i32_25 = arith.constant 0 : i32
    %26 = arith.cmpi ne, %25, %c0_i32_25 : i32
    scf.if %26 {
      %c0_26 = arith.constant 0 : index
      %c0_27 = arith.constant 0 : index
      %c0_28 = arith.constant 0 : index
      %c0_29 = arith.constant 0 : index
      %27 = vector.load %arg3[%c0_26, %c0_27, %c0_28, %c0_29] : memref<3x7x7x512xf32, #tpu.memory_space<vmem>>, vector<3x7x7x512xf32>
      %c0_30 = arith.constant 0 : index
      %c0_31 = arith.constant 0 : index
      %28 = vector.load %arg4[%c0_30, %c0_31] : memref<1x512xf32, #tpu.memory_space<vmem>>, vector<1x512xf32>
      %c0_32 = arith.constant 0 : index
      %c0_33 = arith.constant 0 : index
      %c0_34 = arith.constant 0 : index
      %29 = vector.load %arg8[%c0_32, %c0_33, %c0_34] : memref<6x7x7xf32, #tpu.memory_space<vmem>>, vector<6x7x7xf32>
      %30 = vector.shape_cast %29 : vector<6x7x7xf32> to vector<2x3x7x7xf32>
      %cst_35 = arith.constant 0.000000e+00 : f32
      %31 = vector.broadcast %cst_35 : f32 to vector<2x512xf32>
      %32 = vector.extract_strided_slice %30 {offsets = [0, 0, 0, 0], sizes = [2, 1, 1, 7], strides = [1, 1, 1, 1]} : vector<2x3x7x7xf32> to vector<2x1x1x7xf32>
      %33 = vector.shape_cast %32 : vector<2x1x1x7xf32> to vector<2x7xf32>
      %34 = vector.extract_strided_slice %27 {offsets = [0, 0, 0, 0], sizes = [1, 1, 7, 512], strides = [1, 1, 1, 1]} : vector<3x7x7x512xf32> to vector<1x1x7x512xf32>
      %35 = vector.shape_cast %34 : vector<1x1x7x512xf32> to vector<7x512xf32>
      %cst_36 = arith.constant dense<0.000000e+00> : vector<2x512xf32>
      %36 = tpu.matmul %33, %35, %cst_36 {dimension_numbers = #tpu.dot_dimension_numbers<[1], [0], [0], [1], [0, 0, 1, 1], [], []>} : vector<2x7xf32>, vector<7x512xf32>, vector<2x512xf32> -> vector<2x512xf32>
      %37 = arith.addf %31, %36 : vector<2x512xf32>
      %38 = vector.extract_strided_slice %30 {offsets = [0, 0, 1, 0], sizes = [2, 1, 1, 7], strides = [1, 1, 1, 1]} : vector<2x3x7x7xf32> to vector<2x1x1x7xf32>
      %39 = vector.shape_cast %38 : vector<2x1x1x7xf32> to vector<2x7xf32>
      %40 = vector.extract_strided_slice %27 {offsets = [0, 1, 0, 0], sizes = [1, 1, 7, 512], strides = [1, 1, 1, 1]} : vector<3x7x7x512xf32> to vector<1x1x7x512xf32>
      %41 = vector.shape_cast %40 : vector<1x1x7x512xf32> to vector<7x512xf32>
      %cst_37 = arith.constant dense<0.000000e+00> : vector<2x512xf32>
      %42 = tpu.matmul %39, %41, %cst_37 {dimension_numbers = #tpu.dot_dimension_numbers<[1], [0], [0], [1], [0, 0, 1, 1], [], []>} : vector<2x7xf32>, vector<7x512xf32>, vector<2x512xf32> -> vector<2x512xf32>
      %43 = arith.addf %37, %42 : vector<2x512xf32>
      %44 = vector.extract_strided_slice %30 {offsets = [0, 0, 2, 0], sizes = [2, 1, 1, 7], strides = [1, 1, 1, 1]} : vector<2x3x7x7xf32> to vector<2x1x1x7xf32>
      %45 = vector.shape_cast %44 : vector<2x1x1x7xf32> to vector<2x7xf32>
      %46 = vector.extract_strided_slice %27 {offsets = [0, 2, 0, 0], sizes = [1, 1, 7, 512], strides = [1, 1, 1, 1]} : vector<3x7x7x512xf32> to vector<1x1x7x512xf32>
      %47 = vector.shape_cast %46 : vector<1x1x7x512xf32> to vector<7x512xf32>
      %cst_38 = arith.constant dense<0.000000e+00> : vector<2x512xf32>
      %48 = tpu.matmul %45, %47, %cst_38 {dimension_numbers = #tpu.dot_dimension_numbers<[1], [0], [0], [1], [0, 0, 1, 1], [], []>} : vector<2x7xf32>, vector<7x512xf32>, vector<2x512xf32> -> vector<2x512xf32>
      %49 = arith.addf %43, %48 : vector<2x512xf32>
      %50 = vector.extract_strided_slice %30 {offsets = [0, 0, 3, 0], sizes = [2, 1, 1, 7], strides = [1, 1, 1, 1]} : vector<2x3x7x7xf32> to vector<2x1x1x7xf32>
      %51 = vector.shape_cast %50 : vector<2x1x1x7xf32> to vector<2x7xf32>
      %52 = vector.extract_strided_slice %27 {offsets = [0, 3, 0, 0], sizes = [1, 1, 7, 512], strides = [1, 1, 1, 1]} : vector<3x7x7x512xf32> to vector<1x1x7x512xf32>
      %53 = vector.shape_cast %52 : vector<1x1x7x512xf32> to vector<7x512xf32>
      %cst_39 = arith.constant dense<0.000000e+00> : vector<2x512xf32>
      %54 = tpu.matmul %51, %53, %cst_39 {dimension_numbers = #tpu.dot_dimension_numbers<[1], [0], [0], [1], [0, 0, 1, 1], [], []>} : vector<2x7xf32>, vector<7x512xf32>, vector<2x512xf32> -> vector<2x512xf32>
      %55 = arith.addf %49, %54 : vector<2x512xf32>
      %56 = vector.extract_strided_slice %30 {offsets = [0, 0, 4, 0], sizes = [2, 1, 1, 7], strides = [1, 1, 1, 1]} : vector<2x3x7x7xf32> to vector<2x1x1x7xf32>
      %57 = vector.shape_cast %56 : vector<2x1x1x7xf32> to vector<2x7xf32>
      %58 = vector.extract_strided_slice %27 {offsets = [0, 4, 0, 0], sizes = [1, 1, 7, 512], strides = [1, 1, 1, 1]} : vector<3x7x7x512xf32> to vector<1x1x7x512xf32>
      %59 = vector.shape_cast %58 : vector<1x1x7x512xf32> to vector<7x512xf32>
      %cst_40 = arith.constant dense<0.000000e+00> : vector<2x512xf32>
      %60 = tpu.matmul %57, %59, %cst_40 {dimension_numbers = #tpu.dot_dimension_numbers<[1], [0], [0], [1], [0, 0, 1, 1], [], []>} : vector<2x7xf32>, vector<7x512xf32>, vector<2x512xf32> -> vector<2x512xf32>
      %61 = arith.addf %55, %60 : vector<2x512xf32>
      %62 = vector.extract_strided_slice %30 {offsets = [0, 0, 5, 0], sizes = [2, 1, 1, 7], strides = [1, 1, 1, 1]} : vector<2x3x7x7xf32> to vector<2x1x1x7xf32>
      %63 = vector.shape_cast %62 : vector<2x1x1x7xf32> to vector<2x7xf32>
      %64 = vector.extract_strided_slice %27 {offsets = [0, 5, 0, 0], sizes = [1, 1, 7, 512], strides = [1, 1, 1, 1]} : vector<3x7x7x512xf32> to vector<1x1x7x512xf32>
      %65 = vector.shape_cast %64 : vector<1x1x7x512xf32> to vector<7x512xf32>
      %cst_41 = arith.constant dense<0.000000e+00> : vector<2x512xf32>
      %66 = tpu.matmul %63, %65, %cst_41 {dimension_numbers = #tpu.dot_dimension_numbers<[1], [0], [0], [1], [0, 0, 1, 1], [], []>} : vector<2x7xf32>, vector<7x512xf32>, vector<2x512xf32> -> vector<2x512xf32>
      %67 = arith.addf %61, %66 : vector<2x512xf32>
      %68 = vector.extract_strided_slice %30 {offsets = [0, 0, 6, 0], sizes = [2, 1, 1, 7], strides = [1, 1, 1, 1]} : vector<2x3x7x7xf32> to vector<2x1x1x7xf32>
      %69 = vector.shape_cast %68 : vector<2x1x1x7xf32> to vector<2x7xf32>
      %70 = vector.extract_strided_slice %27 {offsets = [0, 6, 0, 0], sizes = [1, 1, 7, 512], strides = [1, 1, 1, 1]} : vector<3x7x7x512xf32> to vector<1x1x7x512xf32>
      %71 = vector.shape_cast %70 : vector<1x1x7x512xf32> to vector<7x512xf32>
      %cst_42 = arith.constant dense<0.000000e+00> : vector<2x512xf32>
      %72 = tpu.matmul %69, %71, %cst_42 {dimension_numbers = #tpu.dot_dimension_numbers<[1], [0], [0], [1], [0, 0, 1, 1], [], []>} : vector<2x7xf32>, vector<7x512xf32>, vector<2x512xf32> -> vector<2x512xf32>
      %73 = arith.addf %67, %72 : vector<2x512xf32>
      %74 = vector.extract_strided_slice %30 {offsets = [0, 1, 0, 0], sizes = [2, 1, 1, 7], strides = [1, 1, 1, 1]} : vector<2x3x7x7xf32> to vector<2x1x1x7xf32>
      %75 = vector.shape_cast %74 : vector<2x1x1x7xf32> to vector<2x7xf32>
      %76 = vector.extract_strided_slice %27 {offsets = [1, 0, 0, 0], sizes = [1, 1, 7, 512], strides = [1, 1, 1, 1]} : vector<3x7x7x512xf32> to vector<1x1x7x512xf32>
      %77 = vector.shape_cast %76 : vector<1x1x7x512xf32> to vector<7x512xf32>
      %cst_43 = arith.constant dense<0.000000e+00> : vector<2x512xf32>
      %78 = tpu.matmul %75, %77, %cst_43 {dimension_numbers = #tpu.dot_dimension_numbers<[1], [0], [0], [1], [0, 0, 1, 1], [], []>} : vector<2x7xf32>, vector<7x512xf32>, vector<2x512xf32> -> vector<2x512xf32>
      %79 = arith.addf %73, %78 : vector<2x512xf32>
      %80 = vector.extract_strided_slice %30 {offsets = [0, 1, 1, 0], sizes = [2, 1, 1, 7], strides = [1, 1, 1, 1]} : vector<2x3x7x7xf32> to vector<2x1x1x7xf32>
      %81 = vector.shape_cast %80 : vector<2x1x1x7xf32> to vector<2x7xf32>
      %82 = vector.extract_strided_slice %27 {offsets = [1, 1, 0, 0], sizes = [1, 1, 7, 512], strides = [1, 1, 1, 1]} : vector<3x7x7x512xf32> to vector<1x1x7x512xf32>
      %83 = vector.shape_cast %82 : vector<1x1x7x512xf32> to vector<7x512xf32>
      %cst_44 = arith.constant dense<0.000000e+00> : vector<2x512xf32>
      %84 = tpu.matmul %81, %83, %cst_44 {dimension_numbers = #tpu.dot_dimension_numbers<[1], [0], [0], [1], [0, 0, 1, 1], [], []>} : vector<2x7xf32>, vector<7x512xf32>, vector<2x512xf32> -> vector<2x512xf32>
      %85 = arith.addf %79, %84 : vector<2x512xf32>
      %86 = vector.extract_strided_slice %30 {offsets = [0, 1, 2, 0], sizes = [2, 1, 1, 7], strides = [1, 1, 1, 1]} : vector<2x3x7x7xf32> to vector<2x1x1x7xf32>
      %87 = vector.shape_cast %86 : vector<2x1x1x7xf32> to vector<2x7xf32>
      %88 = vector.extract_strided_slice %27 {offsets = [1, 2, 0, 0], sizes = [1, 1, 7, 512], strides = [1, 1, 1, 1]} : vector<3x7x7x512xf32> to vector<1x1x7x512xf32>
      %89 = vector.shape_cast %88 : vector<1x1x7x512xf32> to vector<7x512xf32>
      %cst_45 = arith.constant dense<0.000000e+00> : vector<2x512xf32>
      %90 = tpu.matmul %87, %89, %cst_45 {dimension_numbers = #tpu.dot_dimension_numbers<[1], [0], [0], [1], [0, 0, 1, 1], [], []>} : vector<2x7xf32>, vector<7x512xf32>, vector<2x512xf32> -> vector<2x512xf32>
      %91 = arith.addf %85, %90 : vector<2x512xf32>
      %92 = vector.extract_strided_slice %30 {offsets = [0, 1, 3, 0], sizes = [2, 1, 1, 7], strides = [1, 1, 1, 1]} : vector<2x3x7x7xf32> to vector<2x1x1x7xf32>
      %93 = vector.shape_cast %92 : vector<2x1x1x7xf32> to vector<2x7xf32>
      %94 = vector.extract_strided_slice %27 {offsets = [1, 3, 0, 0], sizes = [1, 1, 7, 512], strides = [1, 1, 1, 1]} : vector<3x7x7x512xf32> to vector<1x1x7x512xf32>
      %95 = vector.shape_cast %94 : vector<1x1x7x512xf32> to vector<7x512xf32>
      %cst_46 = arith.constant dense<0.000000e+00> : vector<2x512xf32>
      %96 = tpu.matmul %93, %95, %cst_46 {dimension_numbers = #tpu.dot_dimension_numbers<[1], [0], [0], [1], [0, 0, 1, 1], [], []>} : vector<2x7xf32>, vector<7x512xf32>, vector<2x512xf32> -> vector<2x512xf32>
      %97 = arith.addf %91, %96 : vector<2x512xf32>
      %98 = vector.extract_strided_slice %30 {offsets = [0, 1, 4, 0], sizes = [2, 1, 1, 7], strides = [1, 1, 1, 1]} : vector<2x3x7x7xf32> to vector<2x1x1x7xf32>
      %99 = vector.shape_cast %98 : vector<2x1x1x7xf32> to vector<2x7xf32>
      %100 = vector.extract_strided_slice %27 {offsets = [1, 4, 0, 0], sizes = [1, 1, 7, 512], strides = [1, 1, 1, 1]} : vector<3x7x7x512xf32> to vector<1x1x7x512xf32>
      %101 = vector.shape_cast %100 : vector<1x1x7x512xf32> to vector<7x512xf32>
      %cst_47 = arith.constant dense<0.000000e+00> : vector<2x512xf32>
      %102 = tpu.matmul %99, %101, %cst_47 {dimension_numbers = #tpu.dot_dimension_numbers<[1], [0], [0], [1], [0, 0, 1, 1], [], []>} : vector<2x7xf32>, vector<7x512xf32>, vector<2x512xf32> -> vector<2x512xf32>
      %103 = arith.addf %97, %102 : vector<2x512xf32>
      %104 = vector.extract_strided_slice %30 {offsets = [0, 1, 5, 0], sizes = [2, 1, 1, 7], strides = [1, 1, 1, 1]} : vector<2x3x7x7xf32> to vector<2x1x1x7xf32>
      %105 = vector.shape_cast %104 : vector<2x1x1x7xf32> to vector<2x7xf32>
      %106 = vector.extract_strided_slice %27 {offsets = [1, 5, 0, 0], sizes = [1, 1, 7, 512], strides = [1, 1, 1, 1]} : vector<3x7x7x512xf32> to vector<1x1x7x512xf32>
      %107 = vector.shape_cast %106 : vector<1x1x7x512xf32> to vector<7x512xf32>
      %cst_48 = arith.constant dense<0.000000e+00> : vector<2x512xf32>
      %108 = tpu.matmul %105, %107, %cst_48 {dimension_numbers = #tpu.dot_dimension_numbers<[1], [0], [0], [1], [0, 0, 1, 1], [], []>} : vector<2x7xf32>, vector<7x512xf32>, vector<2x512xf32> -> vector<2x512xf32>
      %109 = arith.addf %103, %108 : vector<2x512xf32>
      %110 = vector.extract_strided_slice %30 {offsets = [0, 1, 6, 0], sizes = [2, 1, 1, 7], strides = [1, 1, 1, 1]} : vector<2x3x7x7xf32> to vector<2x1x1x7xf32>
      %111 = vector.shape_cast %110 : vector<2x1x1x7xf32> to vector<2x7xf32>
      %112 = vector.extract_strided_slice %27 {offsets = [1, 6, 0, 0], sizes = [1, 1, 7, 512], strides = [1, 1, 1, 1]} : vector<3x7x7x512xf32> to vector<1x1x7x512xf32>
      %113 = vector.shape_cast %112 : vector<1x1x7x512xf32> to vector<7x512xf32>
      %cst_49 = arith.constant dense<0.000000e+00> : vector<2x512xf32>
      %114 = tpu.matmul %111, %113, %cst_49 {dimension_numbers = #tpu.dot_dimension_numbers<[1], [0], [0], [1], [0, 0, 1, 1], [], []>} : vector<2x7xf32>, vector<7x512xf32>, vector<2x512xf32> -> vector<2x512xf32>
      %115 = arith.addf %109, %114 : vector<2x512xf32>
      %116 = vector.extract_strided_slice %30 {offsets = [0, 2, 0, 0], sizes = [2, 1, 1, 7], strides = [1, 1, 1, 1]} : vector<2x3x7x7xf32> to vector<2x1x1x7xf32>
      %117 = vector.shape_cast %116 : vector<2x1x1x7xf32> to vector<2x7xf32>
      %118 = vector.extract_strided_slice %27 {offsets = [2, 0, 0, 0], sizes = [1, 1, 7, 512], strides = [1, 1, 1, 1]} : vector<3x7x7x512xf32> to vector<1x1x7x512xf32>
      %119 = vector.shape_cast %118 : vector<1x1x7x512xf32> to vector<7x512xf32>
      %cst_50 = arith.constant dense<0.000000e+00> : vector<2x512xf32>
      %120 = tpu.matmul %117, %119, %cst_50 {dimension_numbers = #tpu.dot_dimension_numbers<[1], [0], [0], [1], [0, 0, 1, 1], [], []>} : vector<2x7xf32>, vector<7x512xf32>, vector<2x512xf32> -> vector<2x512xf32>
      %121 = arith.addf %115, %120 : vector<2x512xf32>
      %122 = vector.extract_strided_slice %30 {offsets = [0, 2, 1, 0], sizes = [2, 1, 1, 7], strides = [1, 1, 1, 1]} : vector<2x3x7x7xf32> to vector<2x1x1x7xf32>
      %123 = vector.shape_cast %122 : vector<2x1x1x7xf32> to vector<2x7xf32>
      %124 = vector.extract_strided_slice %27 {offsets = [2, 1, 0, 0], sizes = [1, 1, 7, 512], strides = [1, 1, 1, 1]} : vector<3x7x7x512xf32> to vector<1x1x7x512xf32>
      %125 = vector.shape_cast %124 : vector<1x1x7x512xf32> to vector<7x512xf32>
      %cst_51 = arith.constant dense<0.000000e+00> : vector<2x512xf32>
      %126 = tpu.matmul %123, %125, %cst_51 {dimension_numbers = #tpu.dot_dimension_numbers<[1], [0], [0], [1], [0, 0, 1, 1], [], []>} : vector<2x7xf32>, vector<7x512xf32>, vector<2x512xf32> -> vector<2x512xf32>
      %127 = arith.addf %121, %126 : vector<2x512xf32>
      %128 = vector.extract_strided_slice %30 {offsets = [0, 2, 2, 0], sizes = [2, 1, 1, 7], strides = [1, 1, 1, 1]} : vector<2x3x7x7xf32> to vector<2x1x1x7xf32>
      %129 = vector.shape_cast %128 : vector<2x1x1x7xf32> to vector<2x7xf32>
      %130 = vector.extract_strided_slice %27 {offsets = [2, 2, 0, 0], sizes = [1, 1, 7, 512], strides = [1, 1, 1, 1]} : vector<3x7x7x512xf32> to vector<1x1x7x512xf32>
      %131 = vector.shape_cast %130 : vector<1x1x7x512xf32> to vector<7x512xf32>
      %cst_52 = arith.constant dense<0.000000e+00> : vector<2x512xf32>
      %132 = tpu.matmul %129, %131, %cst_52 {dimension_numbers = #tpu.dot_dimension_numbers<[1], [0], [0], [1], [0, 0, 1, 1], [], []>} : vector<2x7xf32>, vector<7x512xf32>, vector<2x512xf32> -> vector<2x512xf32>
      %133 = arith.addf %127, %132 : vector<2x512xf32>
      %134 = vector.extract_strided_slice %30 {offsets = [0, 2, 3, 0], sizes = [2, 1, 1, 7], strides = [1, 1, 1, 1]} : vector<2x3x7x7xf32> to vector<2x1x1x7xf32>
      %135 = vector.shape_cast %134 : vector<2x1x1x7xf32> to vector<2x7xf32>
      %136 = vector.extract_strided_slice %27 {offsets = [2, 3, 0, 0], sizes = [1, 1, 7, 512], strides = [1, 1, 1, 1]} : vector<3x7x7x512xf32> to vector<1x1x7x512xf32>
      %137 = vector.shape_cast %136 : vector<1x1x7x512xf32> to vector<7x512xf32>
      %cst_53 = arith.constant dense<0.000000e+00> : vector<2x512xf32>
      %138 = tpu.matmul %135, %137, %cst_53 {dimension_numbers = #tpu.dot_dimension_numbers<[1], [0], [0], [1], [0, 0, 1, 1], [], []>} : vector<2x7xf32>, vector<7x512xf32>, vector<2x512xf32> -> vector<2x512xf32>
      %139 = arith.addf %133, %138 : vector<2x512xf32>
      %140 = vector.extract_strided_slice %30 {offsets = [0, 2, 4, 0], sizes = [2, 1, 1, 7], strides = [1, 1, 1, 1]} : vector<2x3x7x7xf32> to vector<2x1x1x7xf32>
      %141 = vector.shape_cast %140 : vector<2x1x1x7xf32> to vector<2x7xf32>
      %142 = vector.extract_strided_slice %27 {offsets = [2, 4, 0, 0], sizes = [1, 1, 7, 512], strides = [1, 1, 1, 1]} : vector<3x7x7x512xf32> to vector<1x1x7x512xf32>
      %143 = vector.shape_cast %142 : vector<1x1x7x512xf32> to vector<7x512xf32>
      %cst_54 = arith.constant dense<0.000000e+00> : vector<2x512xf32>
      %144 = tpu.matmul %141, %143, %cst_54 {dimension_numbers = #tpu.dot_dimension_numbers<[1], [0], [0], [1], [0, 0, 1, 1], [], []>} : vector<2x7xf32>, vector<7x512xf32>, vector<2x512xf32> -> vector<2x512xf32>
      %145 = arith.addf %139, %144 : vector<2x512xf32>
      %146 = vector.extract_strided_slice %30 {offsets = [0, 2, 5, 0], sizes = [2, 1, 1, 7], strides = [1, 1, 1, 1]} : vector<2x3x7x7xf32> to vector<2x1x1x7xf32>
      %147 = vector.shape_cast %146 : vector<2x1x1x7xf32> to vector<2x7xf32>
      %148 = vector.extract_strided_slice %27 {offsets = [2, 5, 0, 0], sizes = [1, 1, 7, 512], strides = [1, 1, 1, 1]} : vector<3x7x7x512xf32> to vector<1x1x7x512xf32>
      %149 = vector.shape_cast %148 : vector<1x1x7x512xf32> to vector<7x512xf32>
      %cst_55 = arith.constant dense<0.000000e+00> : vector<2x512xf32>
      %150 = tpu.matmul %147, %149, %cst_55 {dimension_numbers = #tpu.dot_dimension_numbers<[1], [0], [0], [1], [0, 0, 1, 1], [], []>} : vector<2x7xf32>, vector<7x512xf32>, vector<2x512xf32> -> vector<2x512xf32>
      %151 = arith.addf %145, %150 : vector<2x512xf32>
      %152 = vector.extract_strided_slice %30 {offsets = [0, 2, 6, 0], sizes = [2, 1, 1, 7], strides = [1, 1, 1, 1]} : vector<2x3x7x7xf32> to vector<2x1x1x7xf32>
      %153 = vector.shape_cast %152 : vector<2x1x1x7xf32> to vector<2x7xf32>
      %154 = vector.extract_strided_slice %27 {offsets = [2, 6, 0, 0], sizes = [1, 1, 7, 512], strides = [1, 1, 1, 1]} : vector<3x7x7x512xf32> to vector<1x1x7x512xf32>
      %155 = vector.shape_cast %154 : vector<1x1x7x512xf32> to vector<7x512xf32>
      %cst_56 = arith.constant dense<0.000000e+00> : vector<2x512xf32>
      %156 = tpu.matmul %153, %155, %cst_56 {dimension_numbers = #tpu.dot_dimension_numbers<[1], [0], [0], [1], [0, 0, 1, 1], [], []>} : vector<2x7xf32>, vector<7x512xf32>, vector<2x512xf32> -> vector<2x512xf32>
      %157 = arith.addf %151, %156 : vector<2x512xf32>
      %158 = vector.broadcast %28 : vector<1x512xf32> to vector<2x512xf32>
      %159 = arith.addf %157, %158 : vector<2x512xf32>
      %160 = arith.mulf %159, %159 : vector<2x512xf32>
      %cst_57 = arith.constant dense<0.000000e+00> : vector<2xf32>
      %161 = vector.multi_reduction <add>, %160, %cst_57 [1] : vector<2x512xf32> to vector<2xf32>
      %162 = vector.shape_cast %161 : vector<2xf32> to vector<2x1xf32>
      %cst_58 = arith.constant 9.99999996E-13 : f32
      %163 = vector.broadcast %cst_58 : f32 to vector<2x1xf32>
      %164 = arith.addf %162, %163 : vector<2x1xf32>
      %165 = math.rsqrt %164 : vector<2x1xf32>
      %166 = vector.broadcast %165 : vector<2x1xf32> to vector<2x512xf32>
      %167 = arith.mulf %159, %166 : vector<2x512xf32>
      %c0_59 = arith.constant 0 : index
      %c0_60 = arith.constant 0 : index
      %c0_61 = arith.constant 0 : index
      %168 = vector.load %arg9[%c0_59, %c0_60, %c0_61] : memref<6x7x7xf32, #tpu.memory_space<vmem>>, vector<6x7x7xf32>
      %169 = vector.shape_cast %168 : vector<6x7x7xf32> to vector<2x3x7x7xf32>
      %cst_62 = arith.constant 0.000000e+00 : f32
      %170 = vector.broadcast %cst_62 : f32 to vector<2x512xf32>
      %171 = vector.extract_strided_slice %169 {offsets = [0, 0, 0, 0], sizes = [2, 1, 1, 7], strides = [1, 1, 1, 1]} : vector<2x3x7x7xf32> to vector<2x1x1x7xf32>
      %172 = vector.shape_cast %171 : vector<2x1x1x7xf32> to vector<2x7xf32>
      %173 = vector.extract_strided_slice %27 {offsets = [0, 0, 0, 0], sizes = [1, 1, 7, 512], strides = [1, 1, 1, 1]} : vector<3x7x7x512xf32> to vector<1x1x7x512xf32>
      %174 = vector.shape_cast %173 : vector<1x1x7x512xf32> to vector<7x512xf32>
      %cst_63 = arith.constant dense<0.000000e+00> : vector<2x512xf32>
      %175 = tpu.matmul %172, %174, %cst_63 {dimension_numbers = #tpu.dot_dimension_numbers<[1], [0], [0], [1], [0, 0, 1, 1], [], []>} : vector<2x7xf32>, vector<7x512xf32>, vector<2x512xf32> -> vector<2x512xf32>
      %176 = arith.addf %170, %175 : vector<2x512xf32>
      %177 = vector.extract_strided_slice %169 {offsets = [0, 0, 1, 0], sizes = [2, 1, 1, 7], strides = [1, 1, 1, 1]} : vector<2x3x7x7xf32> to vector<2x1x1x7xf32>
      %178 = vector.shape_cast %177 : vector<2x1x1x7xf32> to vector<2x7xf32>
      %179 = vector.extract_strided_slice %27 {offsets = [0, 1, 0, 0], sizes = [1, 1, 7, 512], strides = [1, 1, 1, 1]} : vector<3x7x7x512xf32> to vector<1x1x7x512xf32>
      %180 = vector.shape_cast %179 : vector<1x1x7x512xf32> to vector<7x512xf32>
      %cst_64 = arith.constant dense<0.000000e+00> : vector<2x512xf32>
      %181 = tpu.matmul %178, %180, %cst_64 {dimension_numbers = #tpu.dot_dimension_numbers<[1], [0], [0], [1], [0, 0, 1, 1], [], []>} : vector<2x7xf32>, vector<7x512xf32>, vector<2x512xf32> -> vector<2x512xf32>
      %182 = arith.addf %176, %181 : vector<2x512xf32>
      %183 = vector.extract_strided_slice %169 {offsets = [0, 0, 2, 0], sizes = [2, 1, 1, 7], strides = [1, 1, 1, 1]} : vector<2x3x7x7xf32> to vector<2x1x1x7xf32>
      %184 = vector.shape_cast %183 : vector<2x1x1x7xf32> to vector<2x7xf32>
      %185 = vector.extract_strided_slice %27 {offsets = [0, 2, 0, 0], sizes = [1, 1, 7, 512], strides = [1, 1, 1, 1]} : vector<3x7x7x512xf32> to vector<1x1x7x512xf32>
      %186 = vector.shape_cast %185 : vector<1x1x7x512xf32> to vector<7x512xf32>
      %cst_65 = arith.constant dense<0.000000e+00> : vector<2x512xf32>
      %187 = tpu.matmul %184, %186, %cst_65 {dimension_numbers = #tpu.dot_dimension_numbers<[1], [0], [0], [1], [0, 0, 1, 1], [], []>} : vector<2x7xf32>, vector<7x512xf32>, vector<2x512xf32> -> vector<2x512xf32>
      %188 = arith.addf %182, %187 : vector<2x512xf32>
      %189 = vector.extract_strided_slice %169 {offsets = [0, 0, 3, 0], sizes = [2, 1, 1, 7], strides = [1, 1, 1, 1]} : vector<2x3x7x7xf32> to vector<2x1x1x7xf32>
      %190 = vector.shape_cast %189 : vector<2x1x1x7xf32> to vector<2x7xf32>
      %191 = vector.extract_strided_slice %27 {offsets = [0, 3, 0, 0], sizes = [1, 1, 7, 512], strides = [1, 1, 1, 1]} : vector<3x7x7x512xf32> to vector<1x1x7x512xf32>
      %192 = vector.shape_cast %191 : vector<1x1x7x512xf32> to vector<7x512xf32>
      %cst_66 = arith.constant dense<0.000000e+00> : vector<2x512xf32>
      %193 = tpu.matmul %190, %192, %cst_66 {dimension_numbers = #tpu.dot_dimension_numbers<[1], [0], [0], [1], [0, 0, 1, 1], [], []>} : vector<2x7xf32>, vector<7x512xf32>, vector<2x512xf32> -> vector<2x512xf32>
      %194 = arith.addf %188, %193 : vector<2x512xf32>
      %195 = vector.extract_strided_slice %169 {offsets = [0, 0, 4, 0], sizes = [2, 1, 1, 7], strides = [1, 1, 1, 1]} : vector<2x3x7x7xf32> to vector<2x1x1x7xf32>
      %196 = vector.shape_cast %195 : vector<2x1x1x7xf32> to vector<2x7xf32>
      %197 = vector.extract_strided_slice %27 {offsets = [0, 4, 0, 0], sizes = [1, 1, 7, 512], strides = [1, 1, 1, 1]} : vector<3x7x7x512xf32> to vector<1x1x7x512xf32>
      %198 = vector.shape_cast %197 : vector<1x1x7x512xf32> to vector<7x512xf32>
      %cst_67 = arith.constant dense<0.000000e+00> : vector<2x512xf32>
      %199 = tpu.matmul %196, %198, %cst_67 {dimension_numbers = #tpu.dot_dimension_numbers<[1], [0], [0], [1], [0, 0, 1, 1], [], []>} : vector<2x7xf32>, vector<7x512xf32>, vector<2x512xf32> -> vector<2x512xf32>
      %200 = arith.addf %194, %199 : vector<2x512xf32>
      %201 = vector.extract_strided_slice %169 {offsets = [0, 0, 5, 0], sizes = [2, 1, 1, 7], strides = [1, 1, 1, 1]} : vector<2x3x7x7xf32> to vector<2x1x1x7xf32>
      %202 = vector.shape_cast %201 : vector<2x1x1x7xf32> to vector<2x7xf32>
      %203 = vector.extract_strided_slice %27 {offsets = [0, 5, 0, 0], sizes = [1, 1, 7, 512], strides = [1, 1, 1, 1]} : vector<3x7x7x512xf32> to vector<1x1x7x512xf32>
      %204 = vector.shape_cast %203 : vector<1x1x7x512xf32> to vector<7x512xf32>
      %cst_68 = arith.constant dense<0.000000e+00> : vector<2x512xf32>
      %205 = tpu.matmul %202, %204, %cst_68 {dimension_numbers = #tpu.dot_dimension_numbers<[1], [0], [0], [1], [0, 0, 1, 1], [], []>} : vector<2x7xf32>, vector<7x512xf32>, vector<2x512xf32> -> vector<2x512xf32>
      %206 = arith.addf %200, %205 : vector<2x512xf32>
      %207 = vector.extract_strided_slice %169 {offsets = [0, 0, 6, 0], sizes = [2, 1, 1, 7], strides = [1, 1, 1, 1]} : vector<2x3x7x7xf32> to vector<2x1x1x7xf32>
      %208 = vector.shape_cast %207 : vector<2x1x1x7xf32> to vector<2x7xf32>
      %209 = vector.extract_strided_slice %27 {offsets = [0, 6, 0, 0], sizes = [1, 1, 7, 512], strides = [1, 1, 1, 1]} : vector<3x7x7x512xf32> to vector<1x1x7x512xf32>
      %210 = vector.shape_cast %209 : vector<1x1x7x512xf32> to vector<7x512xf32>
      %cst_69 = arith.constant dense<0.000000e+00> : vector<2x512xf32>
      %211 = tpu.matmul %208, %210, %cst_69 {dimension_numbers = #tpu.dot_dimension_numbers<[1], [0], [0], [1], [0, 0, 1, 1], [], []>} : vector<2x7xf32>, vector<7x512xf32>, vector<2x512xf32> -> vector<2x512xf32>
      %212 = arith.addf %206, %211 : vector<2x512xf32>
      %213 = vector.extract_strided_slice %169 {offsets = [0, 1, 0, 0], sizes = [2, 1, 1, 7], strides = [1, 1, 1, 1]} : vector<2x3x7x7xf32> to vector<2x1x1x7xf32>
      %214 = vector.shape_cast %213 : vector<2x1x1x7xf32> to vector<2x7xf32>
      %215 = vector.extract_strided_slice %27 {offsets = [1, 0, 0, 0], sizes = [1, 1, 7, 512], strides = [1, 1, 1, 1]} : vector<3x7x7x512xf32> to vector<1x1x7x512xf32>
      %216 = vector.shape_cast %215 : vector<1x1x7x512xf32> to vector<7x512xf32>
      %cst_70 = arith.constant dense<0.000000e+00> : vector<2x512xf32>
      %217 = tpu.matmul %214, %216, %cst_70 {dimension_numbers = #tpu.dot_dimension_numbers<[1], [0], [0], [1], [0, 0, 1, 1], [], []>} : vector<2x7xf32>, vector<7x512xf32>, vector<2x512xf32> -> vector<2x512xf32>
      %218 = arith.addf %212, %217 : vector<2x512xf32>
      %219 = vector.extract_strided_slice %169 {offsets = [0, 1, 1, 0], sizes = [2, 1, 1, 7], strides = [1, 1, 1, 1]} : vector<2x3x7x7xf32> to vector<2x1x1x7xf32>
      %220 = vector.shape_cast %219 : vector<2x1x1x7xf32> to vector<2x7xf32>
      %221 = vector.extract_strided_slice %27 {offsets = [1, 1, 0, 0], sizes = [1, 1, 7, 512], strides = [1, 1, 1, 1]} : vector<3x7x7x512xf32> to vector<1x1x7x512xf32>
      %222 = vector.shape_cast %221 : vector<1x1x7x512xf32> to vector<7x512xf32>
      %cst_71 = arith.constant dense<0.000000e+00> : vector<2x512xf32>
      %223 = tpu.matmul %220, %222, %cst_71 {dimension_numbers = #tpu.dot_dimension_numbers<[1], [0], [0], [1], [0, 0, 1, 1], [], []>} : vector<2x7xf32>, vector<7x512xf32>, vector<2x512xf32> -> vector<2x512xf32>
      %224 = arith.addf %218, %223 : vector<2x512xf32>
      %225 = vector.extract_strided_slice %169 {offsets = [0, 1, 2, 0], sizes = [2, 1, 1, 7], strides = [1, 1, 1, 1]} : vector<2x3x7x7xf32> to vector<2x1x1x7xf32>
      %226 = vector.shape_cast %225 : vector<2x1x1x7xf32> to vector<2x7xf32>
      %227 = vector.extract_strided_slice %27 {offsets = [1, 2, 0, 0], sizes = [1, 1, 7, 512], strides = [1, 1, 1, 1]} : vector<3x7x7x512xf32> to vector<1x1x7x512xf32>
      %228 = vector.shape_cast %227 : vector<1x1x7x512xf32> to vector<7x512xf32>
      %cst_72 = arith.constant dense<0.000000e+00> : vector<2x512xf32>
      %229 = tpu.matmul %226, %228, %cst_72 {dimension_numbers = #tpu.dot_dimension_numbers<[1], [0], [0], [1], [0, 0, 1, 1], [], []>} : vector<2x7xf32>, vector<7x512xf32>, vector<2x512xf32> -> vector<2x512xf32>
      %230 = arith.addf %224, %229 : vector<2x512xf32>
      %231 = vector.extract_strided_slice %169 {offsets = [0, 1, 3, 0], sizes = [2, 1, 1, 7], strides = [1, 1, 1, 1]} : vector<2x3x7x7xf32> to vector<2x1x1x7xf32>
      %232 = vector.shape_cast %231 : vector<2x1x1x7xf32> to vector<2x7xf32>
      %233 = vector.extract_strided_slice %27 {offsets = [1, 3, 0, 0], sizes = [1, 1, 7, 512], strides = [1, 1, 1, 1]} : vector<3x7x7x512xf32> to vector<1x1x7x512xf32>
      %234 = vector.shape_cast %233 : vector<1x1x7x512xf32> to vector<7x512xf32>
      %cst_73 = arith.constant dense<0.000000e+00> : vector<2x512xf32>
      %235 = tpu.matmul %232, %234, %cst_73 {dimension_numbers = #tpu.dot_dimension_numbers<[1], [0], [0], [1], [0, 0, 1, 1], [], []>} : vector<2x7xf32>, vector<7x512xf32>, vector<2x512xf32> -> vector<2x512xf32>
      %236 = arith.addf %230, %235 : vector<2x512xf32>
      %237 = vector.extract_strided_slice %169 {offsets = [0, 1, 4, 0], sizes = [2, 1, 1, 7], strides = [1, 1, 1, 1]} : vector<2x3x7x7xf32> to vector<2x1x1x7xf32>
      %238 = vector.shape_cast %237 : vector<2x1x1x7xf32> to vector<2x7xf32>
      %239 = vector.extract_strided_slice %27 {offsets = [1, 4, 0, 0], sizes = [1, 1, 7, 512], strides = [1, 1, 1, 1]} : vector<3x7x7x512xf32> to vector<1x1x7x512xf32>
      %240 = vector.shape_cast %239 : vector<1x1x7x512xf32> to vector<7x512xf32>
      %cst_74 = arith.constant dense<0.000000e+00> : vector<2x512xf32>
      %241 = tpu.matmul %238, %240, %cst_74 {dimension_numbers = #tpu.dot_dimension_numbers<[1], [0], [0], [1], [0, 0, 1, 1], [], []>} : vector<2x7xf32>, vector<7x512xf32>, vector<2x512xf32> -> vector<2x512xf32>
      %242 = arith.addf %236, %241 : vector<2x512xf32>
      %243 = vector.extract_strided_slice %169 {offsets = [0, 1, 5, 0], sizes = [2, 1, 1, 7], strides = [1, 1, 1, 1]} : vector<2x3x7x7xf32> to vector<2x1x1x7xf32>
      %244 = vector.shape_cast %243 : vector<2x1x1x7xf32> to vector<2x7xf32>
      %245 = vector.extract_strided_slice %27 {offsets = [1, 5, 0, 0], sizes = [1, 1, 7, 512], strides = [1, 1, 1, 1]} : vector<3x7x7x512xf32> to vector<1x1x7x512xf32>
      %246 = vector.shape_cast %245 : vector<1x1x7x512xf32> to vector<7x512xf32>
      %cst_75 = arith.constant dense<0.000000e+00> : vector<2x512xf32>
      %247 = tpu.matmul %244, %246, %cst_75 {dimension_numbers = #tpu.dot_dimension_numbers<[1], [0], [0], [1], [0, 0, 1, 1], [], []>} : vector<2x7xf32>, vector<7x512xf32>, vector<2x512xf32> -> vector<2x512xf32>
      %248 = arith.addf %242, %247 : vector<2x512xf32>
      %249 = vector.extract_strided_slice %169 {offsets = [0, 1, 6, 0], sizes = [2, 1, 1, 7], strides = [1, 1, 1, 1]} : vector<2x3x7x7xf32> to vector<2x1x1x7xf32>
      %250 = vector.shape_cast %249 : vector<2x1x1x7xf32> to vector<2x7xf32>
      %251 = vector.extract_strided_slice %27 {offsets = [1, 6, 0, 0], sizes = [1, 1, 7, 512], strides = [1, 1, 1, 1]} : vector<3x7x7x512xf32> to vector<1x1x7x512xf32>
      %252 = vector.shape_cast %251 : vector<1x1x7x512xf32> to vector<7x512xf32>
      %cst_76 = arith.constant dense<0.000000e+00> : vector<2x512xf32>
      %253 = tpu.matmul %250, %252, %cst_76 {dimension_numbers = #tpu.dot_dimension_numbers<[1], [0], [0], [1], [0, 0, 1, 1], [], []>} : vector<2x7xf32>, vector<7x512xf32>, vector<2x512xf32> -> vector<2x512xf32>
      %254 = arith.addf %248, %253 : vector<2x512xf32>
      %255 = vector.extract_strided_slice %169 {offsets = [0, 2, 0, 0], sizes = [2, 1, 1, 7], strides = [1, 1, 1, 1]} : vector<2x3x7x7xf32> to vector<2x1x1x7xf32>
      %256 = vector.shape_cast %255 : vector<2x1x1x7xf32> to vector<2x7xf32>
      %257 = vector.extract_strided_slice %27 {offsets = [2, 0, 0, 0], sizes = [1, 1, 7, 512], strides = [1, 1, 1, 1]} : vector<3x7x7x512xf32> to vector<1x1x7x512xf32>
      %258 = vector.shape_cast %257 : vector<1x1x7x512xf32> to vector<7x512xf32>
      %cst_77 = arith.constant dense<0.000000e+00> : vector<2x512xf32>
      %259 = tpu.matmul %256, %258, %cst_77 {dimension_numbers = #tpu.dot_dimension_numbers<[1], [0], [0], [1], [0, 0, 1, 1], [], []>} : vector<2x7xf32>, vector<7x512xf32>, vector<2x512xf32> -> vector<2x512xf32>
      %260 = arith.addf %254, %259 : vector<2x512xf32>
      %261 = vector.extract_strided_slice %169 {offsets = [0, 2, 1, 0], sizes = [2, 1, 1, 7], strides = [1, 1, 1, 1]} : vector<2x3x7x7xf32> to vector<2x1x1x7xf32>
      %262 = vector.shape_cast %261 : vector<2x1x1x7xf32> to vector<2x7xf32>
      %263 = vector.extract_strided_slice %27 {offsets = [2, 1, 0, 0], sizes = [1, 1, 7, 512], strides = [1, 1, 1, 1]} : vector<3x7x7x512xf32> to vector<1x1x7x512xf32>
      %264 = vector.shape_cast %263 : vector<1x1x7x512xf32> to vector<7x512xf32>
      %cst_78 = arith.constant dense<0.000000e+00> : vector<2x512xf32>
      %265 = tpu.matmul %262, %264, %cst_78 {dimension_numbers = #tpu.dot_dimension_numbers<[1], [0], [0], [1], [0, 0, 1, 1], [], []>} : vector<2x7xf32>, vector<7x512xf32>, vector<2x512xf32> -> vector<2x512xf32>
      %266 = arith.addf %260, %265 : vector<2x512xf32>
      %267 = vector.extract_strided_slice %169 {offsets = [0, 2, 2, 0], sizes = [2, 1, 1, 7], strides = [1, 1, 1, 1]} : vector<2x3x7x7xf32> to vector<2x1x1x7xf32>
      %268 = vector.shape_cast %267 : vector<2x1x1x7xf32> to vector<2x7xf32>
      %269 = vector.extract_strided_slice %27 {offsets = [2, 2, 0, 0], sizes = [1, 1, 7, 512], strides = [1, 1, 1, 1]} : vector<3x7x7x512xf32> to vector<1x1x7x512xf32>
      %270 = vector.shape_cast %269 : vector<1x1x7x512xf32> to vector<7x512xf32>
      %cst_79 = arith.constant dense<0.000000e+00> : vector<2x512xf32>
      %271 = tpu.matmul %268, %270, %cst_79 {dimension_numbers = #tpu.dot_dimension_numbers<[1], [0], [0], [1], [0, 0, 1, 1], [], []>} : vector<2x7xf32>, vector<7x512xf32>, vector<2x512xf32> -> vector<2x512xf32>
      %272 = arith.addf %266, %271 : vector<2x512xf32>
      %273 = vector.extract_strided_slice %169 {offsets = [0, 2, 3, 0], sizes = [2, 1, 1, 7], strides = [1, 1, 1, 1]} : vector<2x3x7x7xf32> to vector<2x1x1x7xf32>
      %274 = vector.shape_cast %273 : vector<2x1x1x7xf32> to vector<2x7xf32>
      %275 = vector.extract_strided_slice %27 {offsets = [2, 3, 0, 0], sizes = [1, 1, 7, 512], strides = [1, 1, 1, 1]} : vector<3x7x7x512xf32> to vector<1x1x7x512xf32>
      %276 = vector.shape_cast %275 : vector<1x1x7x512xf32> to vector<7x512xf32>
      %cst_80 = arith.constant dense<0.000000e+00> : vector<2x512xf32>
      %277 = tpu.matmul %274, %276, %cst_80 {dimension_numbers = #tpu.dot_dimension_numbers<[1], [0], [0], [1], [0, 0, 1, 1], [], []>} : vector<2x7xf32>, vector<7x512xf32>, vector<2x512xf32> -> vector<2x512xf32>
      %278 = arith.addf %272, %277 : vector<2x512xf32>
      %279 = vector.extract_strided_slice %169 {offsets = [0, 2, 4, 0], sizes = [2, 1, 1, 7], strides = [1, 1, 1, 1]} : vector<2x3x7x7xf32> to vector<2x1x1x7xf32>
      %280 = vector.shape_cast %279 : vector<2x1x1x7xf32> to vector<2x7xf32>
      %281 = vector.extract_strided_slice %27 {offsets = [2, 4, 0, 0], sizes = [1, 1, 7, 512], strides = [1, 1, 1, 1]} : vector<3x7x7x512xf32> to vector<1x1x7x512xf32>
      %282 = vector.shape_cast %281 : vector<1x1x7x512xf32> to vector<7x512xf32>
      %cst_81 = arith.constant dense<0.000000e+00> : vector<2x512xf32>
      %283 = tpu.matmul %280, %282, %cst_81 {dimension_numbers = #tpu.dot_dimension_numbers<[1], [0], [0], [1], [0, 0, 1, 1], [], []>} : vector<2x7xf32>, vector<7x512xf32>, vector<2x512xf32> -> vector<2x512xf32>
      %284 = arith.addf %278, %283 : vector<2x512xf32>
      %285 = vector.extract_strided_slice %169 {offsets = [0, 2, 5, 0], sizes = [2, 1, 1, 7], strides = [1, 1, 1, 1]} : vector<2x3x7x7xf32> to vector<2x1x1x7xf32>
      %286 = vector.shape_cast %285 : vector<2x1x1x7xf32> to vector<2x7xf32>
      %287 = vector.extract_strided_slice %27 {offsets = [2, 5, 0, 0], sizes = [1, 1, 7, 512], strides = [1, 1, 1, 1]} : vector<3x7x7x512xf32> to vector<1x1x7x512xf32>
      %288 = vector.shape_cast %287 : vector<1x1x7x512xf32> to vector<7x512xf32>
      %cst_82 = arith.constant dense<0.000000e+00> : vector<2x512xf32>
      %289 = tpu.matmul %286, %288, %cst_82 {dimension_numbers = #tpu.dot_dimension_numbers<[1], [0], [0], [1], [0, 0, 1, 1], [], []>} : vector<2x7xf32>, vector<7x512xf32>, vector<2x512xf32> -> vector<2x512xf32>
      %290 = arith.addf %284, %289 : vector<2x512xf32>
      %291 = vector.extract_strided_slice %169 {offsets = [0, 2, 6, 0], sizes = [2, 1, 1, 7], strides = [1, 1, 1, 1]} : vector<2x3x7x7xf32> to vector<2x1x1x7xf32>
      %292 = vector.shape_cast %291 : vector<2x1x1x7xf32> to vector<2x7xf32>
      %293 = vector.extract_strided_slice %27 {offsets = [2, 6, 0, 0], sizes = [1, 1, 7, 512], strides = [1, 1, 1, 1]} : vector<3x7x7x512xf32> to vector<1x1x7x512xf32>
      %294 = vector.shape_cast %293 : vector<1x1x7x512xf32> to vector<7x512xf32>
      %cst_83 = arith.constant dense<0.000000e+00> : vector<2x512xf32>
      %295 = tpu.matmul %292, %294, %cst_83 {dimension_numbers = #tpu.dot_dimension_numbers<[1], [0], [0], [1], [0, 0, 1, 1], [], []>} : vector<2x7xf32>, vector<7x512xf32>, vector<2x512xf32> -> vector<2x512xf32>
      %296 = arith.addf %290, %295 : vector<2x512xf32>
      %297 = vector.broadcast %28 : vector<1x512xf32> to vector<2x512xf32>
      %298 = arith.addf %296, %297 : vector<2x512xf32>
      %299 = arith.mulf %298, %298 : vector<2x512xf32>
      %cst_84 = arith.constant dense<0.000000e+00> : vector<2xf32>
      %300 = vector.multi_reduction <add>, %299, %cst_84 [1] : vector<2x512xf32> to vector<2xf32>
      %301 = vector.shape_cast %300 : vector<2xf32> to vector<2x1xf32>
      %cst_85 = arith.constant 9.99999996E-13 : f32
      %302 = vector.broadcast %cst_85 : f32 to vector<2x1xf32>
      %303 = arith.addf %301, %302 : vector<2x1xf32>
      %304 = math.rsqrt %303 : vector<2x1xf32>
      %305 = vector.broadcast %304 : vector<2x1xf32> to vector<2x512xf32>
      %306 = arith.mulf %298, %305 : vector<2x512xf32>
      %307 = arith.mulf %167, %306 : vector<2x512xf32>
      %cst_86 = arith.constant dense<0.000000e+00> : vector<2xf32>
      %308 = vector.multi_reduction <add>, %307, %cst_86 [1] : vector<2x512xf32> to vector<2xf32>
      %309 = vector.shape_cast %308 : vector<2xf32> to vector<2x1xf32>
      %cst_87 = arith.constant 1.000000e+00 : f32
      %310 = vector.broadcast %cst_87 : f32 to vector<2x1xf32>
      %311 = arith.subf %310, %309 : vector<2x1xf32>
      %cst_88 = arith.constant dense<0.000000e+00> : vector<1xf32>
      %312 = vector.multi_reduction <add>, %311, %cst_88 [0] : vector<2x1xf32> to vector<1xf32>
      %313 = vector.shape_cast %312 : vector<1xf32> to vector<1x1xf32>
      %c0_89 = arith.constant 0 : index
      %c0_90 = arith.constant 0 : index
      %314 = vector.load %arg7[%c0_89, %c0_90] : memref<1x1xf32, #tpu.memory_space<vmem>>, vector<1x1xf32>
      tpu.vector_store %arg7[%c0_89, %c0_90], %313 {strides = array<i32>} : memref<1x1xf32, #tpu.memory_space<vmem>>, vector<1x1xf32>,
    } else {
    }
    return
  }
  func.func @transform_0(%arg0: i32) -> (i32, i32) {
    %c0_i32 = arith.constant 0 : i32
    %c0_i32_0 = arith.constant 0 : i32
    return %c0_i32, %arg0 : i32, i32
  }
  func.func @transform_1(%arg0: i32) -> (i32, i32) {
    %c0_i32 = arith.constant 0 : i32
    %c0_i32_0 = arith.constant 0 : i32
    %c0_i32_1 = arith.constant 0 : i32
    return %c0_i32, %c0_i32_0 : i32, i32
  }
  func.func @transform_2(%arg0: i32) -> (i32, i32, i32, i32) {
    %c0_i32 = arith.constant 0 : i32
    %c0_i32_0 = arith.constant 0 : i32
    %c0_i32_1 = arith.constant 0 : i32
    %c0_i32_2 = arith.constant 0 : i32
    %c0_i32_3 = arith.constant 0 : i32
    return %c0_i32, %c0_i32_0, %c0_i32_1, %c0_i32_2 : i32, i32, i32, i32
  }
  func.func @transform_3(%arg0: i32) -> (i32, i32) {
    %c0_i32 = arith.constant 0 : i32
    %c0_i32_0 = arith.constant 0 : i32
    %c0_i32_1 = arith.constant 0 : i32
    return %c0_i32, %c0_i32_0 : i32, i32
  }
  func.func @transform_4(%arg0: i32) -> (i32, i32, i32) {
    %c0_i32 = arith.constant 0 : i32
    %c0_i32_0 = arith.constant 0 : i32
    %c0_i32_1 = arith.constant 0 : i32
    return %c0_i32, %arg0, %c0_i32_0 : i32, i32, i32
  }
  func.func @transform_5(%arg0: i32) -> (i32, i32, i32) {
    %c0_i32 = arith.constant 0 : i32
    %c0_i32_0 = arith.constant 0 : i32
    %c0_i32_1 = arith.constant 0 : i32
    return %c0_i32, %arg0, %c0_i32_0 : i32, i32, i32
  }
  func.func @transform_6(%arg0: i32) -> (i32, i32) {
    %c0_i32 = arith.constant 0 : i32
    %c0_i32_0 = arith.constant 0 : i32
    %c0_i32_1 = arith.constant 0 : i32
    return %c0_i32, %c0_i32_0 : i32, i32
  }
}

</mosaic_0001>

<bundles_post_ra>
// kernel: tpu_custom_call.1
= control target key start
LH: loop header
LB: loop body
LE: loop exit
PB: predicated region body
PF: predicated region fallthrough
CT: control target
= control target key end

     0   :  { %s9594_s0 = inlined_call_operand.hbm [shape: f32[7,256], index: 0, kind: input, shape index: {}]   ;;  %s9595_s1 = inlined_call_operand.vmem [shape: f32[256,7], index: 1, kind: input, shape index: {}]   ;;  %s9596_s2 = inlined_call_operand.hbm [shape: f32[3,7,7,512], index: 2, kind: input, shape index: {}]   ;;  %s9597_s3 = inlined_call_operand.hbm [shape: f32[1,512], index: 3, kind: input, shape index: {}]   ;;  %s9598_s4 = inlined_call_operand.hbm [shape: f32[6,256,256], index: 4, kind: input, shape index: {}]   ;;  %s9599_s5 = inlined_call_operand.hbm [shape: f32[6,256,256], index: 5, kind: input, shape index: {}]   ;;  %s9600_s6 = inlined_call_operand.hbm [shape: f32[1,1], index: 6, kind: output, shape index: {}]  }
   0x1   :  { %9642 = sst [smem:[#allocation65_spill]] %s9596_s2 }
   0x2   :  { %11 = vsyncpa [#allocation5], 0 }
   0x3   :  { %13 = vsyncpa [#allocation5 + $0x1], 0 }
   0x4   :  { %14 = vsyncpa [#allocation8], 0 }
   0x5   :  { %15 = vsyncpa [#allocation11], 0 }
   0x6   :  { %17 = vsyncpa [#allocation11 + $0x1], 0 }
   0x7   :  { %18 = vsyncpa [#allocation6], 0  ;;  %s7367_s21 = smov 0   ;;  %s7369_s22 = smov 0  }
   0x8   :  { %s7371_s23 = smov 0   ;;  %s7373_s24 = smov 0  }
   0x9 LB: > { %s7386_s25 = sadd.s32 4294967295, %s7314_s24   ;;  %s7389_s26 = sadd.s32 1, %s7314_s24   ;;  %s7314_s24 = sphi %s7373_s24, %s9732_s24   ;;  %s7310_s23 = sphi %s7371_s23, %s9731_s23   ;;  %s7306_s22 = sphi %s7369_s22, %s9730_s22   ;;  %s7302_s21 = sphi %s7367_s21, %s9729_s21  }
   0xa   : > { %s28_s27 = ssub.s32 %s7314_s24, %s7389_s26  ;;  %s31_s28 = sadd.s32 1, %s7310_s23 }
   0xb   : > { %p29_p0 = scmp.eq.s32.totalorder %s28_s27, 0  ;;  %p38_p1 = scmp.ne.s32.totalorder %s7310_s23, %s7306_s22 }
   0xc   : > { %p39_p2 = scmp.eq.s32.totalorder %s7314_s24, 0  ;;  %p44_p3 = scmp.ne.s32.totalorder %s7306_s22, %s7302_s21 }
   0xd   : > { %s7399_s29 = scalar_select %p29_p0, %s7310_s23, %s31_s28  }
   0xe   : > { %p7401_p4 = por %p39_p2, %p38_p1  ;;  %p45_p5 = scmp.eq.s32.totalorder %s7386_s25, 0 }
   0xf   : > { %p6653_p6 = scmp.ge.s32.totalorder %s7314_s24, 1  ;;  %p191_p7 = scmp.lt.s32.totalorder %s7314_s24, 3 }
  0x10   : > { %p7410_p8 = por %p45_p5, %p44_p3  ;;  %p6654_p9 = scmp.ne.s32.totalorder %s7386_s25, 0 }
  0x11   : > { %p7415_p10 = pnand %p6653_p6, %p191_p7  ;;  %s9646_s2 = sld [smem:[#allocation65_spill]] }
  0x12   : > { %s7316_s12 = smov [#allocation7]   ;;  %s220_s16 = sshll.u32 %s9597_s3, 4  ;;  %s221_s16 = int_to_ptr.hbm [resolvable:$true] %s220_s16 }
  0x13   : > { %p7054_p11 = pneg %p7415_p10  ;;  %s207_s13 = sshll.u32 %s7316_s12, 4  ;;  %s208_s13 = int_to_ptr.vmem [resolvable:$true] %s207_s13 }
  0x14   : > { %s7317_s17 = smov 512   ;;  %s7318_s18 = smov 32  }
  0x15   : > { %p7055_p12 = pnand %p7054_p11, %p45_p5  ;;  %s7319_s19 = smov [#allocation9]  }
  0x16   : > { %s222_s20 = sshll.u32 %s7319_s19, 4  ;;  %p6656_p13 = scmp.ge.s32.totalorder %s7314_s24, 2  ;;  %s223_s20 = int_to_ptr.vmem [resolvable:$true] %s222_s20 }
  0x17   : > { %s205_s11 = sshll.u32 %s9646_s2, 4  ;;  %s7431_s21 = sand.u32 (!%p6656_p13), 1, %s7310_s23   ;;  %s206_s11 = int_to_ptr.hbm [resolvable:$true] %s205_s11 }
  0x18   : > { %7057 = dma.hbm_to_vmem [thread:$0]  (!%p7055_p12), %s206_s11, 10752, %s208_s13, [#allocation8], %s7317_s17, %s7317_s17, %s7318_s18  }
  0x19   : > { %7060 = dma.hbm_to_vmem [thread:$0]  (!%p7055_p12), %s221_s16, 64, %s223_s20, [#allocation8]  }
  0x1a   : > { %229 = sbr.rel (%p6656_p13) target bundleno = 68 (0x44), region = 28  ;;  %s6658_s27 = sshll.u32 (!%p6656_p13), %s7314_s24, 3 }
  0x1b   : > { %s6657_s28 = sshll.u32 (!%p6656_p13), %s7431_s21, 3  ;;  %s241_s11 = scalar_lea.hbm (!%p6656_p13), %s9594_s0, %s6658_s27 }
  0x1c   : > { %s243_s12 = sshll.u32 (!%p6656_p13), %s241_s11, 4  ;;  %s237_s13 = scalar_lea.vmem (!%p6656_p13), [#allocation4], %s6657_s28  ;;  %s244_s12 = int_to_ptr.hbm [resolvable:$true] %s243_s12 }
  0x1d   : > { %s245_s14 = sshll.u32 (!%p6656_p13), %s237_s13, 4  ;;  %s234_s15 = scalar_lea.sflag (!%p6656_p13), [#allocation5], %s7431_s21  ;;  %s246_s14 = int_to_ptr.vmem [resolvable:$true] %s245_s14 }
  0x1e   : > { %s7212_s16 = sshra.s32 (!%p6656_p13), %s244_s12, 4  ;;  %s7218_s20 = scalar_lea.hbm (!%p6656_p13), %s9594_s0, 16  ;;  %s7213_s16 = int_to_ptr.hbm [resolvable:$true] %s7212_s16 }
  0x1f   : > { %s7214_s17 = scalar_lea.hbm %s7213_s16, 8  ;;  %p7219_p3 = scmp.lt.s32.totalorder %s7213_s16, %s9594_s0 }
  0x20   : > { %p7215_p0 = scmp.ne.s32.totalorder %s7213_s16, %s7214_s17  ;;  %p7220_p6 = scmp.lt.s32.totalorder %s7218_s20, %s7214_s17 }
  0x22   : > { %p7216_p1 = pnand %p7215_p0, %p7401_p4  ;;  %p7221_p7 = por %p7220_p6, %p7219_p3 }
  0x24   : > { %p7217_p2 = pneg %p7216_p1 }
  0x26   : > { %p7222_p11 = pnand %p7221_p7, %p7217_p2 }
  0x28   : > { %7225 = shalt.err (!%p7222_p11)
}
  0x29   : > { %7026 = dma.hbm_to_vmem [thread:$0]  (%p7401_p4), %s244_s12, 128, %s246_s14, %s234_s15  }
  0x2a   : > { %s252_s27 = sand.u32 1, %s7314_s24   ;;  %s7019_s28 = smul.u32 1536, %s7431_s21 }
  0x2b   : > { %s7016_s10 = sshll.u32 %s7314_s24, 8  ;;  %s7320_s18 = smov 8192  }
  0x2c   : > { %s262_s13 = scalar_lea.hbm %s9598_s4, %s7016_s10  ;;  %s256_s12 = scalar_lea.vmem [#allocation10], %s7019_s28 }
  0x2d   : > { %s7027_s16 = scalar_select %p7401_p4, [#allocation0], [#allocation18] }
  0x2e   : > { %s275_s17 = sshll.u32 %s262_s13, 4  ;;  %s277_s14 = sshll.u32 %s256_s12, 4  ;;  %s276_s17 = int_to_ptr.hbm [resolvable:$true] %s275_s17  ;;  %s278_s14 = int_to_ptr.vmem [resolvable:$true] %s277_s14 }
  0x2f   : > { %s267_s15 = sld [smem:[%s7027_s16]]   ;;  %s7321_s24 = smov 4096  }
  0x30   : > { %7028 = sst [smem:[#allocation15]] (%p7401_p4), %s7320_s18  ;;  %s7322_s21 = smov 16  }
  0x31   : > { %7029 = sst [smem:[#allocation15 + $0x1]] (%p7401_p4), %s7321_s24  ;;  %s7323_s19 = smov 256  }
  0x32   : > { %7030 = sst [smem:[#allocation15 + $0x2]] (%p7401_p4), %s7322_s21  ;;  %s253_s11 = scalar_lea.sflag [#allocation11], %s252_s27 }
  0x33   : > { %7031 = sst [smem:[#allocation15 + $0x3]] (%p7401_p4), %s7323_s19  ;;  %s7324_s2 = smov [#allocation14]  }
  0x34   : > { %7032 = sst [smem:[#allocation15 + $0x4]] (%p7401_p4), %s7323_s19 }
  0x35   : > { %s6662_s20 = sshll.u32 %s267_s15, 26  ;;  %7033 = sst [smem:[#allocation15 + $0x5]] (%p7401_p4), %s7322_s21 }
  0x36   : > { %s6663_s9 = sadd.s32 134217728, %s6662_s20 }
  0x37   : > { %7034 = dma.general (%p7401_p4), %s276_s17, 24576, %s278_s14, %s253_s11, %s7324_s2, [#allocation15], %s6663_s9, 0  }
  0x38   : > { %s310_s12 = scalar_lea.hbm %s9599_s5, %s7016_s10  ;;  %s304_s24 = scalar_lea.vmem [#allocation12], %s7019_s28 }
  0x39   : > { %s7035_s15 = scalar_select %p7401_p4, [#allocation0], [#allocation19] }
  0x3a   : > { %s323_s18 = sshll.u32 %s310_s12, 4  ;;  %s325_s21 = sshll.u32 %s304_s24, 4  ;;  %s324_s18 = int_to_ptr.hbm [resolvable:$true] %s323_s18  ;;  %s326_s21 = int_to_ptr.vmem [resolvable:$true] %s325_s21 }
  0x3b   : > { %s315_s27 = sld [smem:[%s7035_s15]]   ;;  %s7325_s17 = smov 8192  }
  0x3c   : > { %7036 = sst [smem:[#allocation17]] (%p7401_p4), %s7325_s17  ;;  %s7326_s14 = smov 4096  }
  0x3d   : > { %7037 = sst [smem:[#allocation17 + $0x1]] (%p7401_p4), %s7326_s14  ;;  %s7327_s19 = smov 16  }
  0x3e   : > { %7038 = sst [smem:[#allocation17 + $0x2]] (%p7401_p4), %s7327_s19  ;;  %s7328_s10 = smov 256  }
  0x3f   : > { %7039 = sst [smem:[#allocation17 + $0x3]] (%p7401_p4), %s7328_s10  ;;  %s7329_s9 = smov [#allocation16]  }
  0x40   : > { %7040 = sst [smem:[#allocation17 + $0x4]] (%p7401_p4), %s7328_s10 }
  0x41   : > { %s6667_s20 = sshll.u32 %s315_s27, 26  ;;  %7041 = sst [smem:[#allocation17 + $0x5]] (%p7401_p4), %s7327_s19 }
  0x42   : > { %s6668_s28 = sadd.s32 134217728, %s6667_s20 }
  0x43   : > { %7042 = dma.general (%p7401_p4), %s324_s18, 24576, %s326_s21, %s253_s11, %s7329_s9, [#allocation17], %s6668_s28, 0  }
  0x44 PF: > { %350 = sbr.rel (%p7415_p10) target bundleno = 2899 (0xb53), region = 44  ;;  %s352_s2 = sand.u32 (!%p7415_p10), 1, %s7306_s22  }
  0x45   : > { %s6670_s13 = sshll.u32 (!%p7415_p10), %s352_s2, 3  ;;  %s353_s16 = scalar_lea.sflag (!%p7415_p10), [#allocation5], %s352_s2 }
  0x46   : > { %s7493_s12 = scalar_lea.vmem (!%p7415_p10), [#allocation4], %s6670_s13 }
  0x49   : > { %7285 = dma.done.wait (%p7410_p8), %s353_s16, 128  }
  0x4a   : > { %7287 = vsyncadd (%p7410_p8), %s353_s16, 4294967168 }
  0x4b   : > { %7289 = dma.done.wait (%p45_p5), [#allocation8], 10816  }
  0x4c   : > { %7291 = vsyncadd (%p45_p5), [#allocation8], 4294956480  ;;  %s372_s30 = sand.u32 1, %s7386_s25   ;;  %s7021_s8 = smul.u32 1536, %s352_s2 }
  0x4d   : > { %s373_s11 = scalar_lea.sflag [#allocation11], %s372_s30 }
  0x4e   : > { %s7504_s15 = scalar_lea.vmem [#allocation10], %s7021_s8 }
  0x4f   : > { %7293 = dma.done.wait (%p7410_p8), %s373_s11, 49152  }
  0x50   : > { %7295 = vsyncadd (%p7410_p8), %s373_s11, 4294918144  ;;  %s7510_s18 = scalar_lea.vmem [#allocation12], %s7021_s8  ;;  %426 = sbr.rel (%p6654_p9) target bundleno = 99 (0x63), region = 68 }
  0x55   : > { %vm427_vm0 = vcmask 55296   ;;  %v7330_v0 = vmov 0.0   ;;  %vm440_vm1 = vcmask 0  }
  0x56   : > { %428 = vst.msk [vmem:[#allocation2] sm:$0x7f] %vm427_vm0, %v7330_v0 }
  0x57   : > { %429 = vst.msk [vmem:[#allocation2 + $0x8] sm:$0x7f] %vm427_vm0, %v7330_v0 }
  0x58   : > { %430 = vst.msk [vmem:[#allocation2 + $0x10] sm:$0x7f] %vm427_vm0, %v7330_v0 }
  0x59   : > { %431 = vst.msk [vmem:[#allocation2 + $0x18] sm:$0x7f] %vm427_vm0, %v7330_v0 }
  0x5a   : > { %432 = vst.msk [vmem:[#allocation2 + $0x20] sm:$0x7f] %vm427_vm0, %v7330_v0 }
  0x5b   : > { %433 = vst.msk [vmem:[#allocation2 + $0x28] sm:$0x7f] %vm427_vm0, %v7330_v0 }
  0x5c   : > { %434 = vst.msk [vmem:[#allocation3] sm:$0x7f] %vm427_vm0, %v7330_v0 }
  0x5d   : > { %435 = vst.msk [vmem:[#allocation3 + $0x8] sm:$0x7f] %vm427_vm0, %v7330_v0 }
  0x5e   : > { %436 = vst.msk [vmem:[#allocation3 + $0x10] sm:$0x7f] %vm427_vm0, %v7330_v0 }
  0x5f   : > { %437 = vst.msk [vmem:[#allocation3 + $0x18] sm:$0x7f] %vm427_vm0, %v7330_v0 }
  0x60   : > { %438 = vst.msk [vmem:[#allocation3 + $0x20] sm:$0x7f] %vm427_vm0, %v7330_v0 }
  0x61   : > { %439 = vst.msk [vmem:[#allocation3 + $0x28] sm:$0x7f] %vm427_vm0, %v7330_v0 }
  0x62   : > { %441 = vst.msk [vmem:[#allocation13] sm:$0x1] %vm440_vm1, %v7330_v0 }
  0x63 PF: > { %v457_v1 = vld [vmem:[%s9595_s1 + $0x78] sm:$0xff]  ;;  %v456_v3 = vld [vmem:[%s9595_s1 + $0x70] sm:$0xff]  ;;  %v455_v5 = vld [vmem:[%s9595_s1 + $0x68] sm:$0xff]  ;;  %vm1409_vm2 = vcmask 55296   ;;  %p6674_p4 = scmp.ne.s32.totalorder %s7386_s25, 1 }
  0x64   : > { %v473_v2 = vld [vmem:[%s9595_s1 + $0xf8] sm:$0xff]  ;;  %673 = vmatpush.msra.mxu0 %v457_v1  ;;  %v472_v4 = vld [vmem:[%s9595_s1 + $0xf0] sm:$0xff]  ;;  %v471_v6 = vld [vmem:[%s9595_s1 + $0xe8] sm:$0xff] }
  0x65   : > { %978 = vmatpush.msra.mxu1 %v473_v2  ;;  %v454_v7 = vld [vmem:[%s9595_s1 + $0x60] sm:$0xff]  ;;  %v453_v9 = vld [vmem:[%s9595_s1 + $0x58] sm:$0xff]  ;;  %v452_v11 = vld [vmem:[%s9595_s1 + $0x50] sm:$0xff] }
  0x66   : > { %674 = vmatpush.msra.mxu0 %v456_v3  ;;  %v470_v8 = vld [vmem:[%s9595_s1 + $0xe0] sm:$0xff]  ;;  %v469_v10 = vld [vmem:[%s9595_s1 + $0xd8] sm:$0xff]  ;;  %v468_v12 = vld [vmem:[%s9595_s1 + $0xd0] sm:$0xff] }
  0x67   : > { %979 = vmatpush.msra.mxu1 %v472_v4  ;;  %v451_v13 = vld [vmem:[%s9595_s1 + $0x48] sm:$0xff]  ;;  %v450_v15 = vld [vmem:[%s9595_s1 + $0x40] sm:$0xff]  ;;  %v449_v17 = vld [vmem:[%s9595_s1 + $0x38] sm:$0xff] }
  0x68   : > { %675 = vmatpush.msra.mxu0 %v455_v5  ;;  %v467_v14 = vld [vmem:[%s9595_s1 + $0xc8] sm:$0xff]  ;;  %v466_v16 = vld [vmem:[%s9595_s1 + $0xc0] sm:$0xff]  ;;  %v465_v18 = vld [vmem:[%s9595_s1 + $0xb8] sm:$0xff] }
  0x69   : > { %980 = vmatpush.msra.mxu1 %v471_v6  ;;  %v448_v19 = vld [vmem:[%s9595_s1 + $0x30] sm:$0xff]  ;;  %v447_v21 = vld [vmem:[%s9595_s1 + $0x28] sm:$0xff]  ;;  %v446_v23 = vld [vmem:[%s9595_s1 + $0x20] sm:$0xff] }
  0x6a   : > { %676 = vmatpush.msra.mxu0 %v454_v7  ;;  %v464_v20 = vld [vmem:[%s9595_s1 + $0xb0] sm:$0xff]  ;;  %v463_v22 = vld [vmem:[%s9595_s1 + $0xa8] sm:$0xff]  ;;  %v462_v24 = vld [vmem:[%s9595_s1 + $0xa0] sm:$0xff] }
  0x6b   : > { %981 = vmatpush.msra.mxu1 %v470_v8  ;;  %v445_v25 = vld [vmem:[%s9595_s1 + $0x18] sm:$0xff]  ;;  %v444_v27 = vld [vmem:[%s9595_s1 + $0x10] sm:$0xff]  ;;  %v443_v29 = vld [vmem:[%s9595_s1 + $0x8] sm:$0xff] }
  0x6c   : > { %677 = vmatpush.msra.mxu0 %v453_v9  ;;  %v461_v26 = vld [vmem:[%s9595_s1 + $0x98] sm:$0xff]  ;;  %v460_v28 = vld [vmem:[%s9595_s1 + $0x90] sm:$0xff]  ;;  %v459_v30 = vld [vmem:[%s9595_s1 + $0x88] sm:$0xff] }
  0x6d   : > { %982 = vmatpush.msra.mxu1 %v469_v10  ;;  %v442_v31 = vld [vmem:[%s9595_s1] sm:$0xff]  ;;  %v481_v33 = vld [vmem:[%s7504_s15] sm:$0xff]  ;;  %v484_v36 = vld [vmem:[%s7504_s15 + $0x18] sm:$0xff] }
  0x6e   : > { %678 = vmatpush.msra.mxu0 %v452_v11  ;;  %v458_v32 = vld [vmem:[%s9595_s1 + $0x80] sm:$0xff]  ;;  %v485_v37 = vld [vmem:[%s7504_s15 + $0x20] sm:$0xff]  ;;  %v488_v40 = vld [vmem:[%s7504_s15 + $0x38] sm:$0xff] }
  0x6f   : > { %983 = vmatpush.msra.mxu1 %v468_v12  ;;  %v482_v34 = vld [vmem:[%s7504_s15 + $0x8] sm:$0xff]  ;;  %v483_v35 = vld [vmem:[%s7504_s15 + $0x10] sm:$0xff]  ;;  %v489_v41 = vld [vmem:[%s7504_s15 + $0x40] sm:$0xff] }
  0x70   : > { %679 = vmatpush.msra.mxu0 %v451_v13  ;;  %v486_v38 = vld [vmem:[%s7504_s15 + $0x28] sm:$0xff]  ;;  %v487_v39 = vld [vmem:[%s7504_s15 + $0x30] sm:$0xff]  ;;  %v492_v44 = vld [vmem:[%s7504_s15 + $0x58] sm:$0xff] }
  0x71   : > { %984 = vmatpush.msra.mxu1 %v467_v14  ;;  %v490_v42 = vld [vmem:[%s7504_s15 + $0x48] sm:$0xff]  ;;  %v491_v43 = vld [vmem:[%s7504_s15 + $0x50] sm:$0xff]  ;;  %v493_v45 = vld [vmem:[%s7504_s15 + $0x60] sm:$0xff] }
  0x72   : > { %680 = vmatpush.msra.mxu0 %v450_v15  ;;  %v494_v46 = vld [vmem:[%s7504_s15 + $0x68] sm:$0xff]  ;;  %v495_v47 = vld [vmem:[%s7504_s15 + $0x70] sm:$0xff]  ;;  %v496_v48 = vld [vmem:[%s7504_s15 + $0x78] sm:$0xff] }
  0x73   : > { %985 = vmatpush.msra.mxu1 %v466_v16  ;;  %v497_v49 = vld [vmem:[%s7504_s15 + $0x80] sm:$0xff]  ;;  %v498_v50 = vld [vmem:[%s7504_s15 + $0x88] sm:$0xff]  ;;  %v499_v51 = vld [vmem:[%s7504_s15 + $0x90] sm:$0xff] }
  0x74   : > { %681 = vmatpush.msra.mxu0 %v449_v17  ;;  %v500_v52 = vld [vmem:[%s7504_s15 + $0x98] sm:$0xff]  ;;  %v501_v53 = vld [vmem:[%s7504_s15 + $0xa0] sm:$0xff]  ;;  %v502_v54 = vld [vmem:[%s7504_s15 + $0xa8] sm:$0xff] }
  0x75   : > { %986 = vmatpush.msra.mxu1 %v465_v18  ;;  %v503_v55 = vld [vmem:[%s7504_s15 + $0xb0] sm:$0xff]  ;;  %v504_v56 = vld [vmem:[%s7504_s15 + $0xb8] sm:$0xff]  ;;  %v505_v57 = vld [vmem:[%s7504_s15 + $0xc0] sm:$0xff] }
  0x76   : > { %682 = vmatpush.msra.mxu0 %v448_v19  ;;  %v506_v58 = vld [vmem:[%s7504_s15 + $0xc8] sm:$0xff]  ;;  %v507_v59 = vld [vmem:[%s7504_s15 + $0xd0] sm:$0xff]  ;;  %v508_v60 = vld [vmem:[%s7504_s15 + $0xd8] sm:$0xff] }
  0x77   : > { %987 = vmatpush.msra.mxu1 %v464_v20  ;;  %v509_v61 = vld [vmem:[%s7504_s15 + $0xe0] sm:$0xff]  ;;  %v510_v62 = vld [vmem:[%s7504_s15 + $0xe8] sm:$0xff]  ;;  %v511_v63 = vld [vmem:[%s7504_s15 + $0xf0] sm:$0xff] }
  0x78   : > { %683 = vmatpush.msra.mxu0 %v447_v21  ;;  %v512_v0 = vld [vmem:[%s7504_s15 + $0xf8] sm:$0xff]  ;;  %v513_v3 = vld [vmem:[%s7504_s15 + $0x100] sm:$0xff]  ;;  %v514_v4 = vld [vmem:[%s7504_s15 + $0x108] sm:$0xff] }
  0x79   : > { %988 = vmatpush.msra.mxu1 %v463_v22  ;;  %v515_v7 = vld [vmem:[%s7504_s15 + $0x110] sm:$0xff]  ;;  %v516_v8 = vld [vmem:[%s7504_s15 + $0x118] sm:$0xff]  ;;  %v517_v11 = vld [vmem:[%s7504_s15 + $0x120] sm:$0xff] }
  0x7a   : > { %684 = vmatpush.msra.mxu0 %v446_v23  ;;  %v518_v12 = vld [vmem:[%s7504_s15 + $0x128] sm:$0xff]  ;;  %v519_v15 = vld [vmem:[%s7504_s15 + $0x130] sm:$0xff]  ;;  %v520_v16 = vld [vmem:[%s7504_s15 + $0x138] sm:$0xff] }
  0x7b   : > { %989 = vmatpush.msra.mxu1 %v462_v24  ;;  %v521_v19 = vld [vmem:[%s7504_s15 + $0x140] sm:$0xff]  ;;  %v522_v20 = vld [vmem:[%s7504_s15 + $0x148] sm:$0xff]  ;;  %v523_v23 = vld [vmem:[%s7504_s15 + $0x150] sm:$0xff] }
  0x7c   : > { %685 = vmatpush.msra.mxu0 %v445_v25  ;;  %v524_v24 = vld [vmem:[%s7504_s15 + $0x158] sm:$0xff] }
  0x7d   : > { %990 = vmatpush.msra.mxu1 %v461_v26 }
  0x7e   : > { %686 = vmatpush.msra.mxu0 %v444_v27  ;;  %v525_v27 = vld [vmem:[%s7504_s15 + $0x160] sm:$0xff] }
  0x7f   : > { %991 = vmatpush.msra.mxu1 %v460_v28  ;;  %v526_v28 = vld [vmem:[%s7504_s15 + $0x168] sm:$0xff] }
  0x80   : > { %687 = vmatpush.msra.mxu0 %v443_v29 }
  0x81   : > { %992 = vmatpush.msra.mxu1 %v459_v30 }
  0x82   : > { %688 = vmatpush.msra.mxu0 %v442_v31  ;;  %v527_v31 = vld [vmem:[%s7504_s15 + $0x170] sm:$0xff] }
  0x83   : > { %993 = vmatpush.msra.mxu1 %v458_v32  ;;  %689 = vmatmul.f32.vlgmr.msra.gmra.mxu0 %v481_v33  ;;  %v528_v32 = vld [vmem:[%s7504_s15 + $0x178] sm:$0xff] }
  0x84   : > { %994 = vmatmul.f32.vlgmr.msra.gmra.mxu1 %v482_v34 }
  0x8b   : > { %692 = vmatmul.f32.gmra.mxu0 %v483_v35  ;;  %v529_v35 = vld [vmem:[%s7504_s15 + $0x180] sm:$0xff] }
  0x8c   : > { %997 = vmatmul.f32.gmra.mxu1 %v484_v36  ;;  %v530_v36 = vld [vmem:[%s7504_s15 + $0x188] sm:$0xff] }
  0x93   : > { %695 = vmatmul.f32.gmra.mxu0 %v485_v37 }
  0x94   : > { %1000 = vmatmul.f32.gmra.mxu1 %v486_v38 }
  0x9b   : > { %698 = vmatmul.f32.gmra.mxu0 %v487_v39 }
  0x9c   : > { %1003 = vmatmul.f32.gmra.mxu1 %v488_v40  ;;  %v531_v40 = vld [vmem:[%s7504_s15 + $0x190] sm:$0xff] }
  0xa3   : > { %701 = vmatmul.f32.gmra.mxu0 %v489_v41  ;;  %v532_v41 = vld [vmem:[%s7504_s15 + $0x198] sm:$0xff] }
  0xa4   : > { %1006 = vmatmul.f32.gmra.mxu1 %v490_v42 }
  0xab   : > { %704 = vmatmul.f32.gmra.mxu0 %v491_v43 }
  0xac   : > { %1009 = vmatmul.f32.gmra.mxu1 %v492_v44  ;;  %v533_v44 = vld [vmem:[%s7504_s15 + $0x1a0] sm:$0xff] }
  0xb3   : > { %707 = vmatmul.f32.gmra.mxu0 %v493_v45  ;;  %v534_v45 = vld [vmem:[%s7504_s15 + $0x1a8] sm:$0xff] }
  0xb4   : > { %1012 = vmatmul.f32.gmra.mxu1 %v494_v46 }
  0xbb   : > { %710 = vmatmul.f32.gmra.mxu0 %v495_v47 }
  0xbc   : > { %1015 = vmatmul.f32.gmra.mxu1 %v496_v48  ;;  %v535_v48 = vld [vmem:[%s7504_s15 + $0x1b0] sm:$0xff] }
  0xc3   : > { %713 = vmatmul.f32.gmra.mxu0 %v497_v49  ;;  %v536_v49 = vld [vmem:[%s7504_s15 + $0x1b8] sm:$0xff] }
  0xc4   : > { %1018 = vmatmul.f32.gmra.mxu1 %v498_v50 }
  0xcb   : > { %716 = vmatmul.f32.gmra.mxu0 %v499_v51 }
  0xcc   : > { %1021 = vmatmul.f32.gmra.mxu1 %v500_v52  ;;  %v537_v52 = vld [vmem:[%s7504_s15 + $0x1c0] sm:$0xff] }
  0xd3   : > { %719 = vmatmul.f32.gmra.mxu0 %v501_v53  ;;  %v538_v53 = vld [vmem:[%s7504_s15 + $0x1c8] sm:$0xff] }
  0xd4   : > { %1024 = vmatmul.f32.gmra.mxu1 %v502_v54 }
  0xdb   : > { %722 = vmatmul.f32.gmra.mxu0 %v503_v55 }
  0xdc   : > { %1027 = vmatmul.f32.gmra.mxu1 %v504_v56  ;;  %v539_v56 = vld [vmem:[%s7504_s15 + $0x1d0] sm:$0xff] }
  0xe3   : > { %725 = vmatmul.f32.gmra.mxu0 %v505_v57  ;;  %v540_v57 = vld [vmem:[%s7504_s15 + $0x1d8] sm:$0xff] }
  0xe4   : > { %1030 = vmatmul.f32.gmra.mxu1 %v506_v58 }
  0xeb   : > { %728 = vmatmul.f32.gmra.mxu0 %v507_v59 }
  0xec   : > { %1033 = vmatmul.f32.gmra.mxu1 %v508_v60  ;;  %v541_v60 = vld [vmem:[%s7504_s15 + $0x1e0] sm:$0xff] }
  0xf3   : > { %731 = vmatmul.f32.gmra.mxu0 %v509_v61  ;;  %v542_v61 = vld [vmem:[%s7504_s15 + $0x1e8] sm:$0xff] }
  0xf4   : > { %1036 = vmatmul.f32.gmra.mxu1 %v510_v62 }
  0xfb   : > { %734 = vmatmul.f32.gmra.mxu0 %v511_v63 }
  0xfc   : > { %1039 = vmatmul.f32.gmra.mxu1 %v512_v0  ;;  %v543_v0 = vld [vmem:[%s7504_s15 + $0x1f0] sm:$0xff] }
 0x100   : > { %v7642_v1 = vpop.f32.mrf.mxu0 }
 0x101   : > { %v7644_v2 = vpop.f32.mrf.mxu1 }
 0x103   : > { %737 = vmatmul.f32.gmra.mxu0 %v513_v3  ;;  %v544_v3 = vld [vmem:[%s7504_s15 + $0x1f8] sm:$0xff] }
 0x104   : > { %1042 = vmatmul.f32.gmra.mxu1 %v514_v4 }
 0x108   : > { %v7648_v5 = vpop.f32.mrf.mxu0 }
 0x109   : > { %v7650_v6 = vpop.f32.mrf.mxu1 }
 0x10b   : > { %740 = vmatmul.f32.gmra.mxu0 %v515_v7 }
 0x10c   : > { %1045 = vmatmul.f32.gmra.mxu1 %v516_v8 }
 0x110   : > { %v7654_v9 = vpop.f32.mrf.mxu0 }
 0x111   : > { %v7656_v10 = vpop.f32.mrf.mxu1 }
 0x113   : > { %743 = vmatmul.f32.gmra.mxu0 %v517_v11 }
 0x114   : > { %1048 = vmatmul.f32.gmra.mxu1 %v518_v12 }
 0x118   : > { %v7660_v13 = vpop.f32.mrf.mxu0 }
 0x119   : > { %v7662_v14 = vpop.f32.mrf.mxu1 }
 0x11b   : > { %746 = vmatmul.f32.gmra.mxu0 %v519_v15 }
 0x11c   : > { %1051 = vmatmul.f32.gmra.mxu1 %v520_v16  ;;  %v545_v16 = vld [vmem:[%s7504_s15 + $0x200] sm:$0xff] }
 0x120   : > { %v7666_v17 = vpop.f32.mrf.mxu0 }
 0x121   : > { %v7668_v18 = vpop.f32.mrf.mxu1 }
 0x123   : > { %749 = vmatmul.f32.gmra.mxu0 %v521_v19  ;;  %v546_v19 = vld [vmem:[%s7504_s15 + $0x208] sm:$0xff] }
 0x124   : > { %1054 = vmatmul.f32.gmra.mxu1 %v522_v20 }
 0x128   : > { %v7672_v21 = vpop.f32.mrf.mxu0 }
 0x129   : > { %v7674_v22 = vpop.f32.mrf.mxu1 }
 0x12b   : > { %752 = vmatmul.f32.gmra.mxu0 %v523_v23 }
 0x12c   : > { %1057 = vmatmul.f32.gmra.mxu1 %v524_v24 }
 0x130   : > { %v7678_v25 = vpop.f32.mrf.mxu0 }
 0x131   : > { %v7680_v26 = vpop.f32.mrf.mxu1 }
 0x133   : > { %755 = vmatmul.f32.gmra.mxu0 %v525_v27 }
 0x134   : > { %1060 = vmatmul.f32.gmra.mxu1 %v526_v28 }
 0x138   : > { %v7684_v29 = vpop.f32.mrf.mxu0 }
 0x139   : > { %v7686_v30 = vpop.f32.mrf.mxu1 }
 0x13b   : > { %758 = vmatmul.f32.gmra.mxu0 %v527_v31  ;;  %v547_v31 = vld [vmem:[%s7504_s15 + $0x210] sm:$0xff] }
 0x13c   : > { %1063 = vmatmul.f32.gmra.mxu1 %v528_v32  ;;  %v548_v32 = vld [vmem:[%s7504_s15 + $0x218] sm:$0xff] }
 0x140   : > { %v714_v33 = vpop.f32.mrf.mxu0 }
 0x141   : > { %v1019_v34 = vpop.f32.mrf.mxu1 }
 0x142   : > { %v7692_v37 = vadd.f32 %v1019_v34, %v714_v33  ;;  %v1017_v33 = vadd.f32 %v7686_v30, %v7684_v29  ;;  %v1014_v34 = vadd.f32 %v7680_v26, %v7678_v25  ;;  %v549_v29 = vld [vmem:[%s7504_s15 + $0x220] sm:$0xff]  ;;  %v550_v30 = vld [vmem:[%s7504_s15 + $0x228] sm:$0xff]  ;;  %v1005_v25 = vadd.f32 %v7662_v14, %v7660_v13  ;;  %v551_v14 = vld [vmem:[%s7504_s15 + $0x230] sm:$0xff] }
 0x143   : > { %761 = vmatmul.f32.gmra.mxu0 %v529_v35  ;;  %v1011_v35 = vadd.f32 %v7674_v22, %v7672_v21  ;;  %v1002_v21 = vadd.f32 %v7656_v10, %v7654_v9  ;;  %v999_v22 = vadd.f32 %v7650_v6, %v7648_v5  ;;  %v996_v13 = vadd.f32 %v7644_v2, %v7642_v1  ;;  %v552_v26 = vld [vmem:[%s7504_s15 + $0x238] sm:$0xff]  ;;  %v553_v6 = vld [vmem:[%s7504_s15 + $0x240] sm:$0xff]  ;;  %v554_v10 = vld [vmem:[%s7504_s15 + $0x248] sm:$0xff] }
 0x144   : > { %1066 = vmatmul.f32.gmra.mxu1 %v530_v36  ;;  %v555_v2 = vld [vmem:[%s7504_s15 + $0x250] sm:$0xff] }
 0x148   : > { %v717_v38 = vpop.f32.mrf.mxu0 }
 0x149   : > { %v1022_v39 = vpop.f32.mrf.mxu1 }
 0x14a   : > { %v1023_v24 = vadd.f32 %v1022_v39, %v717_v38 }
 0x14b   : > { %764 = vmatmul.f32.gmra.mxu0 %v531_v40  ;;  %v556_v40 = vld [vmem:[%s7504_s15 + $0x258] sm:$0xff] }
 0x14c   : > { %1069 = vmatmul.f32.gmra.mxu1 %v532_v41 }
 0x150   : > { %v720_v42 = vpop.f32.mrf.mxu0 }
 0x151   : > { %v1025_v43 = vpop.f32.mrf.mxu1 }
 0x152   : > { %v1026_v23 = vadd.f32 %v1025_v43, %v720_v42  ;;  %v557_v43 = vld [vmem:[%s7504_s15 + $0x260] sm:$0xff] }
 0x153   : > { %767 = vmatmul.f32.gmra.mxu0 %v533_v44  ;;  %v558_v44 = vld [vmem:[%s7504_s15 + $0x268] sm:$0xff] }
 0x154   : > { %1072 = vmatmul.f32.gmra.mxu1 %v534_v45 }
 0x158   : > { %v723_v46 = vpop.f32.mrf.mxu0 }
 0x159   : > { %v1028_v47 = vpop.f32.mrf.mxu1 }
 0x15a   : > { %v1029_v20 = vadd.f32 %v1028_v47, %v723_v46  ;;  %v559_v47 = vld [vmem:[%s7504_s15 + $0x270] sm:$0xff] }
 0x15b   : > { %770 = vmatmul.f32.gmra.mxu0 %v535_v48  ;;  %v560_v48 = vld [vmem:[%s7504_s15 + $0x278] sm:$0xff] }
 0x15c   : > { %1075 = vmatmul.f32.gmra.mxu1 %v536_v49 }
 0x160   : > { %v726_v50 = vpop.f32.mrf.mxu0 }
 0x161   : > { %v1031_v51 = vpop.f32.mrf.mxu1 }
 0x162   : > { %v1032_v15 = vadd.f32 %v1031_v51, %v726_v50  ;;  %v561_v51 = vld [vmem:[%s7504_s15 + $0x280] sm:$0xff] }
 0x163   : > { %773 = vmatmul.f32.gmra.mxu0 %v537_v52  ;;  %v562_v52 = vld [vmem:[%s7504_s15 + $0x288] sm:$0xff] }
 0x164   : > { %1078 = vmatmul.f32.gmra.mxu1 %v538_v53 }
 0x168   : > { %v729_v54 = vpop.f32.mrf.mxu0 }
 0x169   : > { %v1034_v55 = vpop.f32.mrf.mxu1 }
 0x16a   : > { %v1035_v8 = vadd.f32 %v1034_v55, %v729_v54 }
 0x16b   : > { %776 = vmatmul.f32.gmra.mxu0 %v539_v56  ;;  %v563_v56 = vld [vmem:[%s7504_s15 + $0x290] sm:$0xff] }
 0x16c   : > { %1081 = vmatmul.f32.gmra.mxu1 %v540_v57  ;;  %v564_v57 = vld [vmem:[%s7504_s15 + $0x298] sm:$0xff] }
 0x170   : > { %v732_v58 = vpop.f32.mrf.mxu0 }
 0x171   : > { %v1037_v59 = vpop.f32.mrf.mxu1 }
 0x172   : > { %v1038_v7 = vadd.f32 %v1037_v59, %v732_v58 }
 0x173   : > { %779 = vmatmul.f32.gmra.mxu0 %v541_v60  ;;  %v565_v60 = vld [vmem:[%s7504_s15 + $0x2a0] sm:$0xff] }
 0x174   : > { %1084 = vmatmul.f32.gmra.mxu1 %v542_v61  ;;  %v566_v61 = vld [vmem:[%s7504_s15 + $0x2a8] sm:$0xff] }
 0x178   : > { %v735_v62 = vpop.f32.mrf.mxu0 }
 0x179   : > { %v1040_v63 = vpop.f32.mrf.mxu1 }
 0x17a   : > { %v1041_v4 = vadd.f32 %v1040_v63, %v735_v62 }
 0x17b   : > { %782 = vmatmul.f32.gmra.mxu0 %v543_v0  ;;  %v567_v0 = vld [vmem:[%s7504_s15 + $0x2b0] sm:$0xff] }
 0x17c   : > { %1087 = vmatmul.f32.gmra.mxu1 %v544_v3  ;;  %1283 = vmatpush.msra.mxu2 %v1041_v4  ;;  %v568_v3 = vld [vmem:[%s7504_s15 + $0x2b8] sm:$0xff] }
 0x17e   : > { %1284 = vmatpush.msra.mxu2 %v1038_v7 }
 0x180   : > { %1285 = vmatpush.msra.mxu2 %v1035_v8  ;;  %v7708_v11 = vpop.f32.mrf.mxu0  ;;  %v569_v8 = vld [vmem:[%s7504_s15 + $0x2c0] sm:$0xff] }
 0x181   : > { %v7710_v12 = vpop.f32.mrf.mxu1 }
 0x182   : > { %1286 = vmatpush.msra.mxu2 %v1032_v15  ;;  %v570_v15 = vld [vmem:[%s7504_s15 + $0x2c8] sm:$0xff] }
 0x183   : > { %785 = vmatmul.f32.gmra.mxu0 %v545_v16 }
 0x184   : > { %1090 = vmatmul.f32.gmra.mxu1 %v546_v19  ;;  %1287 = vmatpush.msra.mxu2 %v1029_v20  ;;  %v571_v20 = vld [vmem:[%s7504_s15 + $0x2d0] sm:$0xff] }
 0x186   : > { %1288 = vmatpush.msra.mxu2 %v1026_v23  ;;  %v572_v23 = vld [vmem:[%s7504_s15 + $0x2d8] sm:$0xff] }
 0x188   : > { %1289 = vmatpush.msra.mxu2 %v1023_v24  ;;  %v7714_v27 = vpop.f32.mrf.mxu0 }
 0x189   : > { %v7716_v28 = vpop.f32.mrf.mxu1 }
 0x18a   : > { %1290 = vmatpush.msra.mxu2 %v7692_v37  ;;  %v1008_v37 = vadd.f32 %v7668_v18, %v7666_v17 }
 0x18b   : > { %788 = vmatmul.f32.gmra.mxu0 %v547_v31 }
 0x18c   : > { %1093 = vmatmul.f32.gmra.mxu1 %v548_v32  ;;  %1291 = vmatpush.msra.mxu2 %v1017_v33  ;;  %v573_v32 = vld [vmem:[%s7504_s15 + $0x2e0] sm:$0xff]  ;;  %v574_v33 = vld [vmem:[%s7504_s15 + $0x2e8] sm:$0xff] }
 0x18e   : > { %1292 = vmatpush.msra.mxu2 %v1014_v34 }
 0x190   : > { %1293 = vmatpush.msra.mxu2 %v1011_v35  ;;  %v7727_v36 = vpop.f32.mrf.mxu0 }
 0x191   : > { %v7729_v38 = vpop.f32.mrf.mxu1 }
 0x192   : > { %1294 = vmatpush.msra.mxu2 %v1008_v37  ;;  %v575_v37 = vld [vmem:[%s7504_s15 + $0x2f0] sm:$0xff] }
 0x193   : > { %791 = vmatmul.f32.gmra.mxu0 %v549_v29  ;;  %v576_v29 = vld [vmem:[%s7504_s15 + $0x2f8] sm:$0xff] }
 0x194   : > { %1096 = vmatmul.f32.gmra.mxu1 %v550_v30  ;;  %1295 = vmatpush.msra.mxu2 %v1005_v25 }
 0x196   : > { %1296 = vmatpush.msra.mxu2 %v1002_v21 }
 0x198   : > { %1297 = vmatpush.msra.mxu2 %v999_v22  ;;  %v7741_v17 = vpop.f32.mrf.mxu0 }
 0x199   : > { %v7743_v18 = vpop.f32.mrf.mxu1 }
 0x19a   : > { %1298 = vmatpush.msra.mxu2 %v996_v13 }
 0x19b   : > { %794 = vmatmul.f32.gmra.mxu0 %v551_v14 }
 0x19c   : > { %1099 = vmatmul.f32.gmra.mxu1 %v552_v26  ;;  %v577_v26 = vld [vmem:[%s7504_s15 + $0x300] sm:$0xff] }
 0x1a0   : > { %v7749_v9 = vpop.f32.mrf.mxu0 }
 0x1a1   : > { %v7751_v5 = vpop.f32.mrf.mxu1 }
 0x1a3   : > { %797 = vmatmul.f32.gmra.mxu0 %v553_v6  ;;  %v578_v6 = vld [vmem:[%s7504_s15 + $0x308] sm:$0xff] }
 0x1a4   : > { %1102 = vmatmul.f32.gmra.mxu1 %v554_v10 }
 0x1a8   : > { %v7755_v39 = vpop.f32.mrf.mxu0 }
 0x1a9   : > { %v7757_v1 = vpop.f32.mrf.mxu1 }
 0x1ab   : > { %800 = vmatmul.f32.gmra.mxu0 %v555_v2 }
 0x1ac   : > { %1105 = vmatmul.f32.gmra.mxu1 %v556_v40 }
 0x1b0   : > { %v7761_v41 = vpop.f32.mrf.mxu0 }
 0x1b1   : > { %v7763_v42 = vpop.f32.mrf.mxu1 }
 0x1b3   : > { %803 = vmatmul.f32.gmra.mxu0 %v557_v43 }
 0x1b4   : > { %1108 = vmatmul.f32.gmra.mxu1 %v558_v44 }
 0x1b8   : > { %v7767_v45 = vpop.f32.mrf.mxu0 }
 0x1b9   : > { %v7769_v46 = vpop.f32.mrf.mxu1 }
 0x1bb   : > { %806 = vmatmul.f32.gmra.mxu0 %v559_v47  ;;  %v579_v47 = vld [vmem:[%s7504_s15 + $0x310] sm:$0xff] }
 0x1bc   : > { %1111 = vmatmul.f32.gmra.mxu1 %v560_v48  ;;  %v580_v48 = vld [vmem:[%s7504_s15 + $0x318] sm:$0xff] }
 0x1c0   : > { %v762_v49 = vpop.f32.mrf.mxu0 }
 0x1c1   : > { %v1067_v50 = vpop.f32.mrf.mxu1 }
 0x1c2   : > { %v7775_v53 = vadd.f32 %v1067_v50, %v762_v49  ;;  %v1065_v49 = vadd.f32 %v7769_v46, %v7767_v45  ;;  %v1062_v50 = vadd.f32 %v7763_v42, %v7761_v41  ;;  %v581_v45 = vld [vmem:[%s7504_s15 + $0x320] sm:$0xff]  ;;  %v582_v46 = vld [vmem:[%s7504_s15 + $0x328] sm:$0xff]  ;;  %v1053_v41 = vadd.f32 %v7743_v18, %v7741_v17  ;;  %v583_v18 = vld [vmem:[%s7504_s15 + $0x330] sm:$0xff] }
 0x1c3   : > { %809 = vmatmul.f32.gmra.mxu0 %v561_v51  ;;  %v1059_v51 = vadd.f32 %v7757_v1, %v7755_v39  ;;  %v1050_v39 = vadd.f32 %v7729_v38, %v7727_v36  ;;  %v1047_v1 = vadd.f32 %v7716_v28, %v7714_v27  ;;  %v1044_v17 = vadd.f32 %v7710_v12, %v7708_v11  ;;  %v584_v42 = vld [vmem:[%s7504_s15 + $0x338] sm:$0xff]  ;;  %v585_v28 = vld [vmem:[%s7504_s15 + $0x340] sm:$0xff]  ;;  %v586_v38 = vld [vmem:[%s7504_s15 + $0x348] sm:$0xff] }
 0x1c4   : > { %1114 = vmatmul.f32.gmra.mxu1 %v562_v52  ;;  %v587_v12 = vld [vmem:[%s7504_s15 + $0x350] sm:$0xff] }
 0x1c8   : > { %v765_v54 = vpop.f32.mrf.mxu0 }
 0x1c9   : > { %v1070_v55 = vpop.f32.mrf.mxu1 }
 0x1ca   : > { %v1071_v40 = vadd.f32 %v1070_v55, %v765_v54 }
 0x1cb   : > { %812 = vmatmul.f32.gmra.mxu0 %v563_v56  ;;  %v588_v56 = vld [vmem:[%s7504_s15 + $0x358] sm:$0xff] }
 0x1cc   : > { %1117 = vmatmul.f32.gmra.mxu1 %v564_v57 }
 0x1d0   : > { %v768_v58 = vpop.f32.mrf.mxu0 }
 0x1d1   : > { %v1073_v59 = vpop.f32.mrf.mxu1 }
 0x1d2   : > { %v1074_v2 = vadd.f32 %v1073_v59, %v768_v58  ;;  %v589_v59 = vld [vmem:[%s7504_s15 + $0x360] sm:$0xff] }
 0x1d3   : > { %815 = vmatmul.f32.gmra.mxu0 %v565_v60  ;;  %v590_v60 = vld [vmem:[%s7504_s15 + $0x368] sm:$0xff] }
 0x1d4   : > { %1120 = vmatmul.f32.gmra.mxu1 %v566_v61 }
 0x1d8   : > { %v771_v62 = vpop.f32.mrf.mxu0 }
 0x1d9   : > { %v1076_v63 = vpop.f32.mrf.mxu1 }
 0x1da   : > { %v1077_v10 = vadd.f32 %v1076_v63, %v771_v62  ;;  %v591_v63 = vld [vmem:[%s7504_s15 + $0x370] sm:$0xff] }
 0x1db   : > { %818 = vmatmul.f32.gmra.mxu0 %v567_v0  ;;  %v592_v0 = vld [vmem:[%s7504_s15 + $0x378] sm:$0xff] }
 0x1dc   : > { %1123 = vmatmul.f32.gmra.mxu1 %v568_v3 }
 0x1e0   : > { %v774_v4 = vpop.f32.mrf.mxu0 }
 0x1e1   : > { %v1079_v7 = vpop.f32.mrf.mxu1 }
 0x1e2   : > { %v1080_v14 = vadd.f32 %v1079_v7, %v774_v4  ;;  %v593_v7 = vld [vmem:[%s7504_s15 + $0x380] sm:$0xff] }
 0x1e3   : > { %821 = vmatmul.f32.gmra.mxu0 %v569_v8  ;;  %v594_v8 = vld [vmem:[%s7504_s15 + $0x388] sm:$0xff] }
 0x1e4   : > { %1126 = vmatmul.f32.gmra.mxu1 %v570_v15 }
 0x1e8   : > { %v777_v16 = vpop.f32.mrf.mxu0 }
 0x1e9   : > { %v1082_v19 = vpop.f32.mrf.mxu1 }
 0x1ea   : > { %v1083_v21 = vadd.f32 %v1082_v19, %v777_v16 }
 0x1eb   : > { %824 = vmatmul.f32.gmra.mxu0 %v571_v20  ;;  %v595_v20 = vld [vmem:[%s7504_s15 + $0x390] sm:$0xff] }
 0x1ec   : > { %1129 = vmatmul.f32.gmra.mxu1 %v572_v23  ;;  %v596_v23 = vld [vmem:[%s7504_s15 + $0x398] sm:$0xff] }
 0x1f0   : > { %v780_v24 = vpop.f32.mrf.mxu0 }
 0x1f1   : > { %v1085_v31 = vpop.f32.mrf.mxu1 }
 0x1f2   : > { %v1086_v25 = vadd.f32 %v1085_v31, %v780_v24 }
 0x1f3   : > { %827 = vmatmul.f32.gmra.mxu0 %v573_v32  ;;  %v597_v32 = vld [vmem:[%s7504_s15 + $0x3a0] sm:$0xff] }
 0x1f4   : > { %1132 = vmatmul.f32.gmra.mxu1 %v574_v33  ;;  %v598_v33 = vld [vmem:[%s7504_s15 + $0x3a8] sm:$0xff] }
 0x1f8   : > { %v783_v34 = vpop.f32.mrf.mxu0 }
 0x1f9   : > { %v1088_v35 = vpop.f32.mrf.mxu1 }
 0x1fa   : > { %v1089_v30 = vadd.f32 %v1088_v35, %v783_v34 }
 0x1fb   : > { %830 = vmatmul.f32.gmra.mxu0 %v575_v37  ;;  %v599_v37 = vld [vmem:[%s7504_s15 + $0x3b0] sm:$0xff] }
 0x1fc   : > { %1135 = vmatmul.f32.gmra.mxu1 %v576_v29  ;;  %1303 = vmatpush.msra.mxu3 %v1089_v30  ;;  %v600_v29 = vld [vmem:[%s7504_s15 + $0x3b8] sm:$0xff] }
 0x1fe   : > { %1304 = vmatpush.msra.mxu3 %v1086_v25 }
 0x200   : > { %1305 = vmatpush.msra.mxu3 %v1083_v21  ;;  %v7791_v22 = vpop.f32.mrf.mxu0  ;;  %v601_v21 = vld [vmem:[%s7504_s15 + $0x3c0] sm:$0xff] }
 0x201   : > { %v7793_v13 = vpop.f32.mrf.mxu1 }
 0x202   : > { %1306 = vmatpush.msra.mxu3 %v1080_v14  ;;  %v602_v14 = vld [vmem:[%s7504_s15 + $0x3c8] sm:$0xff] }
 0x203   : > { %833 = vmatmul.f32.gmra.mxu0 %v577_v26 }
 0x204   : > { %1138 = vmatmul.f32.gmra.mxu1 %v578_v6  ;;  %1307 = vmatpush.msra.mxu3 %v1077_v10  ;;  %v603_v10 = vld [vmem:[%s7504_s15 + $0x3d0] sm:$0xff] }
 0x206   : > { %1308 = vmatpush.msra.mxu3 %v1074_v2  ;;  %v604_v2 = vld [vmem:[%s7504_s15 + $0x3d8] sm:$0xff] }
 0x208   : > { %1309 = vmatpush.msra.mxu3 %v1071_v40  ;;  %v7797_v43 = vpop.f32.mrf.mxu0 }
 0x209   : > { %v7799_v44 = vpop.f32.mrf.mxu1 }
 0x20a   : > { %1310 = vmatpush.msra.mxu3 %v7775_v53  ;;  %v1056_v53 = vadd.f32 %v7751_v5, %v7749_v9 }
 0x20b   : > { %836 = vmatmul.f32.gmra.mxu0 %v579_v47 }
 0x20c   : > { %1141 = vmatmul.f32.gmra.mxu1 %v580_v48  ;;  %1311 = vmatpush.msra.mxu3 %v1065_v49  ;;  %v605_v48 = vld [vmem:[%s7504_s15 + $0x3e0] sm:$0xff]  ;;  %v606_v49 = vld [vmem:[%s7504_s15 + $0x3e8] sm:$0xff] }
 0x20e   : > { %1312 = vmatpush.msra.mxu3 %v1062_v50 }
 0x210   : > { %1313 = vmatpush.msra.mxu3 %v1059_v51  ;;  %v7810_v52 = vpop.f32.mrf.mxu0 }
 0x211   : > { %v7812_v54 = vpop.f32.mrf.mxu1 }
 0x212   : > { %1314 = vmatpush.msra.mxu3 %v1056_v53  ;;  %v607_v53 = vld [vmem:[%s7504_s15 + $0x3f0] sm:$0xff] }
 0x213   : > { %839 = vmatmul.f32.gmra.mxu0 %v581_v45  ;;  %v608_v45 = vld [vmem:[%s7504_s15 + $0x3f8] sm:$0xff] }
 0x214   : > { %1144 = vmatmul.f32.gmra.mxu1 %v582_v46  ;;  %1315 = vmatpush.msra.mxu3 %v1053_v41 }
 0x216   : > { %1316 = vmatpush.msra.mxu3 %v1050_v39 }
 0x218   : > { %1317 = vmatpush.msra.mxu3 %v1047_v1  ;;  %v7824_v9 = vpop.f32.mrf.mxu0 }
 0x219   : > { %v7826_v5 = vpop.f32.mrf.mxu1 }
 0x21a   : > { %1318 = vmatpush.msra.mxu3 %v1044_v17 }
 0x21b   : > { %842 = vmatmul.f32.gmra.mxu0 %v583_v18 }
 0x21c   : > { %1147 = vmatmul.f32.gmra.mxu1 %v584_v42  ;;  %v609_v42 = vld [vmem:[%s7504_s15 + $0x400] sm:$0xff] }
 0x220   : > { %v7832_v36 = vpop.f32.mrf.mxu0 }
 0x221   : > { %v7834_v27 = vpop.f32.mrf.mxu1 }
 0x223   : > { %845 = vmatmul.f32.gmra.mxu0 %v585_v28  ;;  %v610_v28 = vld [vmem:[%s7504_s15 + $0x408] sm:$0xff] }
 0x224   : > { %1150 = vmatmul.f32.gmra.mxu1 %v586_v38 }
 0x228   : > { %v7838_v55 = vpop.f32.mrf.mxu0 }
 0x229   : > { %v7840_v11 = vpop.f32.mrf.mxu1 }
 0x22b   : > { %848 = vmatmul.f32.gmra.mxu0 %v587_v12 }
 0x22c   : > { %1153 = vmatmul.f32.gmra.mxu1 %v588_v56 }
 0x230   : > { %v7844_v57 = vpop.f32.mrf.mxu0 }
 0x231   : > { %v7846_v58 = vpop.f32.mrf.mxu1 }
 0x233   : > { %851 = vmatmul.f32.gmra.mxu0 %v589_v59 }
 0x234   : > { %1156 = vmatmul.f32.gmra.mxu1 %v590_v60 }
 0x238   : > { %v7850_v61 = vpop.f32.mrf.mxu0 }
 0x239   : > { %v7852_v62 = vpop.f32.mrf.mxu1 }
 0x23b   : > { %854 = vmatmul.f32.gmra.mxu0 %v591_v63  ;;  %v611_v63 = vld [vmem:[%s7504_s15 + $0x410] sm:$0xff] }
 0x23c   : > { %1159 = vmatmul.f32.gmra.mxu1 %v592_v0  ;;  %v612_v0 = vld [vmem:[%s7504_s15 + $0x418] sm:$0xff] }
 0x240   : > { %v810_v3 = vpop.f32.mrf.mxu0 }
 0x241   : > { %v1115_v4 = vpop.f32.mrf.mxu1 }
 0x242   : > { %v7858_v15 = vadd.f32 %v1115_v4, %v810_v3  ;;  %v1113_v3 = vadd.f32 %v7852_v62, %v7850_v61  ;;  %v1110_v4 = vadd.f32 %v7846_v58, %v7844_v57  ;;  %v613_v61 = vld [vmem:[%s7504_s15 + $0x420] sm:$0xff]  ;;  %v614_v62 = vld [vmem:[%s7504_s15 + $0x428] sm:$0xff]  ;;  %v1101_v57 = vadd.f32 %v7826_v5, %v7824_v9  ;;  %v615_v5 = vld [vmem:[%s7504_s15 + $0x430] sm:$0xff] }
 0x243   : > { %857 = vmatmul.f32.gmra.mxu0 %v593_v7  ;;  %v1107_v7 = vadd.f32 %v7840_v11, %v7838_v55  ;;  %v1098_v55 = vadd.f32 %v7812_v54, %v7810_v52  ;;  %v1095_v11 = vadd.f32 %v7799_v44, %v7797_v43  ;;  %v1092_v9 = vadd.f32 %v7793_v13, %v7791_v22  ;;  %v616_v58 = vld [vmem:[%s7504_s15 + $0x438] sm:$0xff]  ;;  %v617_v44 = vld [vmem:[%s7504_s15 + $0x440] sm:$0xff]  ;;  %v618_v54 = vld [vmem:[%s7504_s15 + $0x448] sm:$0xff] }
 0x244   : > { %1162 = vmatmul.f32.gmra.mxu1 %v594_v8  ;;  %v619_v13 = vld [vmem:[%s7504_s15 + $0x450] sm:$0xff] }
 0x248   : > { %v813_v16 = vpop.f32.mrf.mxu0 }
 0x249   : > { %v1118_v19 = vpop.f32.mrf.mxu1 }
 0x24a   : > { %v1119_v56 = vadd.f32 %v1118_v19, %v813_v16 }
 0x24b   : > { %860 = vmatmul.f32.gmra.mxu0 %v595_v20  ;;  %v620_v20 = vld [vmem:[%s7504_s15 + $0x458] sm:$0xff] }
 0x24c   : > { %1165 = vmatmul.f32.gmra.mxu1 %v596_v23 }
 0x250   : > { %v816_v24 = vpop.f32.mrf.mxu0 }
 0x251   : > { %v1121_v31 = vpop.f32.mrf.mxu1 }
 0x252   : > { %v1122_v12 = vadd.f32 %v1121_v31, %v816_v24  ;;  %v621_v31 = vld [vmem:[%s7504_s15 + $0x460] sm:$0xff] }
 0x253   : > { %863 = vmatmul.f32.gmra.mxu0 %v597_v32  ;;  %v622_v32 = vld [vmem:[%s7504_s15 + $0x468] sm:$0xff] }
 0x254   : > { %1168 = vmatmul.f32.gmra.mxu1 %v598_v33 }
 0x258   : > { %v819_v34 = vpop.f32.mrf.mxu0 }
 0x259   : > { %v1124_v35 = vpop.f32.mrf.mxu1 }
 0x25a   : > { %v1125_v38 = vadd.f32 %v1124_v35, %v819_v34  ;;  %v623_v35 = vld [vmem:[%s7504_s15 + $0x470] sm:$0xff] }
 0x25b   : > { %866 = vmatmul.f32.gmra.mxu0 %v599_v37  ;;  %v624_v37 = vld [vmem:[%s7504_s15 + $0x478] sm:$0xff] }
 0x25c   : > { %1171 = vmatmul.f32.gmra.mxu1 %v600_v29 }
 0x260   : > { %v822_v30 = vpop.f32.mrf.mxu0 }
 0x261   : > { %v1127_v25 = vpop.f32.mrf.mxu1 }
 0x262   : > { %v1128_v18 = vadd.f32 %v1127_v25, %v822_v30  ;;  %v625_v25 = vld [vmem:[%s7504_s15 + $0x480] sm:$0xff] }
 0x263   : > { %869 = vmatmul.f32.gmra.mxu0 %v601_v21  ;;  %v626_v21 = vld [vmem:[%s7504_s15 + $0x488] sm:$0xff] }
 0x264   : > { %1174 = vmatmul.f32.gmra.mxu1 %v602_v14 }
 0x268   : > { %v825_v26 = vpop.f32.mrf.mxu0 }
 0x269   : > { %v1130_v6 = vpop.f32.mrf.mxu1 }
 0x26a   : > { %v1131_v39 = vadd.f32 %v1130_v6, %v825_v26 }
 0x26b   : > { %872 = vmatmul.f32.gmra.mxu0 %v603_v10  ;;  %v627_v10 = vld [vmem:[%s7504_s15 + $0x490] sm:$0xff] }
 0x26c   : > { %1177 = vmatmul.f32.gmra.mxu1 %v604_v2  ;;  %v628_v2 = vld [vmem:[%s7504_s15 + $0x498] sm:$0xff] }
 0x270   : > { %v828_v40 = vpop.f32.mrf.mxu0 }
 0x271   : > { %v1133_v47 = vpop.f32.mrf.mxu1 }
 0x272   : > { %v1134_v41 = vadd.f32 %v1133_v47, %v828_v40 }
 0x273   : > { %875 = vmatmul.f32.gmra.mxu0 %v605_v48  ;;  %v629_v48 = vld [vmem:[%s7504_s15 + $0x4a0] sm:$0xff] }
 0x274   : > { %1180 = vmatmul.f32.gmra.mxu1 %v606_v49  ;;  %v630_v49 = vld [vmem:[%s7504_s15 + $0x4a8] sm:$0xff] }
 0x278   : > { %v831_v50 = vpop.f32.mrf.mxu0 }
 0x279   : > { %v1136_v51 = vpop.f32.mrf.mxu1 }
 0x27a   : > { %v1137_v46 = vadd.f32 %v1136_v51, %v831_v50 }
 0x27b   : > { %878 = vmatmul.f32.gmra.mxu0 %v607_v53  ;;  %v631_v53 = vld [vmem:[%s7504_s15 + $0x4b0] sm:$0xff] }
 0x27c   : > { %1183 = vmatmul.f32.gmra.mxu1 %v608_v45  ;;  %1323 = vmatpush.msrb.mxu2 %v1137_v46  ;;  %v632_v45 = vld [vmem:[%s7504_s15 + $0x4b8] sm:$0xff] }
 0x27e   : > { %1324 = vmatpush.msrb.mxu2 %v1134_v41 }
 0x280   : > { %1325 = vmatpush.msrb.mxu2 %v1131_v39  ;;  %v7874_v1 = vpop.f32.mrf.mxu0  ;;  %v633_v39 = vld [vmem:[%s7504_s15 + $0x4c0] sm:$0xff] }
 0x281   : > { %v7876_v17 = vpop.f32.mrf.mxu1 }
 0x282   : > { %1326 = vmatpush.msrb.mxu2 %v1128_v18  ;;  %v634_v18 = vld [vmem:[%s7504_s15 + $0x4c8] sm:$0xff] }
 0x283   : > { %881 = vmatmul.f32.gmra.mxu0 %v609_v42 }
 0x284   : > { %1186 = vmatmul.f32.gmra.mxu1 %v610_v28  ;;  %1327 = vmatpush.msrb.mxu2 %v1125_v38  ;;  %v635_v38 = vld [vmem:[%s7504_s15 + $0x4d0] sm:$0xff] }
 0x286   : > { %1328 = vmatpush.msrb.mxu2 %v1122_v12  ;;  %v636_v12 = vld [vmem:[%s7504_s15 + $0x4d8] sm:$0xff] }
 0x288   : > { %1329 = vmatpush.msrb.mxu2 %v1119_v56  ;;  %v7880_v59 = vpop.f32.mrf.mxu0 }
 0x289   : > { %v7882_v60 = vpop.f32.mrf.mxu1 }
 0x28a   : > { %1330 = vmatpush.msrb.mxu2 %v7858_v15  ;;  %v1104_v15 = vadd.f32 %v7834_v27, %v7832_v36 }
 0x28b   : > { %884 = vmatmul.f32.gmra.mxu0 %v611_v63 }
 0x28c   : > { %1189 = vmatmul.f32.gmra.mxu1 %v612_v0  ;;  %1331 = vmatpush.msrb.mxu2 %v1113_v3  ;;  %v637_v0 = vld [vmem:[%s7504_s15 + $0x4e0] sm:$0xff]  ;;  %v638_v3 = vld [vmem:[%s7504_s15 + $0x4e8] sm:$0xff] }
 0x28e   : > { %1332 = vmatpush.msrb.mxu2 %v1110_v4 }
 0x290   : > { %1333 = vmatpush.msrb.mxu2 %v1107_v7  ;;  %v7893_v8 = vpop.f32.mrf.mxu0 }
 0x291   : > { %v7895_v16 = vpop.f32.mrf.mxu1 }
 0x292   : > { %1334 = vmatpush.msrb.mxu2 %v1104_v15  ;;  %v639_v15 = vld [vmem:[%s7504_s15 + $0x4f0] sm:$0xff] }
 0x293   : > { %887 = vmatmul.f32.gmra.mxu0 %v613_v61  ;;  %v640_v61 = vld [vmem:[%s7504_s15 + $0x4f8] sm:$0xff] }
 0x294   : > { %1192 = vmatmul.f32.gmra.mxu1 %v614_v62  ;;  %1335 = vmatpush.msrb.mxu2 %v1101_v57 }
 0x296   : > { %1336 = vmatpush.msrb.mxu2 %v1098_v55 }
 0x298   : > { %1337 = vmatpush.msrb.mxu2 %v1095_v11  ;;  %v7907_v36 = vpop.f32.mrf.mxu0 }
 0x299   : > { %v7909_v27 = vpop.f32.mrf.mxu1 }
 0x29a   : > { %1338 = vmatpush.msrb.mxu2 %v1092_v9 }
 0x29b   : > { %890 = vmatmul.f32.gmra.mxu0 %v615_v5 }
 0x29c   : > { %1195 = vmatmul.f32.gmra.mxu1 %v616_v58  ;;  %v641_v58 = vld [vmem:[%s7504_s15 + $0x500] sm:$0xff] }
 0x2a0   : > { %v7915_v52 = vpop.f32.mrf.mxu0 }
 0x2a1   : > { %v7917_v43 = vpop.f32.mrf.mxu1 }
 0x2a3   : > { %893 = vmatmul.f32.gmra.mxu0 %v617_v44  ;;  %v642_v44 = vld [vmem:[%s7504_s15 + $0x508] sm:$0xff] }
 0x2a4   : > { %1198 = vmatmul.f32.gmra.mxu1 %v618_v54 }
 0x2a8   : > { %v7921_v19 = vpop.f32.mrf.mxu0 }
 0x2a9   : > { %v7923_v22 = vpop.f32.mrf.mxu1 }
 0x2ab   : > { %896 = vmatmul.f32.gmra.mxu0 %v619_v13 }
 0x2ac   : > { %1201 = vmatmul.f32.gmra.mxu1 %v620_v20 }
 0x2b0   : > { %v7927_v23 = vpop.f32.mrf.mxu0 }
 0x2b1   : > { %v7929_v24 = vpop.f32.mrf.mxu1 }
 0x2b3   : > { %899 = vmatmul.f32.gmra.mxu0 %v621_v31 }
 0x2b4   : > { %1204 = vmatmul.f32.gmra.mxu1 %v622_v32 }
 0x2b8   : > { %v7933_v33 = vpop.f32.mrf.mxu0 }
 0x2b9   : > { %v7935_v34 = vpop.f32.mrf.mxu1 }
 0x2bb   : > { %902 = vmatmul.f32.gmra.mxu0 %v623_v35  ;;  %v643_v35 = vld [vmem:[%s7504_s15 + $0x510] sm:$0xff] }
 0x2bc   : > { %1207 = vmatmul.f32.gmra.mxu1 %v624_v37  ;;  %v644_v37 = vld [vmem:[%s7504_s15 + $0x518] sm:$0xff] }
 0x2c0   : > { %v858_v29 = vpop.f32.mrf.mxu0 }
 0x2c1   : > { %v1163_v30 = vpop.f32.mrf.mxu1 }
 0x2c2   : > { %v7941_v14 = vadd.f32 %v1163_v30, %v858_v29  ;;  %v1161_v29 = vadd.f32 %v7935_v34, %v7933_v33  ;;  %v1158_v30 = vadd.f32 %v7929_v24, %v7927_v23  ;;  %v645_v33 = vld [vmem:[%s7504_s15 + $0x520] sm:$0xff]  ;;  %v646_v34 = vld [vmem:[%s7504_s15 + $0x528] sm:$0xff]  ;;  %v1149_v23 = vadd.f32 %v7909_v27, %v7907_v36  ;;  %v647_v27 = vld [vmem:[%s7504_s15 + $0x530] sm:$0xff] }
 0x2c3   : > { %905 = vmatmul.f32.gmra.mxu0 %v625_v25  ;;  %v1155_v25 = vadd.f32 %v7923_v22, %v7921_v19  ;;  %v1146_v19 = vadd.f32 %v7895_v16, %v7893_v8  ;;  %v1143_v22 = vadd.f32 %v7882_v60, %v7880_v59  ;;  %v1140_v36 = vadd.f32 %v7876_v17, %v7874_v1  ;;  %v648_v24 = vld [vmem:[%s7504_s15 + $0x538] sm:$0xff]  ;;  %v649_v60 = vld [vmem:[%s7504_s15 + $0x540] sm:$0xff]  ;;  %v650_v16 = vld [vmem:[%s7504_s15 + $0x548] sm:$0xff] }
 0x2c4   : > { %1210 = vmatmul.f32.gmra.mxu1 %v626_v21  ;;  %v651_v17 = vld [vmem:[%s7504_s15 + $0x550] sm:$0xff] }
 0x2c8   : > { %v861_v26 = vpop.f32.mrf.mxu0 }
 0x2c9   : > { %v1166_v6 = vpop.f32.mrf.mxu1 }
 0x2ca   : > { %v1167_v20 = vadd.f32 %v1166_v6, %v861_v26 }
 0x2cb   : > { %908 = vmatmul.f32.gmra.mxu0 %v627_v10  ;;  %v652_v10 = vld [vmem:[%s7504_s15 + $0x558] sm:$0xff] }
 0x2cc   : > { %1213 = vmatmul.f32.gmra.mxu1 %v628_v2 }
 0x2d0   : > { %v864_v40 = vpop.f32.mrf.mxu0 }
 0x2d1   : > { %v1169_v47 = vpop.f32.mrf.mxu1 }
 0x2d2   : > { %v1170_v13 = vadd.f32 %v1169_v47, %v864_v40  ;;  %v653_v47 = vld [vmem:[%s7504_s15 + $0x560] sm:$0xff] }
 0x2d3   : > { %911 = vmatmul.f32.gmra.mxu0 %v629_v48  ;;  %v654_v48 = vld [vmem:[%s7504_s15 + $0x568] sm:$0xff] }
 0x2d4   : > { %1216 = vmatmul.f32.gmra.mxu1 %v630_v49 }
 0x2d8   : > { %v867_v50 = vpop.f32.mrf.mxu0 }
 0x2d9   : > { %v1172_v51 = vpop.f32.mrf.mxu1 }
 0x2da   : > { %v1173_v54 = vadd.f32 %v1172_v51, %v867_v50  ;;  %v655_v51 = vld [vmem:[%s7504_s15 + $0x570] sm:$0xff] }
 0x2db   : > { %914 = vmatmul.f32.gmra.mxu0 %v631_v53  ;;  %v656_v53 = vld [vmem:[%s7504_s15 + $0x578] sm:$0xff] }
 0x2dc   : > { %1219 = vmatmul.f32.gmra.mxu1 %v632_v45 }
 0x2e0   : > { %v870_v46 = vpop.f32.mrf.mxu0 }
 0x2e1   : > { %v1175_v41 = vpop.f32.mrf.mxu1 }
 0x2e2   : > { %v1176_v5 = vadd.f32 %v1175_v41, %v870_v46  ;;  %v657_v41 = vld [vmem:[%s7504_s15 + $0x580] sm:$0xff] }
 0x2e3   : > { %917 = vmatmul.f32.gmra.mxu0 %v633_v39  ;;  %v658_v39 = vld [vmem:[%s7504_s15 + $0x588] sm:$0xff] }
 0x2e4   : > { %1222 = vmatmul.f32.gmra.mxu1 %v634_v18 }
 0x2e8   : > { %v873_v42 = vpop.f32.mrf.mxu0 }
 0x2e9   : > { %v1178_v28 = vpop.f32.mrf.mxu1 }
 0x2ea   : > { %v1179_v55 = vadd.f32 %v1178_v28, %v873_v42  ;;  %v659_v28 = vld [vmem:[%s7504_s15 + $0x590] sm:$0xff] }
 0x2eb   : > { %920 = vmatmul.f32.gmra.mxu0 %v635_v38  ;;  %v660_v38 = vld [vmem:[%s7504_s15 + $0x598] sm:$0xff] }
 0x2ec   : > { %1225 = vmatmul.f32.gmra.mxu1 %v636_v12 }
 0x2f0   : > { %v876_v56 = vpop.f32.mrf.mxu0 }
 0x2f1   : > { %v1181_v63 = vpop.f32.mrf.mxu1 }
 0x2f2   : > { %v1182_v57 = vadd.f32 %v1181_v63, %v876_v56  ;;  %v661_v63 = vld [vmem:[%s7504_s15 + $0x5a0] sm:$0xff] }
 0x2f3   : > { %923 = vmatmul.f32.gmra.mxu0 %v637_v0  ;;  %v662_v0 = vld [vmem:[%s7504_s15 + $0x5a8] sm:$0xff] }
 0x2f4   : > { %1228 = vmatmul.f32.gmra.mxu1 %v638_v3 }
 0x2f8   : > { %v879_v4 = vpop.f32.mrf.mxu0 }
 0x2f9   : > { %v1184_v7 = vpop.f32.mrf.mxu1 }
 0x2fa   : > { %v1185_v62 = vadd.f32 %v1184_v7, %v879_v4  ;;  %v663_v7 = vld [vmem:[%s7504_s15 + $0x5b0] sm:$0xff] }
 0x2fb   : > { %926 = vmatmul.f32.gmra.mxu0 %v639_v15  ;;  %v664_v15 = vld [vmem:[%s7504_s15 + $0x5b8] sm:$0xff] }
 0x2fc   : > { %1231 = vmatmul.f32.gmra.mxu1 %v640_v61  ;;  %1343 = vmatpush.msrb.mxu3 %v1185_v62  ;;  %v8035_v61 = vld [vmem:[%s7493_s12] sm:$0x7f] }
 0x2fd   : > { %1299 = vmatmul.f32.vlgmr.msra.gmra.mxu2 %v8035_v61  ;;  %1319 = vmatmul.f32.vlgmr.msra.gmra.mxu3 %v8035_v61 }
 0x2fe   : > { %1344 = vmatpush.msrb.mxu3 %v1182_v57 }
 0x300   : > { %1345 = vmatpush.msrb.mxu3 %v1179_v55  ;;  %v7957_v11 = vpop.f32.mrf.mxu0  ;;  %v665_v55 = vld [vmem:[%s7504_s15 + $0x5c0] sm:$0xff] }
 0x301   : > { %v7959_v9 = vpop.f32.mrf.mxu1 }
 0x302   : > { %1346 = vmatpush.msrb.mxu3 %v1176_v5  ;;  %v666_v5 = vld [vmem:[%s7504_s15 + $0x5c8] sm:$0xff] }
 0x303   : > { %929 = vmatmul.f32.gmra.mxu0 %v641_v58 }
 0x304   : > { %1234 = vmatmul.f32.gmra.mxu1 %v642_v44  ;;  %1347 = vmatpush.msrb.mxu3 %v1173_v54  ;;  %v667_v54 = vld [vmem:[%s7504_s15 + $0x5d0] sm:$0xff] }
 0x305   : > { %1339 = vmatmul.f32.vlgmr.msrb.gmra.mxu2 %v8035_v61 }
 0x306   : > { %1348 = vmatpush.msrb.mxu3 %v1170_v13  ;;  %v668_v13 = vld [vmem:[%s7504_s15 + $0x5d8] sm:$0xff] }
 0x308   : > { %1349 = vmatpush.msrb.mxu3 %v1167_v20  ;;  %v7963_v31 = vpop.f32.mrf.mxu0 }
 0x309   : > { %v7965_v32 = vpop.f32.mrf.mxu1 }
 0x30a   : > { %1350 = vmatpush.msrb.mxu3 %v7941_v14  ;;  %v1152_v14 = vadd.f32 %v7917_v43, %v7915_v52 }
 0x30b   : > { %932 = vmatmul.f32.gmra.mxu0 %v643_v35 }
 0x30c   : > { %1237 = vmatmul.f32.gmra.mxu1 %v644_v37  ;;  %1351 = vmatpush.msrb.mxu3 %v1161_v29  ;;  %v669_v37 = vld [vmem:[%s7504_s15 + $0x5e0] sm:$0xff]  ;;  %v670_v29 = vld [vmem:[%s7504_s15 + $0x5e8] sm:$0xff] }
 0x30e   : > { %1352 = vmatpush.msrb.mxu3 %v1158_v30 }
 0x310   : > { %1353 = vmatpush.msrb.mxu3 %v1155_v25  ;;  %v7976_v21 = vpop.f32.mrf.mxu0 }
 0x311   : > { %v7978_v26 = vpop.f32.mrf.mxu1 }
 0x312   : > { %1354 = vmatpush.msrb.mxu3 %v1152_v14  ;;  %v671_v14 = vld [vmem:[%s7504_s15 + $0x5f0] sm:$0xff] }
 0x313   : > { %935 = vmatmul.f32.gmra.mxu0 %v645_v33  ;;  %v672_v33 = vld [vmem:[%s7504_s15 + $0x5f8] sm:$0xff] }
 0x314   : > { %1240 = vmatmul.f32.gmra.mxu1 %v646_v34  ;;  %1355 = vmatpush.msrb.mxu3 %v1149_v23 }
 0x316   : > { %1356 = vmatpush.msrb.mxu3 %v1146_v19 }
 0x318   : > { %1357 = vmatpush.msrb.mxu3 %v1143_v22  ;;  %v7990_v52 = vpop.f32.mrf.mxu0 }
 0x319   : > { %v7992_v43 = vpop.f32.mrf.mxu1 }
 0x31a   : > { %1358 = vmatpush.msrb.mxu3 %v1140_v36 }
 0x31b   : > { %938 = vmatmul.f32.gmra.mxu0 %v647_v27  ;;  %1359 = vmatmul.f32.vlgmr.msrb.gmra.mxu3 %v8035_v61 }
 0x31c   : > { %1243 = vmatmul.f32.gmra.mxu1 %v648_v24 }
 0x320   : > { %v7998_v8 = vpop.f32.mrf.mxu0 }
 0x321   : > { %v8000_v59 = vpop.f32.mrf.mxu1 }
 0x323   : > { %941 = vmatmul.f32.gmra.mxu0 %v649_v60 }
 0x324   : > { %1246 = vmatmul.f32.gmra.mxu1 %v650_v16 }
 0x328   : > { %v8004_v6 = vpop.f32.mrf.mxu0 }
 0x329   : > { %v8006_v1 = vpop.f32.mrf.mxu1 }
 0x32b   : > { %944 = vmatmul.f32.gmra.mxu0 %v651_v17 }
 0x32c   : > { %1249 = vmatmul.f32.gmra.mxu1 %v652_v10 }
 0x330   : > { %v8010_v2 = vpop.f32.mrf.mxu0 }
 0x331   : > { %v8012_v40 = vpop.f32.mrf.mxu1 }
 0x333   : > { %947 = vmatmul.f32.gmra.mxu0 %v653_v47 }
 0x334   : > { %1252 = vmatmul.f32.gmra.mxu1 %v654_v48 }
 0x338   : > { %v8016_v49 = vpop.f32.mrf.mxu0 }
 0x339   : > { %v8018_v50 = vpop.f32.mrf.mxu1 }
 0x33b   : > { %950 = vmatmul.f32.gmra.mxu0 %v655_v51 }
 0x33c   : > { %1255 = vmatmul.f32.gmra.mxu1 %v656_v53  ;;  %v1209_v53 = vadd.f32 %v8018_v50, %v8016_v49  ;;  %v1197_v49 = vadd.f32 %v7992_v43, %v7990_v52  ;;  %v7115_v52 = vld [vmem:[%s9595_s1 + $0x78] sm:$0xff]  ;;  %v7120_v50 = vld [vmem:[%s9595_s1 + $0x50] sm:$0xff] }
 0x33d   : > { %v7119_v43 = vld [vmem:[%s9595_s1 + $0x58] sm:$0xff] }
 0x340   : > { %v8022_v45 = vpop.f32.mrf.mxu0 }
 0x341   : > { %v8024_v46 = vpop.f32.mrf.mxu1 }
 0x342   : > { %v1212_v10 = vadd.f32 %v8024_v46, %v8022_v45  ;;  %v1200_v45 = vadd.f32 %v8000_v59, %v7998_v8  ;;  %v1188_v8 = vadd.f32 %v7959_v9, %v7957_v11  ;;  %v7117_v11 = vld [vmem:[%s9595_s1 + $0x68] sm:$0xff] }
 0x343   : > { %953 = vmatmul.f32.gmra.mxu0 %v657_v41  ;;  %v1206_v41 = vadd.f32 %v8012_v40, %v8010_v2  ;;  %v1194_v2 = vadd.f32 %v7978_v26, %v7976_v21  ;;  %v7118_v26 = vld [vmem:[%s9595_s1 + $0x60] sm:$0xff] }
 0x344   : > { %1258 = vmatmul.f32.gmra.mxu1 %v658_v39  ;;  %v1203_v39 = vadd.f32 %v8006_v1, %v8004_v6  ;;  %v1191_v6 = vadd.f32 %v7965_v32, %v7963_v31  ;;  %v7116_v31 = vld [vmem:[%s9595_s1 + $0x70] sm:$0xff] }
 0x348   : > { %v909_v18 = vpop.f32.mrf.mxu0 }
 0x349   : > { %v1214_v42 = vpop.f32.mrf.mxu1 }
 0x34a   : > { %v1215_v17 = vadd.f32 %v1214_v42, %v909_v18 }
 0x34b   : > { %956 = vmatmul.f32.gmra.mxu0 %v659_v28  ;;  %v7121_v28 = vld [vmem:[%s9595_s1 + $0x48] sm:$0xff] }
 0x34c   : > { %1261 = vmatmul.f32.gmra.mxu1 %v660_v38 }
 0x350   : > { %v912_v12 = vpop.f32.mrf.mxu0 }
 0x351   : > { %v1217_v56 = vpop.f32.mrf.mxu1 }
 0x352   : > { %v1218_v16 = vadd.f32 %v1217_v56, %v912_v12 }
 0x353   : > { %959 = vmatmul.f32.gmra.mxu0 %v661_v63  ;;  %v7122_v63 = vld [vmem:[%s9595_s1 + $0x40] sm:$0xff] }
 0x354   : > { %1264 = vmatmul.f32.gmra.mxu1 %v662_v0  ;;  %v7123_v0 = vld [vmem:[%s9595_s1 + $0x38] sm:$0xff] }
 0x358   : > { %v915_v3 = vpop.f32.mrf.mxu0 }
 0x359   : > { %v1220_v4 = vpop.f32.mrf.mxu1 }
 0x35a   : > { %v1221_v60 = vadd.f32 %v1220_v4, %v915_v3  ;;  %v7124_v3 = vld [vmem:[%s9595_s1 + $0x30] sm:$0xff]  ;;  %v7125_v4 = vld [vmem:[%s9595_s1 + $0x28] sm:$0xff] }
 0x35b   : > { %962 = vmatmul.f32.gmra.mxu0 %v663_v7 }
 0x35c   : > { %1267 = vmatmul.f32.gmra.mxu1 %v664_v15 }
 0x360   : > { %v918_v62 = vpop.f32.mrf.mxu0 }
 0x361   : > { %v1223_v57 = vpop.f32.mrf.mxu1 }
 0x362   : > { %v1224_v22 = vadd.f32 %v1223_v57, %v918_v62  ;;  %v7126_v57 = vld [vmem:[%s9595_s1 + $0x20] sm:$0xff] }
 0x363   : > { %965 = vmatmul.f32.gmra.mxu0 %v665_v55  ;;  %v7127_v55 = vld [vmem:[%s9595_s1 + $0x18] sm:$0xff] }
 0x364   : > { %1270 = vmatmul.f32.gmra.mxu1 %v666_v5  ;;  %v7128_v5 = vld [vmem:[%s9595_s1 + $0x10] sm:$0xff] }
 0x368   : > { %v921_v58 = vpop.f32.mrf.mxu0 }
 0x369   : > { %v1226_v44 = vpop.f32.mrf.mxu1 }
 0x36a   : > { %v1227_v19 = vadd.f32 %v1226_v44, %v921_v58  ;;  %v7129_v58 = vld [vmem:[%s9595_s1 + $0x8] sm:$0xff] }
 0x36b   : > { %968 = vmatmul.f32.gmra.mxu0 %v667_v54 }
 0x36c   : > { %1273 = vmatmul.f32.gmra.mxu1 %v668_v13 }
 0x370   : > { %v924_v20 = vpop.f32.mrf.mxu0 }
 0x371   : > { %v1229_v35 = vpop.f32.mrf.mxu1 }
 0x372   : > { %v1230_v23 = vadd.f32 %v1229_v35, %v924_v20  ;;  %v7130_v20 = vld [vmem:[%s9595_s1] sm:$0xff] }
 0x373   : > { %971 = vmatmul.f32.gmra.mxu0 %v669_v37 }
 0x374   : > { %1276 = vmatmul.f32.gmra.mxu1 %v670_v29 }
 0x378   : > { %v927_v30 = vpop.f32.mrf.mxu0 }
 0x379   : > { %v1232_v25 = vpop.f32.mrf.mxu1 }
 0x37a   : > { %v1233_v34 = vadd.f32 %v1232_v25, %v927_v30 }
 0x37b   : > { %974 = vmatmul.f32.gmra.mxu0 %v671_v14 }
 0x37c   : > { %1279 = vmatmul.f32.gmra.mxu1 %v672_v33  ;;  %1363 = vmatpush.msra.mxu2 %v1233_v34 }
 0x37e   : > { %1364 = vmatpush.msra.mxu2 %v1230_v23 }
 0x380   : > { %1365 = vmatpush.msra.mxu2 %v1227_v19  ;;  %v930_v36 = vpop.f32.mrf.mxu0 }
 0x381   : > { %v1235_v27 = vpop.f32.mrf.mxu1 }
 0x382   : > { %v8049_v24 = vadd.f32 %v1235_v27, %v930_v36  ;;  %1366 = vmatpush.msra.mxu2 %v1224_v22 }
 0x384   : > { %1367 = vmatpush.msra.mxu2 %v1221_v60 }
 0x386   : > { %1368 = vmatpush.msra.mxu2 %v1218_v16 }
 0x388   : > { %1369 = vmatpush.msra.mxu2 %v1215_v17  ;;  %v933_v47 = vpop.f32.mrf.mxu0 }
 0x389   : > { %v1238_v48 = vpop.f32.mrf.mxu1 }
 0x38a   : > { %v8053_v51 = vadd.f32 %v1238_v48, %v933_v47  ;;  %1370 = vmatpush.msra.mxu2 %v1212_v10 }
 0x38c   : > { %1371 = vmatpush.msra.mxu2 %v1209_v53 }
 0x38e   : > { %1372 = vmatpush.msra.mxu2 %v1206_v41 }
 0x390   : > { %1373 = vmatpush.msra.mxu2 %v1203_v39  ;;  %v936_v46 = vpop.f32.mrf.mxu0 }
 0x391   : > { %v1241_v18 = vpop.f32.mrf.mxu1 }
 0x392   : > { %v8063_v42 = vadd.f32 %v1241_v18, %v936_v46  ;;  %1374 = vmatpush.msra.mxu2 %v1200_v45  ;;  %v1422_v18 = vld [vmem:[%s7510_s18] sm:$0xff] }
 0x394   : > { %1375 = vmatpush.msra.mxu2 %v1197_v49  ;;  %v7131_v49 = vld [vmem:[%s9595_s1 + $0xf8] sm:$0xff] }
 0x396   : > { %1376 = vmatpush.msra.mxu2 %v1194_v2  ;;  %v7132_v2 = vld [vmem:[%s9595_s1 + $0xf0] sm:$0xff] }
 0x398   : > { %1377 = vmatpush.msra.mxu2 %v1191_v6  ;;  %v939_v59 = vpop.f32.mrf.mxu0  ;;  %v7135_v6 = vld [vmem:[%s9595_s1 + $0xd8] sm:$0xff] }
 0x399   : > { %v1244_v1 = vpop.f32.mrf.mxu1 }
 0x39a   : > { %v8073_v40 = vadd.f32 %v1244_v1, %v939_v59  ;;  %1378 = vmatpush.msra.mxu2 %v1188_v8  ;;  %v7136_v8 = vld [vmem:[%s9595_s1 + $0xd0] sm:$0xff]  ;;  %v7137_v59 = vld [vmem:[%s9595_s1 + $0xc8] sm:$0xff] }
 0x39b   : > { %1379 = vmatmul.f32.vlgmr.msra.gmra.mxu2 %v8035_v61  ;;  %v1426_v1 = vld [vmem:[%s7510_s18 + $0x20] sm:$0xff] }
 0x39c   : > { %1614 = vmatpush.msrb.mxu2 %v7115_v52  ;;  %v7139_v52 = vld [vmem:[%s9595_s1 + $0xb8] sm:$0xff] }
 0x39e   : > { %1615 = vmatpush.msrb.mxu2 %v7116_v31  ;;  %v7140_v31 = vld [vmem:[%s9595_s1 + $0xb0] sm:$0xff] }
 0x3a0   : > { %1616 = vmatpush.msrb.mxu2 %v7117_v11  ;;  %v942_v9 = vpop.f32.mrf.mxu0  ;;  %v7141_v11 = vld [vmem:[%s9595_s1 + $0xa8] sm:$0xff] }
 0x3a1   : > { %v1247_v32 = vpop.f32.mrf.mxu1 }
 0x3a2   : > { %v8085_v21 = vadd.f32 %v1247_v32, %v942_v9  ;;  %1617 = vmatpush.msrb.mxu2 %v7118_v26  ;;  %v1428_v9 = vld [vmem:[%s7510_s18 + $0x30] sm:$0xff]  ;;  %v7144_v26 = vld [vmem:[%s9595_s1 + $0x90] sm:$0xff] }
 0x3a3   : > { %v7142_v32 = vld [vmem:[%s9595_s1 + $0xa0] sm:$0xff] }
 0x3a4   : > { %1618 = vmatpush.msrb.mxu2 %v7119_v43  ;;  %v7145_v43 = vld [vmem:[%s9595_s1 + $0x88] sm:$0xff] }
 0x3a6   : > { %1619 = vmatpush.msrb.mxu2 %v7120_v50  ;;  %v1423_v50 = vld [vmem:[%s7510_s18 + $0x8] sm:$0xff] }
 0x3a8   : > { %1620 = vmatpush.msrb.mxu2 %v7121_v28  ;;  %v945_v38 = vpop.f32.mrf.mxu0  ;;  %v1430_v28 = vld [vmem:[%s7510_s18 + $0x40] sm:$0xff] }
 0x3a9   : > { %v1250_v12 = vpop.f32.mrf.mxu1 }
 0x3aa   : > { %v1251_v56 = vadd.f32 %v1250_v12, %v945_v38  ;;  %1621 = vmatpush.msrb.mxu2 %v7122_v63  ;;  %v7146_v38 = vld [vmem:[%s9595_s1 + $0x80] sm:$0xff]  ;;  %v1425_v12 = vld [vmem:[%s7510_s18 + $0x18] sm:$0xff] }
 0x3ab   : > { %v1427_v63 = vld [vmem:[%s7510_s18 + $0x28] sm:$0xff] }
 0x3ac   : > { %1622 = vmatpush.msrb.mxu2 %v7123_v0  ;;  %v1434_v0 = vld [vmem:[%s7510_s18 + $0x60] sm:$0xff] }
 0x3ae   : > { %1623 = vmatpush.msrb.mxu2 %v7124_v3  ;;  %v1429_v3 = vld [vmem:[%s7510_s18 + $0x38] sm:$0xff] }
 0x3b0   : > { %1624 = vmatpush.msrb.mxu2 %v7125_v4  ;;  %v948_v7 = vpop.f32.mrf.mxu0  ;;  %v1436_v4 = vld [vmem:[%s7510_s18 + $0x70] sm:$0xff] }
 0x3b1   : > { %v1253_v15 = vpop.f32.mrf.mxu1 }
 0x3b2   : > { %v1254_v62 = vadd.f32 %v1253_v15, %v948_v7  ;;  %1625 = vmatpush.msrb.mxu2 %v7126_v57  ;;  %v1431_v7 = vld [vmem:[%s7510_s18 + $0x48] sm:$0xff]  ;;  %v1438_v15 = vld [vmem:[%s7510_s18 + $0x80] sm:$0xff]  ;;  %v1300_v57 = vpop.f32.mrf.mxu2 }
 0x3b4   : > { %1626 = vmatpush.msrb.mxu2 %v7127_v55  ;;  %v476_v55 = vld [vmem:[#allocation2 + $0x8] sm:$0x7f] }
 0x3b6   : > { %1627 = vmatpush.msrb.mxu2 %v7128_v5  ;;  %v1320_v5 = vpop.f32.mrf.mxu3 }
 0x3b8   : > { %1628 = vmatpush.msrb.mxu2 %v7129_v58  ;;  %v951_v44 = vpop.f32.mrf.mxu0 }
 0x3b9   : > { %v1256_v54 = vpop.f32.mrf.mxu1 }
 0x3ba   : > { %v1257_v13 = vadd.f32 %v1256_v54, %v951_v44  ;;  %1629 = vmatpush.msrb.mxu2 %v7130_v20  ;;  %v1404_v44 = vadd.f32 %v1320_v5, %v476_v55  ;;  %v1433_v54 = vld [vmem:[%s7510_s18 + $0x58] sm:$0xff]  ;;  %v1435_v20 = vld [vmem:[%s7510_s18 + $0x68] sm:$0xff]  ;;  %v1470_v55 = vld [vmem:[%s7510_s18 + $0x180] sm:$0xff] }
 0x3bb   : > { %1630 = vmatmul.f32.vlgmr.msrb.gmra.mxu2 %v1422_v18  ;;  %v1449_v18 = vld [vmem:[%s7510_s18 + $0xd8] sm:$0xff] }
 0x3bc   : > { %1411 = vst.msk [vmem:[#allocation2 + $0x8] sm:$0x7f] %vm1409_vm2, %v1404_v44 }
 0x3c0   : > { %v954_v35 = vpop.f32.mrf.mxu0 }
 0x3c1   : > { %v1259_v37 = vpop.f32.mrf.mxu1 }
 0x3c2   : > { %v1260_v29 = vadd.f32 %v1259_v37, %v954_v35  ;;  %v1442_v35 = vld [vmem:[%s7510_s18 + $0xa0] sm:$0xff]  ;;  %v1437_v37 = vld [vmem:[%s7510_s18 + $0x78] sm:$0xff] }
 0x3c8   : > { %v957_v30 = vpop.f32.mrf.mxu0 }
 0x3c9   : > { %v1262_v25 = vpop.f32.mrf.mxu1 }
 0x3ca   : > { %v1263_v46 = vadd.f32 %v1262_v25, %v957_v30  ;;  %v1439_v30 = vld [vmem:[%s7510_s18 + $0x88] sm:$0xff]  ;;  %v1446_v25 = vld [vmem:[%s7510_s18 + $0xc0] sm:$0xff] }
 0x3d0   : > { %v960_v14 = vpop.f32.mrf.mxu0 }
 0x3d1   : > { %v1265_v33 = vpop.f32.mrf.mxu1 }
 0x3d2   : > { %v1266_v45 = vadd.f32 %v1265_v33, %v960_v14  ;;  %v477_v14 = vld [vmem:[#allocation2 + $0x10] sm:$0x7f]  ;;  %v1340_v33 = vpop.f32.mrf.mxu2 }
 0x3d8   : > { %v963_v34 = vpop.f32.mrf.mxu0 }
 0x3d9   : > { %v1268_v23 = vpop.f32.mrf.mxu1 }
 0x3da   : > { %v1269_v39 = vadd.f32 %v1268_v23, %v963_v34  ;;  %v478_v34 = vld [vmem:[#allocation2 + $0x18] sm:$0x7f]  ;;  %v1360_v23 = vpop.f32.mrf.mxu3 }
 0x3e0   : > { %v966_v19 = vpop.f32.mrf.mxu0 }
 0x3e1   : > { %v1271_v22 = vpop.f32.mrf.mxu1 }
 0x3e2   : > { %v1272_v41 = vadd.f32 %v1271_v22, %v966_v19  ;;  %v1405_v19 = vadd.f32 %v1340_v33, %v477_v14  ;;  %v1406_v22 = vadd.f32 %v1360_v23, %v478_v34  ;;  %v1469_v34 = vld [vmem:[%s7510_s18 + $0x178] sm:$0xff]  ;;  %v1476_v23 = vld [vmem:[%s7510_s18 + $0x1b0] sm:$0xff] }
 0x3e4   : > { %1412 = vst.msk [vmem:[#allocation2 + $0x10] sm:$0x7f] %vm1409_vm2, %v1405_v19 }
 0x3e5   : > { %1413 = vst.msk [vmem:[#allocation2 + $0x18] sm:$0x7f] %vm1409_vm2, %v1406_v22 }
 0x3e8   : > { %v969_v36 = vpop.f32.mrf.mxu0 }
 0x3e9   : > { %v1274_v27 = vpop.f32.mrf.mxu1 }
 0x3ea   : > { %v1275_v53 = vadd.f32 %v1274_v27, %v969_v36  ;;  %v1441_v36 = vld [vmem:[%s7510_s18 + $0x98] sm:$0xff]  ;;  %v1448_v27 = vld [vmem:[%s7510_s18 + $0xd0] sm:$0xff] }
 0x3f0   : > { %v972_v60 = vpop.f32.mrf.mxu0 }
 0x3f1   : > { %v1277_v16 = vpop.f32.mrf.mxu1 }
 0x3f2   : > { %v1278_v48 = vadd.f32 %v1277_v16, %v972_v60  ;;  %v1443_v60 = vld [vmem:[%s7510_s18 + $0xa8] sm:$0xff]  ;;  %v1450_v16 = vld [vmem:[%s7510_s18 + $0xe0] sm:$0xff] }
 0x3f8   : > { %v975_v17 = vpop.f32.mrf.mxu0 }
 0x3f9   : > { %v1280_v10 = vpop.f32.mrf.mxu1 }
 0x3fa   : > { %v1281_v47 = vadd.f32 %v1280_v10, %v975_v17  ;;  %v1445_v17 = vld [vmem:[%s7510_s18 + $0xb8] sm:$0xff]  ;;  %v1452_v10 = vld [vmem:[%s7510_s18 + $0xf0] sm:$0xff] }
 0x3fc   : > { %1383 = vmatpush.msra.mxu3 %v1281_v47  ;;  %v479_v47 = vld [vmem:[#allocation2 + $0x20] sm:$0x7f] }
 0x3fe   : > { %1384 = vmatpush.msra.mxu3 %v1278_v48 }
 0x400   : > { %1385 = vmatpush.msra.mxu3 %v1275_v53 }
 0x402   : > { %1386 = vmatpush.msra.mxu3 %v1272_v41  ;;  %v1447_v41 = vld [vmem:[%s7510_s18 + $0xc8] sm:$0xff] }
 0x404   : > { %1387 = vmatpush.msra.mxu3 %v1269_v39  ;;  %v1454_v39 = vld [vmem:[%s7510_s18 + $0x100] sm:$0xff] }
 0x406   : > { %1388 = vmatpush.msra.mxu3 %v1266_v45  ;;  %v480_v45 = vld [vmem:[#allocation2 + $0x28] sm:$0x7f] }
 0x408   : > { %1389 = vmatpush.msra.mxu3 %v1263_v46 }
 0x40a   : > { %1390 = vmatpush.msra.mxu3 %v1260_v29  ;;  %v1444_v29 = vld [vmem:[%s7510_s18 + $0xb0] sm:$0xff] }
 0x40c   : > { %1391 = vmatpush.msra.mxu3 %v1257_v13  ;;  %v1440_v13 = vld [vmem:[%s7510_s18 + $0x90] sm:$0xff] }
 0x40e   : > { %1392 = vmatpush.msra.mxu3 %v1254_v62  ;;  %v475_v62 = vld [vmem:[#allocation2] sm:$0x7f] }
 0x40f   : > { %v1403_v58 = vadd.f32 %v1300_v57, %v475_v62  ;;  %v1463_v57 = vld [vmem:[%s7510_s18 + $0x148] sm:$0xff] }
 0x410   : > { %1393 = vmatpush.msra.mxu3 %v1251_v56  ;;  %v1432_v56 = vld [vmem:[%s7510_s18 + $0x50] sm:$0xff] }
 0x411   : > { %1410 = vst.msk [vmem:[#allocation2] sm:$0x7f] %vm1409_vm2, %v1403_v58 }
 0x412   : > { %1394 = vmatpush.msra.mxu3 %v8085_v21  ;;  %v7143_v21 = vld [vmem:[%s9595_s1 + $0x98] sm:$0xff] }
 0x414   : > { %1395 = vmatpush.msra.mxu3 %v8073_v40  ;;  %v7138_v40 = vld [vmem:[%s9595_s1 + $0xc0] sm:$0xff] }
 0x416   : > { %1396 = vmatpush.msra.mxu3 %v8063_v42  ;;  %v7134_v42 = vld [vmem:[%s9595_s1 + $0xe0] sm:$0xff] }
 0x418   : > { %1397 = vmatpush.msra.mxu3 %v8053_v51  ;;  %v7133_v51 = vld [vmem:[%s9595_s1 + $0xe8] sm:$0xff] }
 0x41a   : > { %1398 = vmatpush.msra.mxu3 %v8049_v24  ;;  %v1424_v24 = vld [vmem:[%s7510_s18 + $0x10] sm:$0xff] }
 0x41b   : > { %1399 = vmatmul.f32.vlgmr.msra.gmra.mxu3 %v8035_v61  ;;  %1633 = vmatmul.f32.gmra.mxu2 %v1424_v24 }
 0x41c   : > { %1919 = vmatpush.msrb.mxu3 %v7131_v49 }
 0x41e   : > { %1920 = vmatpush.msrb.mxu3 %v7132_v2  ;;  %v1380_v48 = vpop.f32.mrf.mxu2  ;;  %v1456_v2 = vld [vmem:[%s7510_s18 + $0x110] sm:$0xff] }
 0x41f   : > { %v1407_v53 = vadd.f32 %v1380_v48, %v479_v47  ;;  %v1473_v47 = vld [vmem:[%s7510_s18 + $0x198] sm:$0xff]  ;;  %v1480_v48 = vld [vmem:[%s7510_s18 + $0x1d0] sm:$0xff] }
 0x420   : > { %1921 = vmatpush.msrb.mxu3 %v7133_v51 }
 0x421   : > { %1414 = vst.msk [vmem:[#allocation2 + $0x20] sm:$0x7f] %vm1409_vm2, %v1407_v53 }
 0x422   : > { %1922 = vmatpush.msrb.mxu3 %v7134_v42  ;;  %v1451_v42 = vld [vmem:[%s7510_s18 + $0xe8] sm:$0xff] }
 0x423   : > { %1636 = vmatmul.f32.gmra.mxu2 %v1426_v1  ;;  %v1460_v1 = vld [vmem:[%s7510_s18 + $0x130] sm:$0xff] }
 0x424   : > { %1923 = vmatpush.msrb.mxu3 %v7135_v6  ;;  %v1458_v6 = vld [vmem:[%s7510_s18 + $0x120] sm:$0xff] }
 0x426   : > { %1924 = vmatpush.msrb.mxu3 %v7136_v8 }
 0x428   : > { %1925 = vmatpush.msrb.mxu3 %v7137_v59  ;;  %v1453_v59 = vld [vmem:[%s7510_s18 + $0xf8] sm:$0xff] }
 0x42a   : > { %1926 = vmatpush.msrb.mxu3 %v7138_v40 }
 0x42b   : > { %1639 = vmatmul.f32.gmra.mxu2 %v1428_v9 }
 0x42c   : > { %1927 = vmatpush.msrb.mxu3 %v7139_v52  ;;  %v1455_v52 = vld [vmem:[%s7510_s18 + $0x108] sm:$0xff] }
 0x42e   : > { %1928 = vmatpush.msrb.mxu3 %v7140_v31  ;;  %v1462_v31 = vld [vmem:[%s7510_s18 + $0x140] sm:$0xff] }
 0x430   : > { %1929 = vmatpush.msrb.mxu3 %v7141_v11 }
 0x432   : > { %1930 = vmatpush.msrb.mxu3 %v7142_v32 }
 0x433   : > { %1642 = vmatmul.f32.gmra.mxu2 %v1430_v28 }
 0x434   : > { %1931 = vmatpush.msrb.mxu3 %v7143_v21  ;;  %v1457_v21 = vld [vmem:[%s7510_s18 + $0x118] sm:$0xff] }
 0x436   : > { %1932 = vmatpush.msrb.mxu3 %v7144_v26  ;;  %v1464_v26 = vld [vmem:[%s7510_s18 + $0x150] sm:$0xff] }
 0x438   : > { %1933 = vmatpush.msrb.mxu3 %v7145_v43 }
 0x43a   : > { %1934 = vmatpush.msrb.mxu3 %v7146_v38  ;;  %v1459_v38 = vld [vmem:[%s7510_s18 + $0x128] sm:$0xff] }
 0x43b   : > { %1935 = vmatmul.f32.vlgmr.msrb.gmra.mxu3 %v1423_v50  ;;  %1645 = vmatmul.f32.gmra.mxu2 %v1432_v56 }
 0x43e   : > { %v1631_v46 = vpop.f32.mrf.mxu2 }
 0x443   : > { %1938 = vmatmul.f32.gmra.mxu3 %v1425_v12  ;;  %1648 = vmatmul.f32.gmra.mxu2 %v1434_v0  ;;  %v1466_v12 = vld [vmem:[%s7510_s18 + $0x160] sm:$0xff] }
 0x44b   : > { %1941 = vmatmul.f32.gmra.mxu3 %v1427_v63  ;;  %1651 = vmatmul.f32.gmra.mxu2 %v1436_v4  ;;  %v1468_v4 = vld [vmem:[%s7510_s18 + $0x170] sm:$0xff] }
 0x453   : > { %1944 = vmatmul.f32.gmra.mxu3 %v1429_v3  ;;  %1654 = vmatmul.f32.gmra.mxu2 %v1438_v15  ;;  %v1461_v3 = vld [vmem:[%s7510_s18 + $0x138] sm:$0xff] }
 0x45b   : > { %1947 = vmatmul.f32.gmra.mxu3 %v1431_v7  ;;  %1657 = vmatmul.f32.gmra.mxu2 %v1440_v13  ;;  %v1472_v13 = vld [vmem:[%s7510_s18 + $0x190] sm:$0xff] }
 0x463   : > { %1950 = vmatmul.f32.gmra.mxu3 %v1433_v54  ;;  %1660 = vmatmul.f32.gmra.mxu2 %v1442_v35  ;;  %v1465_v54 = vld [vmem:[%s7510_s18 + $0x158] sm:$0xff] }
 0x46b   : > { %1953 = vmatmul.f32.gmra.mxu3 %v1435_v20  ;;  %1663 = vmatmul.f32.gmra.mxu2 %v1444_v29  ;;  %v1467_v29 = vld [vmem:[%s7510_s18 + $0x168] sm:$0xff] }
 0x473   : > { %1956 = vmatmul.f32.gmra.mxu3 %v1437_v37  ;;  %1666 = vmatmul.f32.gmra.mxu2 %v1446_v25 }
 0x47b   : > { %1959 = vmatmul.f32.gmra.mxu3 %v1439_v30  ;;  %1669 = vmatmul.f32.gmra.mxu2 %v1448_v27  ;;  %v1474_v30 = vld [vmem:[%s7510_s18 + $0x1a0] sm:$0xff]  ;;  %v1471_v27 = vld [vmem:[%s7510_s18 + $0x188] sm:$0xff] }
 0x483   : > { %1962 = vmatmul.f32.gmra.mxu3 %v1441_v36  ;;  %1672 = vmatmul.f32.gmra.mxu2 %v1450_v16 }
 0x48b   : > { %1965 = vmatmul.f32.gmra.mxu3 %v1443_v60  ;;  %1675 = vmatmul.f32.gmra.mxu2 %v1452_v10  ;;  %v1478_v60 = vld [vmem:[%s7510_s18 + $0x1c0] sm:$0xff] }
 0x493   : > { %1968 = vmatmul.f32.gmra.mxu3 %v1445_v17  ;;  %1678 = vmatmul.f32.gmra.mxu2 %v1454_v39  ;;  %v1475_v39 = vld [vmem:[%s7510_s18 + $0x1a8] sm:$0xff] }
 0x49b   : > { %1971 = vmatmul.f32.gmra.mxu3 %v1447_v41  ;;  %1681 = vmatmul.f32.gmra.mxu2 %v1456_v2  ;;  %v1484_v2 = vld [vmem:[%s7510_s18 + $0x1f0] sm:$0xff] }
 0x49e   : > { %v1400_v49 = vpop.f32.mrf.mxu3  ;;  %v1634_v24 = vpop.f32.mrf.mxu2 }
 0x49f   : > { %v1408_v51 = vadd.f32 %v1400_v49, %v480_v45  ;;  %v1482_v45 = vld [vmem:[%s7510_s18 + $0x1e0] sm:$0xff]  ;;  %v1477_v49 = vld [vmem:[%s7510_s18 + $0x1b8] sm:$0xff] }
 0x4a1   : > { %1415 = vst.msk [vmem:[#allocation2 + $0x28] sm:$0x7f] %vm1409_vm2, %v1408_v51 }
 0x4a3   : > { %1974 = vmatmul.f32.gmra.mxu3 %v1449_v18  ;;  %1684 = vmatmul.f32.gmra.mxu2 %v1458_v6  ;;  %v1486_v6 = vld [vmem:[%s7510_s18 + $0x200] sm:$0xff] }
 0x4a6   : > { %v1637_v8 = vpop.f32.mrf.mxu2 }
 0x4ab   : > { %1977 = vmatmul.f32.gmra.mxu3 %v1451_v42  ;;  %1687 = vmatmul.f32.gmra.mxu2 %v1460_v1  ;;  %v1479_v42 = vld [vmem:[%s7510_s18 + $0x1c8] sm:$0xff]  ;;  %v1481_v1 = vld [vmem:[%s7510_s18 + $0x1d8] sm:$0xff] }
 0x4ae   : > { %v1640_v40 = vpop.f32.mrf.mxu2 }
 0x4b3   : > { %1980 = vmatmul.f32.gmra.mxu3 %v1453_v59  ;;  %1690 = vmatmul.f32.gmra.mxu2 %v1462_v31 }
 0x4b6   : > { %v1643_v9 = vpop.f32.mrf.mxu2 }
 0x4bb   : > { %1983 = vmatmul.f32.gmra.mxu3 %v1455_v52  ;;  %1693 = vmatmul.f32.gmra.mxu2 %v1464_v26 }
 0x4be   : > { %v1936_v11 = vpop.f32.mrf.mxu3  ;;  %v1646_v50 = vpop.f32.mrf.mxu2 }
 0x4bf   : > { %v8224_v32 = vadd.f32 %v1936_v11, %v1631_v46  ;;  %v1483_v11 = vld [vmem:[%s7510_s18 + $0x1e8] sm:$0xff] }
 0x4c3   : > { %1986 = vmatmul.f32.gmra.mxu3 %v1457_v21  ;;  %1696 = vmatmul.f32.gmra.mxu2 %v1466_v12 }
 0x4c6   : > { %v1939_v43 = vpop.f32.mrf.mxu3  ;;  %v1649_v63 = vpop.f32.mrf.mxu2 }
 0x4c7   : > { %v8228_v28 = vadd.f32 %v1939_v43, %v1634_v24  ;;  %v1485_v43 = vld [vmem:[%s7510_s18 + $0x1f8] sm:$0xff] }
 0x4cb   : > { %1989 = vmatmul.f32.gmra.mxu3 %v1459_v38  ;;  %1699 = vmatmul.f32.gmra.mxu2 %v1468_v4 }
 0x4ce   : > { %v1942_v56 = vpop.f32.mrf.mxu3  ;;  %v1652_v15 = vpop.f32.mrf.mxu2 }
 0x4cf   : > { %v8232_v0 = vadd.f32 %v1942_v56, %v1637_v8 }
 0x4d3   : > { %1992 = vmatmul.f32.gmra.mxu3 %v1461_v3  ;;  %1702 = vmatmul.f32.gmra.mxu2 %v1470_v55 }
 0x4d6   : > { %v1945_v7 = vpop.f32.mrf.mxu3  ;;  %v1655_v58 = vpop.f32.mrf.mxu2 }
 0x4d7   : > { %v8236_v62 = vadd.f32 %v1945_v7, %v1640_v40  ;;  %v1488_v40 = vld [vmem:[%s7510_s18 + $0x210] sm:$0xff]  ;;  %v1494_v7 = vld [vmem:[%s7510_s18 + $0x240] sm:$0xff] }
 0x4db   : > { %1995 = vmatmul.f32.gmra.mxu3 %v1463_v57  ;;  %1705 = vmatmul.f32.gmra.mxu2 %v1472_v13 }
 0x4de   : > { %v1948_v5 = vpop.f32.mrf.mxu3  ;;  %v8244_v35 = vpop.f32.mrf.mxu2 }
 0x4df   : > { %v8240_v44 = vadd.f32 %v1948_v5, %v1643_v9  ;;  %v1490_v9 = vld [vmem:[%s7510_s18 + $0x220] sm:$0xff] }
 0x4e3   : > { %1998 = vmatmul.f32.gmra.mxu3 %v1465_v54  ;;  %1708 = vmatmul.f32.gmra.mxu2 %v1474_v30  ;;  %v1489_v54 = vld [vmem:[%s7510_s18 + $0x218] sm:$0xff] }
 0x4e6   : > { %v1951_v20 = vpop.f32.mrf.mxu3  ;;  %v8250_v14 = vpop.f32.mrf.mxu2 }
 0x4e7   : > { %v8246_v37 = vadd.f32 %v1951_v20, %v1646_v50  ;;  %v1492_v50 = vld [vmem:[%s7510_s18 + $0x230] sm:$0xff] }
 0x4eb   : > { %2001 = vmatmul.f32.gmra.mxu3 %v1467_v29  ;;  %1711 = vmatmul.f32.gmra.mxu2 %v1476_v23  ;;  %v1496_v29 = vld [vmem:[%s7510_s18 + $0x250] sm:$0xff]  ;;  %v1491_v23 = vld [vmem:[%s7510_s18 + $0x228] sm:$0xff] }
 0x4ee   : > { %v1954_v25 = vpop.f32.mrf.mxu3  ;;  %v8256_v22 = vpop.f32.mrf.mxu2 }
 0x4ef   : > { %v8252_v33 = vadd.f32 %v1954_v25, %v1649_v63  ;;  %v1487_v63 = vld [vmem:[%s7510_s18 + $0x208] sm:$0xff] }
 0x4f3   : > { %2004 = vmatmul.f32.gmra.mxu3 %v1469_v34  ;;  %1714 = vmatmul.f32.gmra.mxu2 %v1478_v60  ;;  %v1495_v60 = vld [vmem:[%s7510_s18 + $0x248] sm:$0xff] }
 0x4f6   : > { %v1957_v19 = vpop.f32.mrf.mxu3  ;;  %v1667_v17 = vpop.f32.mrf.mxu2 }
 0x4f7   : > { %v8258_v36 = vadd.f32 %v1957_v19, %v1652_v15 }
 0x4fb   : > { %2007 = vmatmul.f32.gmra.mxu3 %v1471_v27  ;;  %1717 = vmatmul.f32.gmra.mxu2 %v1480_v48  ;;  %v1493_v27 = vld [vmem:[%s7510_s18 + $0x238] sm:$0xff] }
 0x4fe   : > { %v1960_v16 = vpop.f32.mrf.mxu3  ;;  %v1670_v41 = vpop.f32.mrf.mxu2 }
 0x4ff   : > { %v8262_v10 = vadd.f32 %v1960_v16, %v1655_v58 }
 0x503   : > { %2010 = vmatmul.f32.gmra.mxu3 %v1473_v47  ;;  %1720 = vmatmul.f32.gmra.mxu2 %v1482_v45 }
 0x506   : > { %v1963_v53 = vpop.f32.mrf.mxu3  ;;  %v1673_v18 = vpop.f32.mrf.mxu2 }
 0x507   : > { %v1964_v20 = vadd.f32 %v1963_v53, %v8244_v35  ;;  %v1506_v53 = vld [vmem:[%s7510_s18 + $0x2a0] sm:$0xff] }
 0x50b   : > { %2013 = vmatmul.f32.gmra.mxu3 %v1475_v39  ;;  %1723 = vmatmul.f32.gmra.mxu2 %v1484_v2 }
 0x50e   : > { %v1966_v46 = vpop.f32.mrf.mxu3  ;;  %v1676_v24 = vpop.f32.mrf.mxu2 }
 0x50f   : > { %v1967_v13 = vadd.f32 %v1966_v46, %v8250_v14  ;;  %v1498_v14 = vld [vmem:[%s7510_s18 + $0x260] sm:$0xff]  ;;  %v1501_v46 = vld [vmem:[%s7510_s18 + $0x278] sm:$0xff] }
 0x513   : > { %2016 = vmatmul.f32.gmra.mxu3 %v1477_v49  ;;  %1726 = vmatmul.f32.gmra.mxu2 %v1486_v6 }
 0x516   : > { %v1969_v51 = vpop.f32.mrf.mxu3  ;;  %v1679_v59 = vpop.f32.mrf.mxu2 }
 0x517   : > { %v1970_v5 = vadd.f32 %v1969_v51, %v8256_v22 }
 0x51b   : > { %2019 = vmatmul.f32.gmra.mxu3 %v1479_v42  ;;  %1729 = vmatmul.f32.gmra.mxu2 %v1488_v40  ;;  %v1510_v42 = vld [vmem:[%s7510_s18 + $0x2c0] sm:$0xff]  ;;  %v1512_v40 = vld [vmem:[%s7510_s18 + $0x2d0] sm:$0xff] }
 0x51e   : > { %v1972_v8 = vpop.f32.mrf.mxu3  ;;  %v1682_v31 = vpop.f32.mrf.mxu2 }
 0x51f   : > { %v1973_v15 = vadd.f32 %v1972_v8, %v1667_v17 }
 0x523   : > { %2022 = vmatmul.f32.gmra.mxu3 %v1481_v1  ;;  %1732 = vmatmul.f32.gmra.mxu2 %v1490_v9  ;;  %v1505_v1 = vld [vmem:[%s7510_s18 + $0x298] sm:$0xff]  ;;  %v1514_v9 = vld [vmem:[%s7510_s18 + $0x2e0] sm:$0xff] }
 0x526   : > { %v1975_v52 = vpop.f32.mrf.mxu3  ;;  %v1685_v26 = vpop.f32.mrf.mxu2 }
 0x527   : > { %v1976_v4 = vadd.f32 %v1975_v52, %v1670_v41 }
 0x52b   : > { %2025 = vmatmul.f32.gmra.mxu3 %v1483_v11  ;;  %1735 = vmatmul.f32.gmra.mxu2 %v1492_v50  ;;  %v1507_v11 = vld [vmem:[%s7510_s18 + $0x2a8] sm:$0xff]  ;;  %v1516_v50 = vld [vmem:[%s7510_s18 + $0x2f0] sm:$0xff] }
 0x52e   : > { %v1978_v21 = vpop.f32.mrf.mxu3  ;;  %v1688_v12 = vpop.f32.mrf.mxu2 }
 0x52f   : > { %v1979_v3 = vadd.f32 %v1978_v21, %v1673_v18  ;;  %v1508_v18 = vld [vmem:[%s7510_s18 + $0x2b0] sm:$0xff] }
 0x533   : > { %2028 = vmatmul.f32.gmra.mxu3 %v1485_v43  ;;  %1738 = vmatmul.f32.gmra.mxu2 %v1494_v7  ;;  %v1509_v43 = vld [vmem:[%s7510_s18 + $0x2b8] sm:$0xff] }
 0x534   : > { %v1513_v7 = vld [vmem:[%s7510_s18 + $0x2d8] sm:$0xff] }
 0x536   : > { %v1981_v38 = vpop.f32.mrf.mxu3  ;;  %v1691_v55 = vpop.f32.mrf.mxu2 }
 0x537   : > { %v1982_v56 = vadd.f32 %v1981_v38, %v1676_v24  ;;  %v1503_v24 = vld [vmem:[%s7510_s18 + $0x288] sm:$0xff] }
 0x539   : > { %2224 = vmatpush.msrb.mxu0 %v1982_v56  ;;  %v1511_v56 = vld [vmem:[%s7510_s18 + $0x2c8] sm:$0xff] }
 0x53b   : > { %2225 = vmatpush.msrb.mxu0 %v1979_v3  ;;  %2031 = vmatmul.f32.gmra.mxu3 %v1487_v63  ;;  %v1518_v63 = vld [vmem:[%s7510_s18 + $0x300] sm:$0xff] }
 0x53c   : > { %1741 = vmatmul.f32.gmra.mxu2 %v1496_v29  ;;  %v1517_v29 = vld [vmem:[%s7510_s18 + $0x2f8] sm:$0xff] }
 0x53d   : > { %2226 = vmatpush.msrb.mxu0 %v1976_v4 }
 0x53e   : > { %v1984_v57 = vpop.f32.mrf.mxu3  ;;  %v1694_v25 = vpop.f32.mrf.mxu2 }
 0x53f   : > { %2227 = vmatpush.msrb.mxu0 %v1973_v15  ;;  %v8281_v58 = vadd.f32 %v1984_v57, %v1679_v59  ;;  %v1520_v15 = vld [vmem:[%s7510_s18 + $0x310] sm:$0xff] }
 0x541   : > { %2228 = vmatpush.msrb.mxu0 %v1970_v5  ;;  %v1515_v5 = vld [vmem:[%s7510_s18 + $0x2e8] sm:$0xff] }
 0x543   : > { %2229 = vmatpush.msrb.mxu0 %v1967_v13  ;;  %2034 = vmatmul.f32.gmra.mxu3 %v1489_v54  ;;  %v1522_v54 = vld [vmem:[%s7510_s18 + $0x320] sm:$0xff] }
 0x544   : > { %1744 = vmatmul.f32.gmra.mxu2 %v1498_v14 }
 0x545   : > { %2230 = vmatpush.msrb.mxu0 %v1964_v20 }
 0x546   : > { %v1987_v30 = vpop.f32.mrf.mxu3  ;;  %v1697_v19 = vpop.f32.mrf.mxu2 }
 0x547   : > { %2231 = vmatpush.msrb.mxu0 %v8262_v10  ;;  %v8288_v34 = vadd.f32 %v1987_v30, %v1682_v31  ;;  %v1504_v10 = vld [vmem:[%s7510_s18 + $0x290] sm:$0xff] }
 0x548   : > { %v1524_v30 = vld [vmem:[%s7510_s18 + $0x330] sm:$0xff] }
 0x549   : > { %2232 = vmatpush.msrb.mxu0 %v8258_v36 }
 0x54b   : > { %2233 = vmatpush.msrb.mxu0 %v8252_v33  ;;  %2037 = vmatmul.f32.gmra.mxu3 %v1491_v23  ;;  %v1500_v33 = vld [vmem:[%s7510_s18 + $0x270] sm:$0xff] }
 0x54c   : > { %1747 = vmatmul.f32.gmra.mxu2 %v1500_v33 }
 0x54d   : > { %2234 = vmatpush.msrb.mxu0 %v8246_v37 }
 0x54e   : > { %v1990_v35 = vpop.f32.mrf.mxu3  ;;  %v1700_v36 = vpop.f32.mrf.mxu2 }
 0x54f   : > { %2235 = vmatpush.msrb.mxu0 %v8240_v44  ;;  %v8296_v22 = vadd.f32 %v1990_v35, %v1685_v26  ;;  %v1519_v35 = vld [vmem:[%s7510_s18 + $0x308] sm:$0xff] }
 0x551   : > { %2236 = vmatpush.msrb.mxu0 %v8236_v62 }
 0x553   : > { %2237 = vmatpush.msrb.mxu0 %v8232_v0  ;;  %2040 = vmatmul.f32.gmra.mxu3 %v1493_v27  ;;  %v1502_v0 = vld [vmem:[%s7510_s18 + $0x280] sm:$0xff] }
 0x554   : > { %1750 = vmatmul.f32.gmra.mxu2 %v1502_v0  ;;  %v1526_v27 = vld [vmem:[%s7510_s18 + $0x340] sm:$0xff] }
 0x555   : > { %2238 = vmatpush.msrb.mxu0 %v8228_v28  ;;  %v1497_v28 = vld [vmem:[%s7510_s18 + $0x258] sm:$0xff] }
 0x556   : > { %v1993_v37 = vpop.f32.mrf.mxu3  ;;  %v1703_v16 = vpop.f32.mrf.mxu2 }
 0x557   : > { %2239 = vmatpush.msrb.mxu0 %v8224_v32  ;;  %v8304_v44 = vadd.f32 %v1993_v37, %v1688_v12 }
 0x558   : > { %2240 = vmatmul.f32.vlgmr.msrb.gmra.mxu0 %v8035_v61  ;;  %v1499_v61 = vld [vmem:[%s7510_s18 + $0x268] sm:$0xff] }
 0x55b   : > { %2043 = vmatmul.f32.gmra.mxu3 %v1495_v60 }
 0x55c   : > { %1753 = vmatmul.f32.gmra.mxu2 %v1504_v10  ;;  %v1528_v10 = vld [vmem:[%s7510_s18 + $0x350] sm:$0xff] }
 0x55e   : > { %v1996_v62 = vpop.f32.mrf.mxu3  ;;  %v8313_v47 = vpop.f32.mrf.mxu2 }
 0x55f   : > { %v8309_v17 = vadd.f32 %v1996_v62, %v1691_v55 }
 0x563   : > { %2046 = vmatmul.f32.gmra.mxu3 %v1497_v28 }
 0x564   : > { %1756 = vmatmul.f32.gmra.mxu2 %v1506_v53 }
 0x566   : > { %v1999_v32 = vpop.f32.mrf.mxu3  ;;  %v8319_v39 = vpop.f32.mrf.mxu2 }
 0x567   : > { %v8315_v48 = vadd.f32 %v1999_v32, %v1694_v25 }
 0x56b   : > { %2049 = vmatmul.f32.gmra.mxu3 %v1499_v61 }
 0x56c   : > { %1759 = vmatmul.f32.gmra.mxu2 %v1508_v18  ;;  %v1530_v18 = vld [vmem:[%s7510_s18 + $0x360] sm:$0xff] }
 0x56e   : > { %v2002_v41 = vpop.f32.mrf.mxu3  ;;  %v8325_v2 = vpop.f32.mrf.mxu2 }
 0x56f   : > { %v8321_v45 = vadd.f32 %v2002_v41, %v1697_v19 }
 0x573   : > { %2052 = vmatmul.f32.gmra.mxu3 %v1501_v46  ;;  %v1523_v46 = vld [vmem:[%s7510_s18 + $0x328] sm:$0xff] }
 0x574   : > { %1762 = vmatmul.f32.gmra.mxu2 %v1510_v42  ;;  %v8377_v42 = vld [vmem:[%s7493_s12] sm:$0x7f] }
 0x576   : > { %v2005_v49 = vpop.f32.mrf.mxu3  ;;  %v1715_v8 = vpop.f32.mrf.mxu2 }
 0x577   : > { %v8327_v51 = vadd.f32 %v2005_v49, %v1700_v36 }
 0x57b   : > { %2055 = vmatmul.f32.gmra.mxu3 %v1503_v24  ;;  %v1527_v24 = vld [vmem:[%s7510_s18 + $0x348] sm:$0xff] }
 0x57c   : > { %1765 = vmatmul.f32.gmra.mxu2 %v1512_v40 }
 0x57e   : > { %v2008_v6 = vpop.f32.mrf.mxu3  ;;  %v1718_v31 = vpop.f32.mrf.mxu2 }
 0x57f   : > { %v8331_v59 = vadd.f32 %v2008_v6, %v1703_v16  ;;  %v1521_v16 = vld [vmem:[%s7510_s18 + $0x318] sm:$0xff] }
 0x583   : > { %2058 = vmatmul.f32.gmra.mxu3 %v1505_v1 }
 0x584   : > { %1768 = vmatmul.f32.gmra.mxu2 %v1514_v9 }
 0x586   : > { %v2011_v52 = vpop.f32.mrf.mxu3  ;;  %v1721_v26 = vpop.f32.mrf.mxu2 }
 0x587   : > { %v2012_v32 = vadd.f32 %v2011_v52, %v8313_v47  ;;  %v1531_v52 = vld [vmem:[%s7510_s18 + $0x368] sm:$0xff] }
 0x58b   : > { %2061 = vmatmul.f32.gmra.mxu3 %v1507_v11 }
 0x58c   : > { %1771 = vmatmul.f32.gmra.mxu2 %v1516_v50 }
 0x58e   : > { %v2014_v21 = vpop.f32.mrf.mxu3  ;;  %v1724_v12 = vpop.f32.mrf.mxu2 }
 0x58f   : > { %v2015_v28 = vadd.f32 %v2014_v21, %v8319_v39 }
 0x593   : > { %2064 = vmatmul.f32.gmra.mxu3 %v1509_v43  ;;  %v1540_v43 = vld [vmem:[%s7510_s18 + $0x3b0] sm:$0xff] }
 0x594   : > { %1774 = vmatmul.f32.gmra.mxu2 %v1518_v63  ;;  %v1542_v63 = vld [vmem:[%s7510_s18 + $0x3c0] sm:$0xff] }
 0x596   : > { %v2017_v38 = vpop.f32.mrf.mxu3  ;;  %v1727_v4 = vpop.f32.mrf.mxu2 }
 0x597   : > { %v2018_v60 = vadd.f32 %v2017_v38, %v8325_v2  ;;  %v1525_v2 = vld [vmem:[%s7510_s18 + $0x338] sm:$0xff] }
 0x59b   : > { %2067 = vmatmul.f32.gmra.mxu3 %v1511_v56  ;;  %v1535_v56 = vld [vmem:[%s7510_s18 + $0x388] sm:$0xff] }
 0x59c   : > { %1777 = vmatmul.f32.gmra.mxu2 %v1520_v15  ;;  %v1537_v15 = vld [vmem:[%s7510_s18 + $0x398] sm:$0xff] }
 0x59e   : > { %v2020_v3 = vpop.f32.mrf.mxu3  ;;  %v1730_v55 = vpop.f32.mrf.mxu2 }
 0x59f   : > { %v2021_v37 = vadd.f32 %v2020_v3, %v1715_v8  ;;  %v1536_v8 = vld [vmem:[%s7510_s18 + $0x390] sm:$0xff] }
 0x5a3   : > { %2070 = vmatmul.f32.gmra.mxu3 %v1513_v7 }
 0x5a4   : > { %1780 = vmatmul.f32.gmra.mxu2 %v1522_v54  ;;  %v1539_v54 = vld [vmem:[%s7510_s18 + $0x3a8] sm:$0xff] }
 0x5a6   : > { %v2023_v57 = vpop.f32.mrf.mxu3  ;;  %v1733_v20 = vpop.f32.mrf.mxu2 }
 0x5a7   : > { %v2024_v33 = vadd.f32 %v2023_v57, %v1718_v31  ;;  %v1538_v31 = vld [vmem:[%s7510_s18 + $0x3a0] sm:$0xff]  ;;  %v1544_v57 = vld [vmem:[%s7510_s18 + $0x3d0] sm:$0xff] }
 0x5ab   : > { %2073 = vmatmul.f32.gmra.mxu3 %v1515_v5 }
 0x5ac   : > { %1783 = vmatmul.f32.gmra.mxu2 %v1524_v30  ;;  %v1541_v30 = vld [vmem:[%s7510_s18 + $0x3b8] sm:$0xff] }
 0x5ae   : > { %v2026_v13 = vpop.f32.mrf.mxu3  ;;  %v1736_v14 = vpop.f32.mrf.mxu2 }
 0x5af   : > { %v2027_v19 = vadd.f32 %v2026_v13, %v1721_v26  ;;  %v1533_v26 = vld [vmem:[%s7510_s18 + $0x378] sm:$0xff]  ;;  %v1546_v13 = vld [vmem:[%s7510_s18 + $0x3e0] sm:$0xff] }
 0x5b3   : > { %2076 = vmatmul.f32.gmra.mxu3 %v1517_v29 }
 0x5b4   : > { %1786 = vmatmul.f32.gmra.mxu2 %v1526_v27 }
 0x5b6   : > { %v2029_v25 = vpop.f32.mrf.mxu3  ;;  %v1739_v62 = vpop.f32.mrf.mxu2 }
 0x5b7   : > { %v2030_v23 = vadd.f32 %v2029_v25, %v1724_v12  ;;  %v1548_v25 = vld [vmem:[%s7510_s18 + $0x3f0] sm:$0xff] }
 0x5b9   : > { %2244 = vmatpush.msrb.mxu1 %v2030_v23 }
 0x5bb   : > { %2245 = vmatpush.msrb.mxu1 %v2027_v19  ;;  %2079 = vmatmul.f32.gmra.mxu3 %v1519_v35  ;;  %v1543_v35 = vld [vmem:[%s7510_s18 + $0x3c8] sm:$0xff]  ;;  %v1550_v19 = vld [vmem:[%s7510_s18 + $0x400] sm:$0xff] }
 0x5bc   : > { %1789 = vmatmul.f32.gmra.mxu2 %v1528_v10 }
 0x5bd   : > { %2246 = vmatpush.msrb.mxu1 %v2024_v33 }
 0x5be   : > { %v2032_v36 = vpop.f32.mrf.mxu3 }
 0x5bf   : > { %2247 = vmatpush.msrb.mxu1 %v2021_v37  ;;  %v8350_v0 = vadd.f32 %v2032_v36, %v1727_v4  ;;  %v1742_v41 = vpop.f32.mrf.mxu2  ;;  %v1545_v37 = vld [vmem:[%s7510_s18 + $0x3d8] sm:$0xff]  ;;  %v1552_v36 = vld [vmem:[%s7510_s18 + $0x410] sm:$0xff] }
 0x5c1   : > { %2248 = vmatpush.msrb.mxu1 %v2018_v60 }
 0x5c3   : > { %2249 = vmatpush.msrb.mxu1 %v2015_v28  ;;  %2082 = vmatmul.f32.gmra.mxu3 %v1521_v16  ;;  %v1547_v16 = vld [vmem:[%s7510_s18 + $0x3e8] sm:$0xff]  ;;  %v1554_v28 = vld [vmem:[%s7510_s18 + $0x420] sm:$0xff] }
 0x5c4   : > { %1792 = vmatmul.f32.gmra.mxu2 %v1530_v18 }
 0x5c5   : > { %2250 = vmatpush.msrb.mxu1 %v2012_v32 }
 0x5c6   : > { %v2035_v61 = vpop.f32.mrf.mxu3 }
 0x5c7   : > { %2251 = vmatpush.msrb.mxu1 %v8331_v59  ;;  %v8357_v53 = vadd.f32 %v2035_v61, %v1730_v55  ;;  %v1745_v49 = vpop.f32.mrf.mxu2  ;;  %v1549_v61 = vld [vmem:[%s7510_s18 + $0x3f8] sm:$0xff] }
 0x5c9   : > { %2252 = vmatpush.msrb.mxu1 %v8327_v51  ;;  %v1532_v51 = vld [vmem:[%s7510_s18 + $0x370] sm:$0xff] }
 0x5cb   : > { %2253 = vmatpush.msrb.mxu1 %v8321_v45  ;;  %2085 = vmatmul.f32.gmra.mxu3 %v1523_v46 }
 0x5cc   : > { %1795 = vmatmul.f32.gmra.mxu2 %v1532_v51  ;;  %v1558_v51 = vld [vmem:[%s7510_s18 + $0x440] sm:$0xff] }
 0x5cd   : > { %2254 = vmatpush.msrb.mxu1 %v8315_v48 }
 0x5ce   : > { %v2038_v47 = vpop.f32.mrf.mxu3 }
 0x5cf   : > { %2255 = vmatpush.msrb.mxu1 %v8309_v17  ;;  %v8365_v39 = vadd.f32 %v2038_v47, %v1733_v20  ;;  %v1748_v45 = vpop.f32.mrf.mxu2 }
 0x5d1   : > { %2256 = vmatpush.msrb.mxu1 %v8304_v44 }
 0x5d3   : > { %2257 = vmatpush.msrb.mxu1 %v8296_v22  ;;  %2088 = vmatmul.f32.gmra.mxu3 %v1525_v2  ;;  %v1534_v22 = vld [vmem:[%s7510_s18 + $0x380] sm:$0xff] }
 0x5d4   : > { %1798 = vmatmul.f32.gmra.mxu2 %v1534_v22 }
 0x5d5   : > { %2258 = vmatpush.msrb.mxu1 %v8288_v34 }
 0x5d6   : > { %v2041_v48 = vpop.f32.mrf.mxu3 }
 0x5d7   : > { %2259 = vmatpush.msrb.mxu1 %v8281_v58  ;;  %v8373_v17 = vadd.f32 %v2041_v48, %v1736_v14  ;;  %v1751_v34 = vpop.f32.mrf.mxu2  ;;  %v1529_v58 = vld [vmem:[%s7510_s18 + $0x358] sm:$0xff] }
 0x5d8   : > { %2260 = vmatmul.f32.vlgmr.msrb.gmra.mxu1 %v8377_v42 }
 0x5db   : > { %2091 = vmatmul.f32.gmra.mxu3 %v1527_v24 }
 0x5dc   : > { %1801 = vmatmul.f32.gmra.mxu2 %v1536_v8 }
 0x5de   : > { %v2044_v44 = vpop.f32.mrf.mxu3 }
 0x5df   : > { %v8381_v6 = vadd.f32 %v2044_v44, %v1739_v62  ;;  %v8387_v40 = vpop.f32.mrf.mxu2 }
 0x5e3   : > { %2094 = vmatmul.f32.gmra.mxu3 %v1529_v58  ;;  %v1553_v58 = vld [vmem:[%s7510_s18 + $0x418] sm:$0xff] }
 0x5e4   : > { %1804 = vmatmul.f32.gmra.mxu2 %v1538_v31 }
 0x5e6   : > { %v2047_v59 = vpop.f32.mrf.mxu3 }
 0x5e7   : > { %v8385_v1 = vadd.f32 %v2047_v59, %v1742_v41  ;;  %v8393_v21 = vpop.f32.mrf.mxu2  ;;  %v1556_v41 = vld [vmem:[%s7510_s18 + $0x430] sm:$0xff] }
 0x5e8   : > { %v1560_v59 = vld [vmem:[%s7510_s18 + $0x450] sm:$0xff] }
 0x5eb   : > { %2097 = vmatmul.f32.gmra.mxu3 %v1531_v52 }
 0x5ec   : > { %1807 = vmatmul.f32.gmra.mxu2 %v1540_v43  ;;  %v1555_v43 = vld [vmem:[%s7510_s18 + $0x428] sm:$0xff] }
 0x5ee   : > { %v2050_v11 = vpop.f32.mrf.mxu3 }
 0x5ef   : > { %v8391_v9 = vadd.f32 %v2050_v11, %v1745_v49  ;;  %v1760_v12 = vpop.f32.mrf.mxu2  ;;  %v1551_v49 = vld [vmem:[%s7510_s18 + $0x408] sm:$0xff] }
 0x5f3   : > { %2100 = vmatmul.f32.gmra.mxu3 %v1533_v26 }
 0x5f4   : > { %1810 = vmatmul.f32.gmra.mxu2 %v1542_v63  ;;  %v1564_v63 = vld [vmem:[%s7510_s18 + $0x470] sm:$0xff] }
 0x5f6   : > { %v2053_v50 = vpop.f32.mrf.mxu3 }
 0x5f7   : > { %v8397_v38 = vadd.f32 %v2053_v50, %v1748_v45  ;;  %v1763_v7 = vpop.f32.mrf.mxu2 }
 0x5fb   : > { %2103 = vmatmul.f32.gmra.mxu3 %v1535_v56  ;;  %v1557_v56 = vld [vmem:[%s7510_s18 + $0x438] sm:$0xff] }
 0x5fc   : > { %1813 = vmatmul.f32.gmra.mxu2 %v1544_v57 }
 0x5fe   : > { %v2056_v3 = vpop.f32.mrf.mxu3 }
 0x5ff   : > { %v8401_v4 = vadd.f32 %v2056_v3, %v1751_v34  ;;  %v1766_v5 = vpop.f32.mrf.mxu2 }
 0x603   : > { %2106 = vmatmul.f32.gmra.mxu3 %v1537_v15 }
 0x604   : > { %1816 = vmatmul.f32.gmra.mxu2 %v1546_v13 }
 0x606   : > { %v2059_v55 = vpop.f32.mrf.mxu3 }
 0x607   : > { %v1769_v29 = vpop.f32.mrf.mxu2  ;;  %v2060_v52 = vadd.f32 %v2059_v55, %v8387_v40  ;;  %v1563_v55 = vld [vmem:[%s7510_s18 + $0x468] sm:$0xff] }
 0x60b   : > { %2109 = vmatmul.f32.gmra.mxu3 %v1539_v54 }
 0x60c   : > { %1819 = vmatmul.f32.gmra.mxu2 %v1548_v25 }
 0x60e   : > { %v2062_v20 = vpop.f32.mrf.mxu3 }
 0x60f   : > { %v1772_v14 = vpop.f32.mrf.mxu2  ;;  %v2063_v8 = vadd.f32 %v2062_v20, %v8393_v21  ;;  %v1562_v21 = vld [vmem:[%s7510_s18 + $0x460] sm:$0xff] }
 0x613   : > { %2112 = vmatmul.f32.gmra.mxu3 %v1541_v30  ;;  %v1572_v30 = vld [vmem:[%s7510_s18 + $0x4b0] sm:$0xff] }
 0x614   : > { %1822 = vmatmul.f32.gmra.mxu2 %v1550_v19  ;;  %v1574_v19 = vld [vmem:[%s7510_s18 + $0x4c0] sm:$0xff] }
 0x616   : > { %v2065_v23 = vpop.f32.mrf.mxu3 }
 0x617   : > { %v1775_v33 = vpop.f32.mrf.mxu2  ;;  %v2066_v22 = vadd.f32 %v2065_v23, %v1760_v12 }
 0x61b   : > { %2115 = vmatmul.f32.gmra.mxu3 %v1543_v35  ;;  %v1567_v35 = vld [vmem:[%s7510_s18 + $0x488] sm:$0xff] }
 0x61c   : > { %1825 = vmatmul.f32.gmra.mxu2 %v1552_v36  ;;  %v1569_v36 = vld [vmem:[%s7510_s18 + $0x498] sm:$0xff] }
 0x61e   : > { %v2068_v27 = vpop.f32.mrf.mxu3 }
 0x61f   : > { %v1778_v62 = vpop.f32.mrf.mxu2  ;;  %v2069_v45 = vadd.f32 %v2068_v27, %v1763_v7  ;;  %v1568_v7 = vld [vmem:[%s7510_s18 + $0x490] sm:$0xff] }
 0x623   : > { %2118 = vmatmul.f32.gmra.mxu3 %v1545_v37 }
 0x624   : > { %1828 = vmatmul.f32.gmra.mxu2 %v1554_v28  ;;  %v1571_v28 = vld [vmem:[%s7510_s18 + $0x4a8] sm:$0xff] }
 0x626   : > { %v2071_v60 = vpop.f32.mrf.mxu3 }
 0x627   : > { %v1781_v32 = vpop.f32.mrf.mxu2  ;;  %v2072_v48 = vadd.f32 %v2071_v60, %v1766_v5  ;;  %v1570_v5 = vld [vmem:[%s7510_s18 + $0x4a0] sm:$0xff]  ;;  %v1576_v60 = vld [vmem:[%s7510_s18 + $0x4d0] sm:$0xff] }
 0x62b   : > { %2121 = vmatmul.f32.gmra.mxu3 %v1547_v16 }
 0x62c   : > { %1831 = vmatmul.f32.gmra.mxu2 %v1556_v41  ;;  %v1573_v41 = vld [vmem:[%s7510_s18 + $0x4b8] sm:$0xff] }
 0x62e   : > { %v2074_v10 = vpop.f32.mrf.mxu3 }
 0x62f   : > { %v1784_v47 = vpop.f32.mrf.mxu2  ;;  %v2075_v2 = vadd.f32 %v2074_v10, %v1769_v29  ;;  %v1565_v29 = vld [vmem:[%s7510_s18 + $0x478] sm:$0xff]  ;;  %v1578_v10 = vld [vmem:[%s7510_s18 + $0x4e0] sm:$0xff] }
 0x633   : > { %2124 = vmatmul.f32.gmra.mxu3 %v1549_v61 }
 0x634   : > { %1834 = vmatmul.f32.gmra.mxu2 %v1558_v51 }
 0x636   : > { %v2077_v46 = vpop.f32.mrf.mxu3 }
 0x637   : > { %v2078_v18 = vadd.f32 %v2077_v46, %v1772_v14  ;;  %v1787_v34 = vpop.f32.mrf.mxu2  ;;  %v1580_v46 = vld [vmem:[%s7510_s18 + $0x4f0] sm:$0xff] }
 0x639   : > { %2264 = vmatpush.msra.mxu0 %v2078_v18 }
 0x63b   : > { %2127 = vmatmul.f32.gmra.mxu3 %v1551_v49  ;;  %2265 = vmatpush.msra.mxu0 %v2075_v2  ;;  %v1575_v49 = vld [vmem:[%s7510_s18 + $0x4c8] sm:$0xff]  ;;  %v1582_v2 = vld [vmem:[%s7510_s18 + $0x500] sm:$0xff] }
 0x63c   : > { %1837 = vmatmul.f32.gmra.mxu2 %v1560_v59 }
 0x63d   : > { %2266 = vmatpush.msra.mxu0 %v2072_v48 }
 0x63e   : > { %v2080_v24 = vpop.f32.mrf.mxu3 }
 0x63f   : > { %v8419_v44 = vadd.f32 %v2080_v24, %v1775_v33  ;;  %2267 = vmatpush.msra.mxu0 %v2069_v45  ;;  %v1790_v26 = vpop.f32.mrf.mxu2  ;;  %v1577_v45 = vld [vmem:[%s7510_s18 + $0x4d8] sm:$0xff]  ;;  %v1584_v24 = vld [vmem:[%s7510_s18 + $0x510] sm:$0xff] }
 0x641   : > { %2268 = vmatpush.msra.mxu0 %v2066_v22 }
 0x643   : > { %2130 = vmatmul.f32.gmra.mxu3 %v1553_v58  ;;  %2269 = vmatpush.msra.mxu0 %v2063_v8  ;;  %v1579_v58 = vld [vmem:[%s7510_s18 + $0x4e8] sm:$0xff]  ;;  %v1586_v8 = vld [vmem:[%s7510_s18 + $0x520] sm:$0xff] }
 0x644   : > { %1840 = vmatmul.f32.gmra.mxu2 %v1562_v21 }
 0x645   : > { %2270 = vmatpush.msra.mxu0 %v2060_v52 }
 0x646   : > { %v2083_v31 = vpop.f32.mrf.mxu3 }
 0x647   : > { %v8425_v11 = vadd.f32 %v2083_v31, %v1778_v62  ;;  %2271 = vmatpush.msra.mxu0 %v8401_v4  ;;  %v1793_v12 = vpop.f32.mrf.mxu2  ;;  %v1581_v31 = vld [vmem:[%s7510_s18 + $0x4f8] sm:$0xff] }
 0x649   : > { %2272 = vmatpush.msra.mxu0 %v8397_v38 }
 0x64b   : > { %2133 = vmatmul.f32.gmra.mxu3 %v1555_v43  ;;  %2273 = vmatpush.msra.mxu0 %v8391_v9 }
 0x64c   : > { %1843 = vmatmul.f32.gmra.mxu2 %v1564_v63  ;;  %v1590_v63 = vld [vmem:[%s7510_s18 + $0x540] sm:$0xff] }
 0x64d   : > { %2274 = vmatpush.msra.mxu0 %v8385_v1 }
 0x64e   : > { %v2086_v40 = vpop.f32.mrf.mxu3 }
 0x64f   : > { %v8433_v50 = vadd.f32 %v2086_v40, %v1781_v32  ;;  %2275 = vmatpush.msra.mxu0 %v8381_v6  ;;  %v1796_v38 = vpop.f32.mrf.mxu2  ;;  %v1559_v6 = vld [vmem:[%s7510_s18 + $0x448] sm:$0xff] }
 0x651   : > { %2276 = vmatpush.msra.mxu0 %v8373_v17  ;;  %v1566_v17 = vld [vmem:[%s7510_s18 + $0x480] sm:$0xff] }
 0x653   : > { %2136 = vmatmul.f32.gmra.mxu3 %v1557_v56  ;;  %2277 = vmatpush.msra.mxu0 %v8365_v39 }
 0x654   : > { %1846 = vmatmul.f32.gmra.mxu2 %v1566_v17 }
 0x655   : > { %2278 = vmatpush.msra.mxu0 %v8357_v53  ;;  %v1561_v53 = vld [vmem:[%s7510_s18 + $0x458] sm:$0xff] }
 0x656   : > { %v2089_v1 = vpop.f32.mrf.mxu3 }
 0x657   : > { %v8441_v9 = vadd.f32 %v2089_v1, %v1784_v47  ;;  %2279 = vmatpush.msra.mxu0 %v8350_v0  ;;  %v1799_v4 = vpop.f32.mrf.mxu2 }
 0x658   : > { %2280 = vmatmul.f32.vlgmr.msra.gmra.mxu0 %v8377_v42 }
 0x65b   : > { %2139 = vmatmul.f32.gmra.mxu3 %v1559_v6 }
 0x65c   : > { %1849 = vmatmul.f32.gmra.mxu2 %v1568_v7 }
 0x65e   : > { %v2092_v3 = vpop.f32.mrf.mxu3 }
 0x65f   : > { %v8447_v39 = vadd.f32 %v2092_v3, %v1787_v34  ;;  %v8453_v57 = vpop.f32.mrf.mxu2 }
 0x663   : > { %2142 = vmatmul.f32.gmra.mxu3 %v1561_v53  ;;  %v1585_v53 = vld [vmem:[%s7510_s18 + $0x518] sm:$0xff] }
 0x664   : > { %1852 = vmatmul.f32.gmra.mxu2 %v1570_v5 }
 0x666   : > { %v2095_v0 = vpop.f32.mrf.mxu3 }
 0x667   : > { %v8451_v15 = vadd.f32 %v2095_v0, %v1790_v26  ;;  %v8459_v20 = vpop.f32.mrf.mxu2  ;;  %v1588_v26 = vld [vmem:[%s7510_s18 + $0x530] sm:$0xff] }
 0x668   : > { %v1592_v0 = vld [vmem:[%s7510_s18 + $0x550] sm:$0xff] }
 0x66b   : > { %2145 = vmatmul.f32.gmra.mxu3 %v1563_v55 }
 0x66c   : > { %1855 = vmatmul.f32.gmra.mxu2 %v1572_v30  ;;  %v1587_v30 = vld [vmem:[%s7510_s18 + $0x528] sm:$0xff] }
 0x66e   : > { %v2098_v54 = vpop.f32.mrf.mxu3 }
 0x66f   : > { %v8457_v13 = vadd.f32 %v2098_v54, %v1793_v12  ;;  %v1808_v14 = vpop.f32.mrf.mxu2  ;;  %v1583_v12 = vld [vmem:[%s7510_s18 + $0x508] sm:$0xff] }
 0x673   : > { %2148 = vmatmul.f32.gmra.mxu3 %v1565_v29 }
 0x674   : > { %1858 = vmatmul.f32.gmra.mxu2 %v1574_v19  ;;  %v1596_v19 = vld [vmem:[%s7510_s18 + $0x570] sm:$0xff] }
 0x676   : > { %v2101_v25 = vpop.f32.mrf.mxu3 }
 0x677   : > { %v8463_v23 = vadd.f32 %v2101_v25, %v1796_v38  ;;  %v1811_v37 = vpop.f32.mrf.mxu2 }
 0x67b   : > { %2151 = vmatmul.f32.gmra.mxu3 %v1567_v35  ;;  %v1589_v35 = vld [vmem:[%s7510_s18 + $0x538] sm:$0xff] }
 0x67c   : > { %1861 = vmatmul.f32.gmra.mxu2 %v1576_v60 }
 0x67e   : > { %v2104_v27 = vpop.f32.mrf.mxu3 }
 0x67f   : > { %v8467_v33 = vadd.f32 %v2104_v27, %v1799_v4  ;;  %v1814_v16 = vpop.f32.mrf.mxu2 }
 0x683   : > { %2154 = vmatmul.f32.gmra.mxu3 %v1569_v36 }
 0x684   : > { %1864 = vmatmul.f32.gmra.mxu2 %v1578_v10 }
 0x686   : > { %v2107_v62 = vpop.f32.mrf.mxu3 }
 0x687   : > { %v1817_v61 = vpop.f32.mrf.mxu2  ;;  %v2108_v55 = vadd.f32 %v2107_v62, %v8453_v57  ;;  %v1595_v62 = vld [vmem:[%s7510_s18 + $0x568] sm:$0xff] }
 0x68b   : > { %2157 = vmatmul.f32.gmra.mxu3 %v1571_v28 }
 0x68c   : > { %1867 = vmatmul.f32.gmra.mxu2 %v1580_v46 }
 0x68e   : > { %v2110_v32 = vpop.f32.mrf.mxu3 }
 0x68f   : > { %v1820_v47 = vpop.f32.mrf.mxu2  ;;  %v2111_v7 = vadd.f32 %v2110_v32, %v8459_v20  ;;  %v1594_v20 = vld [vmem:[%s7510_s18 + $0x560] sm:$0xff] }
 0x693   : > { %2160 = vmatmul.f32.gmra.mxu3 %v1573_v41  ;;  %v1604_v41 = vld [vmem:[%s7510_s18 + $0x5b0] sm:$0xff] }
 0x694   : > { %1870 = vmatmul.f32.gmra.mxu2 %v1582_v2  ;;  %v1606_v2 = vld [vmem:[%s7510_s18 + $0x5c0] sm:$0xff] }
 0x696   : > { %v2113_v18 = vpop.f32.mrf.mxu3 }
 0x697   : > { %v1823_v48 = vpop.f32.mrf.mxu2  ;;  %v2114_v17 = vadd.f32 %v2113_v18, %v1808_v14 }
 0x69b   : > { %2163 = vmatmul.f32.gmra.mxu3 %v1575_v49  ;;  %v1599_v49 = vld [vmem:[%s7510_s18 + $0x588] sm:$0xff] }
 0x69c   : > { %1873 = vmatmul.f32.gmra.mxu2 %v1584_v24  ;;  %v1601_v24 = vld [vmem:[%s7510_s18 + $0x598] sm:$0xff] }
 0x69e   : > { %v2116_v51 = vpop.f32.mrf.mxu3 }
 0x69f   : > { %v1826_v34 = vpop.f32.mrf.mxu2  ;;  %v2117_v38 = vadd.f32 %v2116_v51, %v1811_v37  ;;  %v1600_v37 = vld [vmem:[%s7510_s18 + $0x590] sm:$0xff] }
 0x6a3   : > { %2166 = vmatmul.f32.gmra.mxu3 %v1577_v45 }
 0x6a4   : > { %1876 = vmatmul.f32.gmra.mxu2 %v1586_v8  ;;  %v1603_v8 = vld [vmem:[%s7510_s18 + $0x5a8] sm:$0xff] }
 0x6a6   : > { %v2119_v22 = vpop.f32.mrf.mxu3 }
 0x6a7   : > { %v1829_v52 = vpop.f32.mrf.mxu2  ;;  %v2120_v1 = vadd.f32 %v2119_v22, %v1814_v16  ;;  %v1602_v16 = vld [vmem:[%s7510_s18 + $0x5a0] sm:$0xff]  ;;  %v1608_v22 = vld [vmem:[%s7510_s18 + $0x5d0] sm:$0xff] }
 0x6ab   : > { %2169 = vmatmul.f32.gmra.mxu3 %v1579_v58 }
 0x6ac   : > { %1879 = vmatmul.f32.gmra.mxu2 %v1588_v26  ;;  %v1605_v26 = vld [vmem:[%s7510_s18 + $0x5b8] sm:$0xff] }
 0x6ae   : > { %v2122_v59 = vpop.f32.mrf.mxu3 }
 0x6af   : > { %v1832_v40 = vpop.f32.mrf.mxu2  ;;  %v2123_v56 = vadd.f32 %v2122_v59, %v1817_v61  ;;  %v1597_v61 = vld [vmem:[%s7510_s18 + $0x578] sm:$0xff]  ;;  %v1610_v59 = vld [vmem:[%s7510_s18 + $0x5e0] sm:$0xff] }
 0x6b3   : > { %2172 = vmatmul.f32.gmra.mxu3 %v1581_v31 }
 0x6b4   : > { %1882 = vmatmul.f32.gmra.mxu2 %v1590_v63 }
 0x6b6   : > { %v2125_v43 = vpop.f32.mrf.mxu3 }
 0x6b7   : > { %v2126_v21 = vadd.f32 %v2125_v43, %v1820_v47  ;;  %v1835_v4 = vpop.f32.mrf.mxu2  ;;  %v1612_v43 = vld [vmem:[%s7510_s18 + $0x5f0] sm:$0xff] }
 0x6b9   : > { %2284 = vmatpush.msra.mxu1 %v2126_v21 }
 0x6bb   : > { %2175 = vmatmul.f32.gmra.mxu3 %v1583_v12  ;;  %2285 = vmatpush.msra.mxu1 %v2123_v56  ;;  %v1607_v12 = vld [vmem:[%s7510_s18 + $0x5c8] sm:$0xff] }
 0x6bc   : > { %1885 = vmatmul.f32.gmra.mxu2 %v1592_v0 }
 0x6bd   : > { %2286 = vmatpush.msra.mxu1 %v2120_v1  ;;  %v1609_v1 = vld [vmem:[%s7510_s18 + $0x5d8] sm:$0xff] }
 0x6be   : > { %v2128_v6 = vpop.f32.mrf.mxu3 }
 0x6bf   : > { %v8485_v3 = vadd.f32 %v2128_v6, %v1823_v48  ;;  %2287 = vmatpush.msra.mxu1 %v2117_v38  ;;  %v1838_v29 = vpop.f32.mrf.mxu2  ;;  %v1611_v6 = vld [vmem:[%s7510_s18 + $0x5e8] sm:$0xff] }
 0x6c1   : > { %2288 = vmatpush.msra.mxu1 %v2114_v17 }
 0x6c3   : > { %2178 = vmatmul.f32.gmra.mxu3 %v1585_v53  ;;  %2289 = vmatpush.msra.mxu1 %v2111_v7  ;;  %v1613_v53 = vld [vmem:[%s7510_s18 + $0x5f8] sm:$0xff] }
 0x6c4   : > { %1888 = vmatmul.f32.gmra.mxu2 %v1594_v20 }
 0x6c5   : > { %2290 = vmatpush.msra.mxu1 %v2108_v55 }
 0x6c6   : > { %v2131_v5 = vpop.f32.mrf.mxu3 }
 0x6c7   : > { %v8491_v54 = vadd.f32 %v2131_v5, %v1826_v34  ;;  %2291 = vmatpush.msra.mxu1 %v8467_v33  ;;  %v1841_v14 = vpop.f32.mrf.mxu2 }
 0x6c9   : > { %2292 = vmatpush.msra.mxu1 %v8463_v23 }
 0x6cb   : > { %2181 = vmatmul.f32.gmra.mxu3 %v1587_v30  ;;  %2293 = vmatpush.msra.mxu1 %v8457_v13 }
 0x6cc   : > { %1891 = vmatmul.f32.gmra.mxu2 %v1596_v19 }
 0x6cd   : > { %2294 = vmatpush.msra.mxu1 %v8451_v15 }
 0x6ce   : > { %v2134_v57 = vpop.f32.mrf.mxu3 }
 0x6cf   : > { %v8499_v25 = vadd.f32 %v2134_v57, %v1829_v52  ;;  %2295 = vmatpush.msra.mxu1 %v8447_v39  ;;  %v1844_v23 = vpop.f32.mrf.mxu2  ;;  %v1591_v39 = vld [vmem:[%s7510_s18 + $0x548] sm:$0xff] }
 0x6d1   : > { %2296 = vmatpush.msra.mxu1 %v8441_v9  ;;  %v1598_v9 = vld [vmem:[%s7510_s18 + $0x580] sm:$0xff] }
 0x6d3   : > { %2184 = vmatmul.f32.gmra.mxu3 %v1589_v35  ;;  %2297 = vmatpush.msra.mxu1 %v8433_v50 }
 0x6d4   : > { %1894 = vmatmul.f32.gmra.mxu2 %v1598_v9 }
 0x6d5   : > { %2298 = vmatpush.msra.mxu1 %v8425_v11  ;;  %v1593_v11 = vld [vmem:[%s7510_s18 + $0x558] sm:$0xff] }
 0x6d6   : > { %v2137_v15 = vpop.f32.mrf.mxu3 }
 0x6d7   : > { %v8507_v13 = vadd.f32 %v2137_v15, %v1832_v40  ;;  %2299 = vmatpush.msra.mxu1 %v8419_v44  ;;  %v1847_v33 = vpop.f32.mrf.mxu2 }
 0x6d8   : > { %2300 = vmatmul.f32.vlgmr.msra.gmra.mxu1 %v8377_v42 }
 0x6db   : > { %2187 = vmatmul.f32.gmra.mxu3 %v1591_v39 }
 0x6dc   : > { %1897 = vmatmul.f32.gmra.mxu2 %v1600_v37 }
 0x6de   : > { %v2140_v27 = vpop.f32.mrf.mxu3 }
 0x6df   : > { %v8513_v50 = vadd.f32 %v2140_v27, %v1835_v4  ;;  %v8519_v60 = vpop.f32.mrf.mxu2 }
 0x6e3   : > { %2190 = vmatmul.f32.gmra.mxu3 %v1593_v11 }
 0x6e4   : > { %1900 = vmatmul.f32.gmra.mxu2 %v1602_v16 }
 0x6e6   : > { %v2143_v44 = vpop.f32.mrf.mxu3 }
 0x6e7   : > { %v8517_v36 = vadd.f32 %v2143_v44, %v1838_v29  ;;  %v1853_v32 = vpop.f32.mrf.mxu2 }
 0x6eb   : > { %2193 = vmatmul.f32.gmra.mxu3 %v1595_v62 }
 0x6ec   : > { %1903 = vmatmul.f32.gmra.mxu2 %v1604_v41 }
 0x6ee   : > { %v2146_v28 = vpop.f32.mrf.mxu3 }
 0x6ef   : > { %v8523_v10 = vadd.f32 %v2146_v28, %v1841_v14  ;;  %v1856_v47 = vpop.f32.mrf.mxu2 }
 0x6f3   : > { %2196 = vmatmul.f32.gmra.mxu3 %v1597_v61 }
 0x6f4   : > { %1906 = vmatmul.f32.gmra.mxu2 %v1606_v2 }
 0x6f6   : > { %v2149_v46 = vpop.f32.mrf.mxu3 }
 0x6f7   : > { %v2150_v18 = vadd.f32 %v2149_v46, %v1844_v23  ;;  %v1859_v45 = vpop.f32.mrf.mxu2 }
 0x6fb   : > { %2199 = vmatmul.f32.gmra.mxu3 %v1599_v49 }
 0x6fc   : > { %1909 = vmatmul.f32.gmra.mxu2 %v1608_v22 }
 0x6fe   : > { %v2152_v51 = vpop.f32.mrf.mxu3 }
 0x6ff   : > { %v2153_v48 = vadd.f32 %v2152_v51, %v1847_v33  ;;  %v1862_v58 = vpop.f32.mrf.mxu2 }
 0x703   : > { %2202 = vmatmul.f32.gmra.mxu3 %v1601_v24 }
 0x704   : > { %1912 = vmatmul.f32.gmra.mxu2 %v1610_v59 }
 0x706   : > { %v2155_v34 = vpop.f32.mrf.mxu3 }
 0x707   : > { %v1865_v31 = vpop.f32.mrf.mxu2  ;;  %v2156_v15 = vadd.f32 %v2155_v34, %v8519_v60 }
 0x70b   : > { %2205 = vmatmul.f32.gmra.mxu3 %v1603_v8 }
 0x70c   : > { %1915 = vmatmul.f32.gmra.mxu2 %v1612_v43  ;;  %v2261_v43 = vpop.f32.mrf.mxu1 }
 0x70e   : > { %v2158_v52 = vpop.f32.mrf.mxu3 }
 0x70f   : > { %v1868_v40 = vpop.f32.mrf.mxu2  ;;  %v2159_v19 = vadd.f32 %v2158_v52, %v1853_v32  ;;  %v1416_v52 = vld [vmem:[#allocation3] sm:$0x7f] }
 0x713   : > { %2208 = vmatmul.f32.gmra.mxu3 %v1605_v26  ;;  %v1417_v26 = vld [vmem:[#allocation3 + $0x8] sm:$0x7f] }
 0x716   : > { %v2161_v21 = vpop.f32.mrf.mxu3 }
 0x717   : > { %v1871_v63 = vpop.f32.mrf.mxu2  ;;  %v2162_v14 = vadd.f32 %v2161_v21, %v1856_v47 }
 0x71b   : > { %2211 = vmatmul.f32.gmra.mxu3 %v1607_v12  ;;  %v2345_v12 = vadd.f32 %v2261_v43, %v1417_v26 }
 0x71d   : > { %2351 = vst.msk [vmem:[#allocation3 + $0x8] sm:$0x7f] %vm1409_vm2, %v2345_v12 }
 0x71e   : > { %v2164_v56 = vpop.f32.mrf.mxu3 }
 0x71f   : > { %v1874_v17 = vpop.f32.mrf.mxu2  ;;  %v2165_v20 = vadd.f32 %v2164_v56, %v1859_v45 }
 0x723   : > { %2214 = vmatmul.f32.gmra.mxu3 %v1609_v1  ;;  %v1418_v1 = vld [vmem:[#allocation3 + $0x10] sm:$0x7f] }
 0x726   : > { %v2167_v38 = vpop.f32.mrf.mxu3 }
 0x727   : > { %v1877_v7 = vpop.f32.mrf.mxu2  ;;  %v2168_v29 = vadd.f32 %v2167_v38, %v1862_v58  ;;  %v1419_v38 = vld [vmem:[#allocation3 + $0x18] sm:$0x7f] }
 0x72b   : > { %2217 = vmatmul.f32.gmra.mxu3 %v1611_v6 }
 0x72e   : > { %v2170_v4 = vpop.f32.mrf.mxu3 }
 0x72f   : > { %v2171_v5 = vadd.f32 %v2170_v4, %v1865_v31  ;;  %v1880_v30 = vpop.f32.mrf.mxu2  ;;  %v2241_v31 = vpop.f32.mrf.mxu0 }
 0x733   : > { %2220 = vmatmul.f32.gmra.mxu3 %v1613_v53 }
 0x736   : > { %v2173_v0 = vpop.f32.mrf.mxu3 }
 0x737   : > { %v2174_v55 = vadd.f32 %v2173_v0, %v1868_v40  ;;  %v1883_v39 = vpop.f32.mrf.mxu2  ;;  %v2344_v40 = vadd.f32 %v2241_v31, %v1416_v52 }
 0x739   : > { %2304 = vmatpush.msrb.mxu0 %v2174_v55  ;;  %2350 = vst.msk [vmem:[#allocation3] sm:$0x7f] %vm1409_vm2, %v2344_v40 }
 0x73b   : > { %2305 = vmatpush.msrb.mxu0 %v2171_v5  ;;  %v1420_v5 = vld [vmem:[#allocation3 + $0x20] sm:$0x7f] }
 0x73d   : > { %2306 = vmatpush.msrb.mxu0 %v2168_v29 }
 0x73e   : > { %v2176_v57 = vpop.f32.mrf.mxu3 }
 0x73f   : > { %v8539_v35 = vadd.f32 %v2176_v57, %v1871_v63  ;;  %2307 = vmatpush.msrb.mxu0 %v2165_v20  ;;  %v1886_v11 = vpop.f32.mrf.mxu2  ;;  %v1421_v20 = vld [vmem:[#allocation3 + $0x28] sm:$0x7f] }
 0x741   : > { %2308 = vmatpush.msrb.mxu0 %v2162_v14 }
 0x743   : > { %2309 = vmatpush.msrb.mxu0 %v2159_v19 }
 0x745   : > { %2310 = vmatpush.msrb.mxu0 %v2156_v15 }
 0x746   : > { %v2179_v23 = vpop.f32.mrf.mxu3 }
 0x747   : > { %v8542_v9 = vadd.f32 %v2179_v23, %v1874_v17  ;;  %2311 = vmatpush.msrb.mxu0 %v2153_v48  ;;  %v2281_v17 = vpop.f32.mrf.mxu0 }
 0x749   : > { %2312 = vmatpush.msrb.mxu0 %v2150_v18 }
 0x74b   : > { %2313 = vmatpush.msrb.mxu0 %v8523_v10 }
 0x74d   : > { %2314 = vmatpush.msrb.mxu0 %v8517_v36  ;;  %v1889_v36 = vpop.f32.mrf.mxu2 }
 0x74e   : > { %v2182_v27 = vpop.f32.mrf.mxu3 }
 0x74f   : > { %v8546_v33 = vadd.f32 %v2182_v27, %v1877_v7  ;;  %2315 = vmatpush.msrb.mxu0 %v8513_v50  ;;  %v2346_v7 = vadd.f32 %v2281_v17, %v1418_v1 }
 0x751   : > { %2316 = vmatpush.msrb.mxu0 %v8507_v13  ;;  %2352 = vst.msk [vmem:[#allocation3 + $0x10] sm:$0x7f] %vm1409_vm2, %v2346_v7 }
 0x753   : > { %2317 = vmatpush.msrb.mxu0 %v8499_v25 }
 0x755   : > { %2318 = vmatpush.msrb.mxu0 %v8491_v54  ;;  %v1892_v16 = vpop.f32.mrf.mxu2  ;;  %v2301_v4 = vpop.f32.mrf.mxu1 }
 0x756   : > { %v2185_v37 = vpop.f32.mrf.mxu3  ;;  %v2347_v0 = vadd.f32 %v2301_v4, %v1419_v38 }
 0x757   : > { %v8552_v44 = vadd.f32 %v2185_v37, %v1880_v30  ;;  %2319 = vmatpush.msrb.mxu0 %v8485_v3 }
 0x758   : > { %2320 = vmatmul.f32.vlgmr.msrb.gmra.mxu0 %v8377_v42  ;;  %2353 = vst.msk [vmem:[#allocation3 + $0x18] sm:$0x7f] %vm1409_vm2, %v2347_v0 }
 0x75d   : > { %v1895_v32 = vpop.f32.mrf.mxu2 }
 0x75e   : > { %v2188_v60 = vpop.f32.mrf.mxu3 }
 0x75f   : > { %v2189_v62 = vadd.f32 %v2188_v60, %v1883_v39 }
 0x765   : > { %v1898_v41 = vpop.f32.mrf.mxu2 }
 0x766   : > { %v2191_v28 = vpop.f32.mrf.mxu3 }
 0x767   : > { %v2192_v50 = vadd.f32 %v2191_v28, %v1886_v11 }
 0x76d   : > { %v1901_v18 = vpop.f32.mrf.mxu2 }
 0x76e   : > { %v2194_v10 = vpop.f32.mrf.mxu3 }
 0x76f   : > { %v2195_v13 = vadd.f32 %v2194_v10, %v1889_v36 }
 0x775   : > { %v1904_v49 = vpop.f32.mrf.mxu2 }
 0x776   : > { %v2197_v61 = vpop.f32.mrf.mxu3 }
 0x777   : > { %v2198_v25 = vadd.f32 %v2197_v61, %v1892_v16 }
 0x77d   : > { %v1907_v51 = vpop.f32.mrf.mxu2 }
 0x77e   : > { %v2200_v54 = vpop.f32.mrf.mxu3 }
 0x77f   : > { %v2201_v46 = vadd.f32 %v2200_v54, %v1895_v32 }
 0x785   : > { %v1910_v45 = vpop.f32.mrf.mxu2 }
 0x786   : > { %v2203_v47 = vpop.f32.mrf.mxu3 }
 0x787   : > { %v2204_v55 = vadd.f32 %v2203_v47, %v1898_v41 }
 0x78d   : > { %v1913_v22 = vpop.f32.mrf.mxu2 }
 0x78e   : > { %v2206_v3 = vpop.f32.mrf.mxu3 }
 0x78f   : > { %v2207_v53 = vadd.f32 %v2206_v3, %v1901_v18 }
 0x795   : > { %v1916_v58 = vpop.f32.mrf.mxu2 }
 0x796   : > { %v2209_v2 = vpop.f32.mrf.mxu3 }
 0x797   : > { %v2210_v6 = vadd.f32 %v2209_v2, %v1904_v49 }
 0x79e   : > { %v2212_v48 = vpop.f32.mrf.mxu3 }
 0x79f   : > { %v2213_v63 = vadd.f32 %v2212_v48, %v1907_v51 }
 0x7a6   : > { %v2215_v24 = vpop.f32.mrf.mxu3 }
 0x7a7   : > { %v2216_v56 = vadd.f32 %v2215_v24, %v1910_v45 }
 0x7ae   : > { %v2218_v34 = vpop.f32.mrf.mxu3 }
 0x7af   : > { %v2219_v21 = vadd.f32 %v2218_v34, %v1913_v22 }
 0x7b6   : > { %v2221_v8 = vpop.f32.mrf.mxu3 }
 0x7b7   : > { %v2222_v59 = vadd.f32 %v2221_v8, %v1916_v58 }
 0x7b9   : > { %2324 = vmatpush.msrb.mxu1 %v2222_v59 }
 0x7bb   : > { %2325 = vmatpush.msrb.mxu1 %v2219_v21 }
 0x7bd   : > { %2326 = vmatpush.msrb.mxu1 %v2216_v56 }
 0x7bf   : > { %2327 = vmatpush.msrb.mxu1 %v2213_v63 }
 0x7c1   : > { %2328 = vmatpush.msrb.mxu1 %v2210_v6 }
 0x7c3   : > { %2329 = vmatpush.msrb.mxu1 %v2207_v53 }
 0x7c5   : > { %2330 = vmatpush.msrb.mxu1 %v2204_v55 }
 0x7c7   : > { %2331 = vmatpush.msrb.mxu1 %v2201_v46 }
 0x7c9   : > { %2332 = vmatpush.msrb.mxu1 %v2198_v25 }
 0x7cb   : > { %2333 = vmatpush.msrb.mxu1 %v2195_v13 }
 0x7cd   : > { %2334 = vmatpush.msrb.mxu1 %v2192_v50 }
 0x7cf   : > { %2335 = vmatpush.msrb.mxu1 %v2189_v62 }
 0x7d1   : > { %2336 = vmatpush.msrb.mxu1 %v8552_v44 }
 0x7d3   : > { %2337 = vmatpush.msrb.mxu1 %v8546_v33 }
 0x7d5   : > { %2338 = vmatpush.msrb.mxu1 %v8542_v9  ;;  %v2321_v29 = vpop.f32.mrf.mxu0 }
 0x7d6   : > { %v2348_v30 = vadd.f32 %v2321_v29, %v1420_v5 }
 0x7d7   : > { %2339 = vmatpush.msrb.mxu1 %v8539_v35 }
 0x7d8   : > { %2340 = vmatmul.f32.vlgmr.msrb.gmra.mxu1 %v8377_v42  ;;  %2354 = vst.msk [vmem:[#allocation3 + $0x20] sm:$0x7f] %vm1409_vm2, %v2348_v30 }
 0x854   : > { %2359 = sbr.rel (%p6674_p4) target bundleno = 2894 (0xb4e), region = 72 }
 0x855   : > { %v2341_v57 = vpop.f32.mrf.mxu1 }
 0x856   : > { %v2349_v14 = vadd.f32 %v2341_v57, %v1421_v20 }
 0x858   : > { %2355 = vst.msk [vmem:[#allocation3 + $0x28] sm:$0x7f] %vm1409_vm2, %v2349_v14 }
 0x859   : > { %v8568_v19 = vld [vmem:[#allocation7 + $0x20] sm:$0x7f]  ;;  %vm2459_vm3 = vcmask 1046528   ;;  %v8570_v15 = vld [vmem:[#allocation7 + $0x28] sm:$0x7f]  ;;  %vm2454_vm4 = vcmask 1041409  }
 0x85a   : > { %6675 = vmatpush.msk.msra.mxu0 %vm2459_vm3, %v8568_v19  ;;  %6677 = vmatpush.msk.msra.mxu1 %vm2459_vm3, %v8570_v15  ;;  %v8576_v42 = vld [vmem:[#allocation7 + $0x30] sm:$0x7f]  ;;  %v8578_v35 = vld [vmem:[#allocation7 + $0x38] sm:$0x7f]  ;;  %v8586_v39 = vld [vmem:[#allocation2 + $0x18] sm:$0x7f] }
 0x85b   : > { %v8580_v23 = vld [vmem:[#allocation2] sm:$0x7f]  ;;  %6679 = vmatpush.msk.msra.mxu2 %vm2459_vm3, %v8576_v42  ;;  %6681 = vmatpush.msk.msra.mxu3 %vm2459_vm3, %v8578_v35  ;;  %vm2456_vm5 = vcmask 56320   ;;  %v8593_v33 = vld [vmem:[#allocation7 + $0x18] sm:$0x7f]  ;;  %v2552_v16 = vrot.slane %v8586_v39, 7 }
 0x85c   : > { %v2453_v9 = vrot.slane %v8580_v23, 1  ;;  %v8589_v27 = vld [vmem:[#allocation7 + $0x10] sm:$0x7f]  ;;  %v8595_v11 = vld [vmem:[#allocation7] sm:$0x7f]  ;;  %v2648_v25 = vrot.slane %v8580_v23, 2 }
 0x85d   : > { %6687 = vmatpush.msk.msrb.mxu2 %vm2459_vm3, %v8589_v27  ;;  %6689 = vmatpush.msk.msrb.mxu3 %vm2459_vm3, %v8593_v33  ;;  %v8603_v44 = vld [vmem:[#allocation7 + $0x8] sm:$0x7f]  ;;  %v8605_v36 = vld [vmem:[#allocation7 + $0x50] sm:$0x7f]  ;;  %v8609_v60 = vld [vmem:[#allocation7 + $0x58] sm:$0x7f]  ;;  %v2553_v50 = vsel %vm2454_vm4, %v2552_v16, %v8580_v23 }
 0x85e   : > { %v2455_v37 = vsel %vm2454_vm4, %v8586_v39, %v2453_v9  ;;  %6683 = vmatpush.msk.msrb.mxu0 %vm2459_vm3, %v8595_v11  ;;  %v8611_v62 = vld [vmem:[#allocation7 + $0x40] sm:$0x7f]  ;;  %v8616_v28 = vld [vmem:[#allocation7 + $0x48] sm:$0x7f]  ;;  %6685 = vmatpush.msk.msrb.mxu1 %vm2459_vm3, %v8603_v44  ;;  %v8630_v10 = vld [vmem:[#allocation7 + $0x70] sm:$0x7f] }
 0x85f   : > { %6676 = vmatmul.msk.f32.vlgmr.msra.gmra.mxu0 %vm2456_vm5, %v2455_v37  ;;  %6678 = vmatmul.msk.f32.vlgmr.msra.gmra.mxu1 %vm2456_vm5, %v2455_v37  ;;  %v8632_v32 = vld [vmem:[#allocation7 + $0x78] sm:$0x7f]  ;;  %v8636_v13 = vld [vmem:[#allocation7 + $0x60] sm:$0x7f]  ;;  %v8638_v61 = vld [vmem:[#allocation7 + $0x68] sm:$0x7f] }
 0x860   : > { %6680 = vmatmul.msk.f32.vlgmr.msra.gmra.mxu2 %vm2456_vm5, %v2455_v37  ;;  %6682 = vmatmul.msk.f32.vlgmr.msra.gmra.mxu3 %vm2456_vm5, %v2455_v37  ;;  %v2649_v41 = vrot.slane %v8586_v39, 1  ;;  %v8653_v46 = vld [vmem:[#allocation7 + $0x90] sm:$0x7f]  ;;  %v8655_v18 = vld [vmem:[#allocation7 + $0x98] sm:$0x7f]  ;;  %v2749_v3 = vrot.slane %v8580_v23, 3 }
 0x861   : > { %6695 = vmatpush.msk.msra.mxu2 %vm2459_vm3, %v8605_v36  ;;  %6697 = vmatpush.msk.msra.mxu3 %vm2459_vm3, %v8609_v60  ;;  %v8659_v47 = vld [vmem:[#allocation7 + $0x80] sm:$0x7f]  ;;  %v8661_v49 = vld [vmem:[#allocation7 + $0x88] sm:$0x7f]  ;;  %v2750_v2 = vrot.slane %v8586_v39, 2  ;;  %v2850_v34 = vrot.slane %v8580_v23, 4 }
 0x862   : > { %6691 = vmatpush.msk.msra.mxu0 %vm2459_vm3, %v8611_v62  ;;  %6693 = vmatpush.msk.msra.mxu1 %vm2459_vm3, %v8616_v28  ;;  %v2650_v54 = vsel %vm2454_vm4, %v2649_v41, %v2648_v25  ;;  %v8676_v48 = vld [vmem:[#allocation7 + $0xb0] sm:$0x7f]  ;;  %v8678_v45 = vld [vmem:[#allocation7 + $0xb8] sm:$0x7f]  ;;  %v8682_v24 = vld [vmem:[#allocation7 + $0xa0] sm:$0x7f] }
 0x863   : > { %v2751_v51 = vsel %vm2454_vm4, %v2750_v2, %v2749_v3  ;;  %v8684_v22 = vld [vmem:[#allocation7 + $0xa8] sm:$0x7f]  ;;  %v2851_v58 = vrot.slane %v8586_v39, 3  ;;  %v8699_v59 = vld [vmem:[#allocation7 + $0xd0] sm:$0x7f]  ;;  %v2951_v43 = vrot.slane %v8580_v23, 5 }
 0x864   : > { %v8701_v52 = vld [vmem:[#allocation7 + $0xd8] sm:$0x7f]  ;;  %v8705_v31 = vld [vmem:[#allocation7 + $0xc0] sm:$0x7f]  ;;  %v8707_v26 = vld [vmem:[#allocation7 + $0xc8] sm:$0x7f] }
 0x865   : > { %v2852_v8 = vsel %vm2454_vm4, %v2851_v58, %v2850_v34  ;;  %v2952_v21 = vrot.slane %v8586_v39, 4  ;;  %v8722_v12 = vld [vmem:[#allocation7 + $0xf0] sm:$0x7f]  ;;  %v8724_v56 = vld [vmem:[#allocation7 + $0xf8] sm:$0x7f]  ;;  %v3052_v38 = vrot.slane %v8580_v23, 6 }
 0x866   : > { %v8728_v63 = vld [vmem:[#allocation7 + $0xe0] sm:$0x7f]  ;;  %v8730_v1 = vld [vmem:[#allocation7 + $0xe8] sm:$0x7f]  ;;  %v3053_v6 = vrot.slane %v8586_v39, 5  ;;  %vm4584_vm6 = vcmask 1041408  }
 0x867   : > { %6684 = vmatmul.msk.f32.vlgmr.msrb.gmra.mxu0 %vm2456_vm5, %v2553_v50  ;;  %6686 = vmatmul.msk.f32.vlgmr.msrb.gmra.mxu1 %vm2456_vm5, %v2553_v50  ;;  %v2953_v40 = vsel %vm2454_vm4, %v2952_v21, %v2951_v43  ;;  %v8745_v4 = vld [vmem:[#allocation2 + $0x20] sm:$0x7f]  ;;  %v8749_v7 = vld [vmem:[#allocation7 + $0x118] sm:$0x7f]  ;;  %v8753_v0 = vld [vmem:[#allocation7 + $0x100] sm:$0x7f] }
 0x868   : > { %6688 = vmatmul.msk.f32.vlgmr.msrb.gmra.mxu2 %vm2456_vm5, %v2553_v50  ;;  %6690 = vmatmul.msk.f32.vlgmr.msrb.gmra.mxu3 %vm2456_vm5, %v2553_v50  ;;  %v3054_v17 = vsel %vm2454_vm4, %v3053_v6, %v3052_v38  ;;  %v8747_v53 = vld [vmem:[#allocation7 + $0x110] sm:$0x7f]  ;;  %v8755_v55 = vld [vmem:[#allocation7 + $0x108] sm:$0x7f]  ;;  %v3155_v5 = vrot.slane %v8745_v4, 7  ;;  %v3457_v43 = vrot.slane %v8745_v4, 2 }
 0x869   : > { %6703 = vmatpush.msk.msrb.mxu2 %vm2459_vm3, %v8630_v10  ;;  %6705 = vmatpush.msk.msrb.mxu3 %vm2459_vm3, %v8632_v32  ;;  %v8760_v29 = vld [vmem:[#allocation2 + $0x8] sm:$0x7f]  ;;  %v8772_v20 = vld [vmem:[#allocation7 + $0x130] sm:$0x7f]  ;;  %v8778_v14 = vld [vmem:[#allocation7 + $0x120] sm:$0x7f] }
 0x86a   : > { %6699 = vmatpush.msk.msrb.mxu0 %vm2459_vm3, %v8636_v13  ;;  %6701 = vmatpush.msk.msrb.mxu1 %vm2459_vm3, %v8638_v61  ;;  %v3156_v30 = vsel %vm2454_vm4, %v3155_v5, %v8760_v29  ;;  %v8774_v57 = vld [vmem:[#allocation7 + $0x138] sm:$0x7f]  ;;  %v8780_v23 = vld [vmem:[#allocation7 + $0x128] sm:$0x7f]  ;;  %v3255_v39 = vrot.slane %v8760_v29, 1  ;;  %v3355_v41 = vrot.slane %v8760_v29, 2 }
 0x86b   : > { %v8795_v37 = vld [vmem:[#allocation7 + $0x150] sm:$0x7f]  ;;  %v8797_v16 = vld [vmem:[#allocation7 + $0x158] sm:$0x7f]  ;;  %v8801_v50 = vld [vmem:[#allocation7 + $0x140] sm:$0x7f] }
 0x86c   : > { %v3256_v9 = vsel %vm2454_vm4, %v8745_v4, %v3255_v39  ;;  %9647 = vst [vmem:[#allocation24_spill] sm:$0xff] %v8797_v16  ;;  %v8803_v25 = vld [vmem:[#allocation7 + $0x148] sm:$0x7f]  ;;  %v8818_v2 = vld [vmem:[#allocation7 + $0x170] sm:$0x7f]  ;;  %v3557_v5 = vrot.slane %v8760_v29, 4 }
 0x86d   : > { %9648 = vst [vmem:[#allocation25_spill] sm:$0xff] %v8801_v50  ;;  %v8824_v34 = vld [vmem:[#allocation7 + $0x160] sm:$0x7f]  ;;  %v8826_v58 = vld [vmem:[#allocation7 + $0x168] sm:$0x7f]  ;;  %vm6529_vm13 = vcmask 0  }
 0x86e   : > { %9649 = vst [vmem:[#allocation26_spill] sm:$0xff] %v8803_v25  ;;  %v8843_v38 = vld [vmem:[#allocation7 + $0x198] sm:$0x7f]  ;;  %v8847_v6 = vld [vmem:[#allocation7 + $0x180] sm:$0x7f] }
 0x86f   : > { %6692 = vmatmul.msk.f32.vlgmr.msra.gmra.mxu0 %vm2456_vm5, %v2650_v54  ;;  %6694 = vmatmul.msk.f32.vlgmr.msra.gmra.mxu1 %vm2456_vm5, %v2650_v54  ;;  %9650 = vst [vmem:[#allocation27_spill] sm:$0xff] %v8818_v2 }
 0x870   : > { %6696 = vmatmul.msk.f32.vlgmr.msra.gmra.mxu2 %vm2456_vm5, %v2650_v54  ;;  %6698 = vmatmul.msk.f32.vlgmr.msra.gmra.mxu3 %vm2456_vm5, %v2650_v54  ;;  %v3356_v54 = vrot.slane %v8745_v4, 1  ;;  %9652 = vst [vmem:[#allocation29_spill] sm:$0xff] %v8824_v34 }
 0x871   : > { %6711 = vmatpush.msk.msra.mxu2 %vm2459_vm3, %v8653_v46  ;;  %6713 = vmatpush.msk.msra.mxu3 %vm2459_vm3, %v8655_v18  ;;  %9653 = vst [vmem:[#allocation30_spill] sm:$0xff] %v8826_v58 }
 0x872   : > { %6707 = vmatpush.msk.msra.mxu0 %vm2459_vm3, %v8659_v47  ;;  %6709 = vmatpush.msk.msra.mxu1 %vm2459_vm3, %v8661_v49  ;;  %v3357_v3 = vsel %vm2454_vm4, %v3356_v54, %v3355_v41  ;;  %9655 = vst [vmem:[#allocation32_spill] sm:$0xff] %v8843_v38  ;;  %v8866_v41 = vld [vmem:[#allocation7 + $0x1b8] sm:$0x7f]  ;;  %v8870_v54 = vld [vmem:[#allocation7 + $0x1a0] sm:$0x7f] }
 0x873   : > { %9656 = vst [vmem:[#allocation33_spill] sm:$0xff] %v8847_v6 }
 0x874   : > { %9659 = vst [vmem:[#allocation36_spill] sm:$0xff] %v8866_v41 }
 0x875   : > { %9660 = vst [vmem:[#allocation37_spill] sm:$0xff] %v8870_v54 }
 0x877   : > { %6700 = vmatmul.msk.f32.vlgmr.msrb.gmra.mxu0 %vm2456_vm5, %v2751_v51  ;;  %6702 = vmatmul.msk.f32.vlgmr.msrb.gmra.mxu1 %vm2456_vm5, %v2751_v51 }
 0x878   : > { %6704 = vmatmul.msk.f32.vlgmr.msrb.gmra.mxu2 %vm2456_vm5, %v2751_v51  ;;  %6706 = vmatmul.msk.f32.vlgmr.msrb.gmra.mxu3 %vm2456_vm5, %v2751_v51  ;;  %v8820_v51 = vld [vmem:[#allocation7 + $0x178] sm:$0x7f] }
 0x879   : > { %6719 = vmatpush.msk.msrb.mxu2 %vm2459_vm3, %v8676_v48  ;;  %6721 = vmatpush.msk.msrb.mxu3 %vm2459_vm3, %v8678_v45  ;;  %9651 = vst [vmem:[#allocation28_spill] sm:$0xff] %v8820_v51 }
 0x87a   : > { %6715 = vmatpush.msk.msrb.mxu0 %vm2459_vm3, %v8682_v24  ;;  %6717 = vmatpush.msk.msrb.mxu1 %vm2459_vm3, %v8684_v22 }
 0x87f   : > { %6708 = vmatmul.msk.f32.vlgmr.msra.gmra.mxu0 %vm2456_vm5, %v2852_v8  ;;  %6710 = vmatmul.msk.f32.vlgmr.msra.gmra.mxu1 %vm2456_vm5, %v2852_v8 }
 0x880   : > { %6712 = vmatmul.msk.f32.vlgmr.msra.gmra.mxu2 %vm2456_vm5, %v2852_v8  ;;  %6714 = vmatmul.msk.f32.vlgmr.msra.gmra.mxu3 %vm2456_vm5, %v2852_v8  ;;  %v3456_v8 = vrot.slane %v8760_v29, 3 }
 0x881   : > { %6727 = vmatpush.msk.msra.mxu2 %vm2459_vm3, %v8699_v59  ;;  %6729 = vmatpush.msk.msra.mxu3 %vm2459_vm3, %v8701_v52 }
 0x882   : > { %6723 = vmatpush.msk.msra.mxu0 %vm2459_vm3, %v8705_v31  ;;  %6725 = vmatpush.msk.msra.mxu1 %vm2459_vm3, %v8707_v26  ;;  %v3458_v21 = vsel %vm2454_vm4, %v3457_v43, %v3456_v8  ;;  %v3658_v8 = vrot.slane %v8760_v29, 5  ;;  %v3659_v43 = vrot.slane %v8745_v4, 4 }
 0x887   : > { %6716 = vmatmul.msk.f32.vlgmr.msrb.gmra.mxu0 %vm2456_vm5, %v2953_v40  ;;  %6718 = vmatmul.msk.f32.vlgmr.msrb.gmra.mxu1 %vm2456_vm5, %v2953_v40 }
 0x888   : > { %6720 = vmatmul.msk.f32.vlgmr.msrb.gmra.mxu2 %vm2456_vm5, %v2953_v40  ;;  %6722 = vmatmul.msk.f32.vlgmr.msrb.gmra.mxu3 %vm2456_vm5, %v2953_v40  ;;  %v8841_v40 = vld [vmem:[#allocation7 + $0x190] sm:$0x7f] }
 0x889   : > { %6735 = vmatpush.msk.msrb.mxu2 %vm2459_vm3, %v8722_v12  ;;  %6737 = vmatpush.msk.msrb.mxu3 %vm2459_vm3, %v8724_v56  ;;  %9654 = vst [vmem:[#allocation31_spill] sm:$0xff] %v8841_v40 }
 0x88a   : > { %6731 = vmatpush.msk.msrb.mxu0 %vm2459_vm3, %v8728_v63  ;;  %6733 = vmatpush.msk.msrb.mxu1 %vm2459_vm3, %v8730_v1 }
 0x88f   : > { %6724 = vmatmul.msk.f32.vlgmr.msra.gmra.mxu0 %vm2456_vm5, %v3054_v17  ;;  %6726 = vmatmul.msk.f32.vlgmr.msra.gmra.mxu1 %vm2456_vm5, %v3054_v17 }
 0x890   : > { %6728 = vmatmul.msk.f32.vlgmr.msra.gmra.mxu2 %vm2456_vm5, %v3054_v17  ;;  %6730 = vmatmul.msk.f32.vlgmr.msra.gmra.mxu3 %vm2456_vm5, %v3054_v17  ;;  %v8849_v17 = vld [vmem:[#allocation7 + $0x188] sm:$0x7f] }
 0x891   : > { %6743 = vmatpush.msk.msra.mxu2 %vm2459_vm3, %v8747_v53  ;;  %6745 = vmatpush.msk.msra.mxu3 %vm2459_vm3, %v8749_v7  ;;  %9657 = vst [vmem:[#allocation34_spill] sm:$0xff] %v8849_v17 }
 0x892   : > { %6739 = vmatpush.msk.msra.mxu0 %vm2459_vm3, %v8753_v0  ;;  %6741 = vmatpush.msk.msra.mxu1 %vm2459_vm3, %v8755_v55 }
 0x897   : > { %6732 = vmatmul.msk.f32.vlgmr.msrb.gmra.mxu0 %vm2456_vm5, %v3156_v30  ;;  %6734 = vmatmul.msk.f32.vlgmr.msrb.gmra.mxu1 %vm2456_vm5, %v3156_v30 }
 0x898   : > { %6736 = vmatmul.msk.f32.vlgmr.msrb.gmra.mxu2 %vm2456_vm5, %v3156_v30  ;;  %6738 = vmatmul.msk.f32.vlgmr.msrb.gmra.mxu3 %vm2456_vm5, %v3156_v30  ;;  %v3558_v30 = vrot.slane %v8745_v4, 3 }
 0x899   : > { %6751 = vmatpush.msk.msrb.mxu2 %vm2459_vm3, %v8772_v20  ;;  %6753 = vmatpush.msk.msrb.mxu3 %vm2459_vm3, %v8774_v57 }
 0x89a   : > { %6747 = vmatpush.msk.msrb.mxu0 %vm2459_vm3, %v8778_v14  ;;  %6749 = vmatpush.msk.msrb.mxu1 %vm2459_vm3, %v8780_v23  ;;  %v3559_v39 = vsel %vm2454_vm4, %v3558_v30, %v3557_v5  ;;  %v8887_v5 = vld [vmem:[#allocation7 + $0x1d0] sm:$0x7f]  ;;  %v8889_v30 = vld [vmem:[#allocation7 + $0x1d8] sm:$0x7f] }
 0x89b   : > { %9662 = vst [vmem:[#allocation39_spill] sm:$0xff] %v8887_v5 }
 0x89c   : > { %9663 = vst [vmem:[#allocation40_spill] sm:$0xff] %v8889_v30 }
 0x89f   : > { %6740 = vmatmul.msk.f32.vlgmr.msra.gmra.mxu0 %vm2456_vm5, %v3256_v9  ;;  %6742 = vmatmul.msk.f32.vlgmr.msra.gmra.mxu1 %vm2456_vm5, %v3256_v9 }
 0x8a0   : > { %6744 = vmatmul.msk.f32.vlgmr.msra.gmra.mxu2 %vm2456_vm5, %v3256_v9  ;;  %6746 = vmatmul.msk.f32.vlgmr.msra.gmra.mxu3 %vm2456_vm5, %v3256_v9  ;;  %v8864_v9 = vld [vmem:[#allocation7 + $0x1b0] sm:$0x7f] }
 0x8a1   : > { %6759 = vmatpush.msk.msra.mxu2 %vm2459_vm3, %v8795_v37  ;;  %6761 = vmatpush.msk.msra.mxu3 %vm2459_vm3, %v8797_v16  ;;  %9658 = vst [vmem:[#allocation35_spill] sm:$0xff] %v8864_v9 }
 0x8a2   : > { %6755 = vmatpush.msk.msra.mxu0 %vm2459_vm3, %v8801_v50  ;;  %6757 = vmatpush.msk.msra.mxu1 %vm2459_vm3, %v8803_v25  ;;  %v9043_v50 = vld [vmem:[#allocation7 + $0x298] sm:$0x7f] }
 0x8a7   : > { %6748 = vmatmul.msk.f32.vlgmr.msrb.gmra.mxu0 %vm2456_vm5, %v3357_v3  ;;  %6750 = vmatmul.msk.f32.vlgmr.msrb.gmra.mxu1 %vm2456_vm5, %v3357_v3 }
 0x8a8   : > { %6752 = vmatmul.msk.f32.vlgmr.msrb.gmra.mxu2 %vm2456_vm5, %v3357_v3  ;;  %6754 = vmatmul.msk.f32.vlgmr.msrb.gmra.mxu3 %vm2456_vm5, %v3357_v3  ;;  %v8872_v3 = vld [vmem:[#allocation7 + $0x1a8] sm:$0x7f] }
 0x8a9   : > { %6767 = vmatpush.msk.msrb.mxu2 %vm2459_vm3, %v8818_v2  ;;  %6769 = vmatpush.msk.msrb.mxu3 %vm2459_vm3, %v8820_v51  ;;  %9661 = vst [vmem:[#allocation38_spill] sm:$0xff] %v8872_v3 }
 0x8aa   : > { %6763 = vmatpush.msk.msrb.mxu0 %vm2459_vm3, %v8824_v34  ;;  %6765 = vmatpush.msk.msrb.mxu1 %vm2459_vm3, %v8826_v58 }
 0x8af   : > { %6756 = vmatmul.msk.f32.vlgmr.msra.gmra.mxu0 %vm2456_vm5, %v3458_v21  ;;  %6758 = vmatmul.msk.f32.vlgmr.msra.gmra.mxu1 %vm2456_vm5, %v3458_v21 }
 0x8b0   : > { %6760 = vmatmul.msk.f32.vlgmr.msra.gmra.mxu2 %vm2456_vm5, %v3458_v21  ;;  %6762 = vmatmul.msk.f32.vlgmr.msra.gmra.mxu3 %vm2456_vm5, %v3458_v21  ;;  %v3660_v21 = vsel %vm2454_vm4, %v3659_v43, %v3658_v8  ;;  %v3760_v8 = vrot.slane %v8745_v4, 5  ;;  %v8918_v4 = vld [vmem:[#allocation7 + $0x1e0] sm:$0x7f] }
 0x8b1   : > { %6775 = vmatpush.msk.msra.mxu2 %vm2459_vm3, %v8841_v40  ;;  %6777 = vmatpush.msk.msra.mxu3 %vm2459_vm3, %v8843_v38  ;;  %9668 = vst [vmem:[#allocation45_spill] sm:$0xff] %v8918_v4  ;;  %v9014_v40 = vld [vmem:[#allocation7 + $0x270] sm:$0x7f] }
 0x8b2   : > { %6771 = vmatpush.msk.msra.mxu0 %vm2459_vm3, %v8847_v6  ;;  %6773 = vmatpush.msk.msra.mxu1 %vm2459_vm3, %v8849_v17  ;;  %v8989_v17 = vld [vmem:[#allocation7 + $0x258] sm:$0x7f]  ;;  %9682 = vst [vmem:[#allocation59_spill] sm:$0xff] %v9014_v40 }
 0x8b3   : > { %9679 = vst [vmem:[#allocation56_spill] sm:$0xff] %v8989_v17 }
 0x8b7   : > { %6764 = vmatmul.msk.f32.vlgmr.msrb.gmra.mxu0 %vm2456_vm5, %v3559_v39  ;;  %6766 = vmatmul.msk.f32.vlgmr.msrb.gmra.mxu1 %vm2456_vm5, %v3559_v39 }
 0x8b8   : > { %6768 = vmatmul.msk.f32.vlgmr.msrb.gmra.mxu2 %vm2456_vm5, %v3559_v39  ;;  %6770 = vmatmul.msk.f32.vlgmr.msrb.gmra.mxu3 %vm2456_vm5, %v3559_v39  ;;  %v8893_v39 = vld [vmem:[#allocation7 + $0x1c0] sm:$0x7f] }
 0x8b9   : > { %6783 = vmatpush.msk.msrb.mxu2 %vm2459_vm3, %v8864_v9  ;;  %6785 = vmatpush.msk.msrb.mxu3 %vm2459_vm3, %v8866_v41  ;;  %9664 = vst [vmem:[#allocation41_spill] sm:$0xff] %v8893_v39  ;;  %v8895_v9 = vld [vmem:[#allocation7 + $0x1c8] sm:$0x7f]  ;;  %v8987_v41 = vld [vmem:[#allocation7 + $0x250] sm:$0x7f] }
 0x8ba   : > { %6779 = vmatpush.msk.msrb.mxu0 %vm2459_vm3, %v8870_v54  ;;  %6781 = vmatpush.msk.msrb.mxu1 %vm2459_vm3, %v8872_v3  ;;  %9665 = vst [vmem:[#allocation42_spill] sm:$0xff] %v8895_v9  ;;  %v3759_v3 = vrot.slane %v8760_v29, 6  ;;  %v8910_v54 = vld [vmem:[#allocation2 + $0x28] sm:$0x7f] }
 0x8bb   : > { %v8914_v29 = vld [vmem:[#allocation7 + $0x1f8] sm:$0x7f]  ;;  %9678 = vst [vmem:[#allocation55_spill] sm:$0xff] %v8987_v41 }
 0x8bc   : > { %v3761_v43 = vsel %vm2454_vm4, %v3760_v8, %v3759_v3  ;;  %9667 = vst [vmem:[#allocation44_spill] sm:$0xff] %v8914_v29  ;;  %v3862_v3 = vrot.slane %v8910_v54, 7  ;;  %v8925_v8 = vld [vmem:[#allocation2 + $0x10] sm:$0x7f] }
 0x8bf   : > { %6772 = vmatmul.msk.f32.vlgmr.msra.gmra.mxu0 %vm2456_vm5, %v3660_v21  ;;  %6774 = vmatmul.msk.f32.vlgmr.msra.gmra.mxu1 %vm2456_vm5, %v3660_v21 }
 0x8c0   : > { %6776 = vmatmul.msk.f32.vlgmr.msra.gmra.mxu2 %vm2456_vm5, %v3660_v21  ;;  %6778 = vmatmul.msk.f32.vlgmr.msra.gmra.mxu3 %vm2456_vm5, %v3660_v21  ;;  %v8912_v21 = vld [vmem:[#allocation7 + $0x1f0] sm:$0x7f] }
 0x8c1   : > { %6791 = vmatpush.msk.msra.mxu2 %vm2459_vm3, %v8887_v5  ;;  %6793 = vmatpush.msk.msra.mxu3 %vm2459_vm3, %v8889_v30  ;;  %9666 = vst [vmem:[#allocation43_spill] sm:$0xff] %v8912_v21  ;;  %v8920_v30 = vld [vmem:[#allocation7 + $0x1e8] sm:$0x7f] }
 0x8c2   : > { %6787 = vmatpush.msk.msra.mxu0 %vm2459_vm3, %v8893_v39  ;;  %6789 = vmatpush.msk.msra.mxu1 %vm2459_vm3, %v8895_v9  ;;  %9669 = vst [vmem:[#allocation46_spill] sm:$0xff] %v8920_v30  ;;  %v3863_v9 = vsel %vm2454_vm4, %v3862_v3, %v8925_v8  ;;  %v8939_v39 = vld [vmem:[#allocation7 + $0x218] sm:$0x7f] }
 0x8c3   : > { %9671 = vst [vmem:[#allocation48_spill] sm:$0xff] %v8939_v39 }
 0x8c7   : > { %6780 = vmatmul.msk.f32.vlgmr.msrb.gmra.mxu0 %vm2456_vm5, %v3761_v43  ;;  %6782 = vmatmul.msk.f32.vlgmr.msrb.gmra.mxu1 %vm2456_vm5, %v3761_v43 }
 0x8c8   : > { %6784 = vmatmul.msk.f32.vlgmr.msrb.gmra.mxu2 %vm2456_vm5, %v3761_v43  ;;  %6786 = vmatmul.msk.f32.vlgmr.msrb.gmra.mxu3 %vm2456_vm5, %v3761_v43  ;;  %v8937_v43 = vld [vmem:[#allocation7 + $0x210] sm:$0x7f] }
 0x8c9   : > { %6799 = vmatpush.msk.msrb.mxu2 %vm2459_vm3, %v8912_v21  ;;  %6801 = vmatpush.msk.msrb.mxu3 %vm2459_vm3, %v8914_v29  ;;  %9670 = vst [vmem:[#allocation47_spill] sm:$0xff] %v8937_v43  ;;  %v8943_v21 = vld [vmem:[#allocation7 + $0x200] sm:$0x7f]  ;;  %v8945_v29 = vld [vmem:[#allocation7 + $0x208] sm:$0x7f] }
 0x8ca   : > { %6795 = vmatpush.msk.msrb.mxu0 %vm2459_vm3, %v8918_v4  ;;  %6797 = vmatpush.msk.msrb.mxu1 %vm2459_vm3, %v8920_v30  ;;  %9672 = vst [vmem:[#allocation49_spill] sm:$0xff] %v8943_v21  ;;  %v3962_v30 = vrot.slane %v8925_v8, 1  ;;  %v8960_v4 = vld [vmem:[#allocation7 + $0x230] sm:$0x7f] }
 0x8cb   : > { %9673 = vst [vmem:[#allocation50_spill] sm:$0xff] %v8945_v29 }
 0x8cc   : > { %v3963_v3 = vsel %vm2454_vm4, %v8910_v54, %v3962_v30  ;;  %9674 = vst [vmem:[#allocation51_spill] sm:$0xff] %v8960_v4  ;;  %v4063_v30 = vrot.slane %v8910_v54, 1 }
 0x8cf   : > { %6788 = vmatmul.msk.f32.vlgmr.msra.gmra.mxu0 %vm2456_vm5, %v3863_v9  ;;  %6790 = vmatmul.msk.f32.vlgmr.msra.gmra.mxu1 %vm2456_vm5, %v3863_v9 }
 0x8d0   : > { %6792 = vmatmul.msk.f32.vlgmr.msra.gmra.mxu2 %vm2456_vm5, %v3863_v9  ;;  %6794 = vmatmul.msk.f32.vlgmr.msra.gmra.mxu3 %vm2456_vm5, %v3863_v9  ;;  %v8962_v9 = vld [vmem:[#allocation7 + $0x238] sm:$0x7f] }
 0x8d1   : > { %6807 = vmatpush.msk.msra.mxu2 %vm2459_vm3, %v8937_v43  ;;  %6809 = vmatpush.msk.msra.mxu3 %vm2459_vm3, %v8939_v39  ;;  %9675 = vst [vmem:[#allocation52_spill] sm:$0xff] %v8962_v9  ;;  %v8966_v43 = vld [vmem:[#allocation7 + $0x220] sm:$0x7f]  ;;  %v8968_v39 = vld [vmem:[#allocation7 + $0x228] sm:$0x7f] }
 0x8d2   : > { %6803 = vmatpush.msk.msra.mxu0 %vm2459_vm3, %v8943_v21  ;;  %6805 = vmatpush.msk.msra.mxu1 %vm2459_vm3, %v8945_v29  ;;  %9676 = vst [vmem:[#allocation53_spill] sm:$0xff] %v8966_v43  ;;  %v4062_v29 = vrot.slane %v8925_v8, 2 }
 0x8d3   : > { %9677 = vst [vmem:[#allocation54_spill] sm:$0xff] %v8968_v39 }
 0x8d7   : > { %6796 = vmatmul.msk.f32.vlgmr.msrb.gmra.mxu0 %vm2456_vm5, %v3963_v3  ;;  %6798 = vmatmul.msk.f32.vlgmr.msrb.gmra.mxu1 %vm2456_vm5, %v3963_v3 }
 0x8d8   : > { %6800 = vmatmul.msk.f32.vlgmr.msrb.gmra.mxu2 %vm2456_vm5, %v3963_v3  ;;  %6802 = vmatmul.msk.f32.vlgmr.msrb.gmra.mxu3 %vm2456_vm5, %v3963_v3  ;;  %v4064_v3 = vsel %vm2454_vm4, %v4063_v30, %v4062_v29  ;;  %v4164_v29 = vrot.slane %v8910_v54, 2 }
 0x8d9   : > { %6815 = vmatpush.msk.msrb.mxu2 %vm2459_vm3, %v8960_v4  ;;  %6817 = vmatpush.msk.msrb.mxu3 %vm2459_vm3, %v8962_v9  ;;  %v8993_v9 = vld [vmem:[#allocation7 + $0x240] sm:$0x7f] }
 0x8da   : > { %6811 = vmatpush.msk.msrb.mxu0 %vm2459_vm3, %v8966_v43  ;;  %6813 = vmatpush.msk.msrb.mxu1 %vm2459_vm3, %v8968_v39  ;;  %9680 = vst [vmem:[#allocation57_spill] sm:$0xff] %v8993_v9  ;;  %v8995_v43 = vld [vmem:[#allocation7 + $0x248] sm:$0x7f]  ;;  %v4163_v39 = vrot.slane %v8925_v8, 3 }
 0x8db   : > { %9681 = vst [vmem:[#allocation58_spill] sm:$0xff] %v8995_v43 }
 0x8dc   : > { %v8982_v21 = vpop.f32.mrf.mxu0  ;;  %v8984_v5 = vpop.f32.mrf.mxu1  ;;  %v4165_v38 = vsel %vm2454_vm4, %v4164_v29, %v4163_v39  ;;  %v4265_v39 = vrot.slane %v8910_v54, 3 }
 0x8df   : > { %6804 = vmatmul.msk.f32.vlgmr.msra.gmra.mxu0 %vm2456_vm5, %v4064_v3  ;;  %6806 = vmatmul.msk.f32.vlgmr.msra.gmra.mxu1 %vm2456_vm5, %v4064_v3 }
 0x8e0   : > { %6808 = vmatmul.msk.f32.vlgmr.msra.gmra.mxu2 %vm2456_vm5, %v4064_v3  ;;  %6810 = vmatmul.msk.f32.vlgmr.msra.gmra.mxu3 %vm2456_vm5, %v4064_v3 }
 0x8e1   : > { %6823 = vmatpush.msk.msra.mxu2 %vm2459_vm3, %v8987_v41  ;;  %6825 = vmatpush.msk.msra.mxu3 %vm2459_vm3, %v8989_v17  ;;  %v9016_v41 = vld [vmem:[#allocation7 + $0x278] sm:$0x7f]  ;;  %v9022_v17 = vld [vmem:[#allocation7 + $0x268] sm:$0x7f] }
 0x8e2   : > { %6819 = vmatpush.msk.msra.mxu0 %vm2459_vm3, %v8993_v9  ;;  %6821 = vmatpush.msk.msra.mxu1 %vm2459_vm3, %v8995_v43  ;;  %9683 = vst [vmem:[#allocation60_spill] sm:$0xff] %v9016_v41  ;;  %v9020_v9 = vld [vmem:[#allocation7 + $0x260] sm:$0x7f]  ;;  %v4264_v43 = vrot.slane %v8925_v8, 4 }
 0x8e3   : > { %v2529_v30 = vpop.f32.mrf.mxu2  ;;  %v2549_v4 = vpop.f32.mrf.mxu3  ;;  %9684 = vst [vmem:[#allocation61_spill] sm:$0xff] %v9020_v9 }
 0x8e4   : > { %v9009_v6 = vpop.f32.mrf.mxu0  ;;  %v9011_v3 = vpop.f32.mrf.mxu1  ;;  %9685 = vst [vmem:[#allocation62_spill] sm:$0xff] %v9022_v17  ;;  %v4266_v25 = vsel %vm2454_vm4, %v4265_v39, %v4264_v43 }
 0x8e7   : > { %6812 = vmatmul.msk.f32.vlgmr.msrb.gmra.mxu0 %vm2456_vm5, %v4165_v38  ;;  %6814 = vmatmul.msk.f32.vlgmr.msrb.gmra.mxu1 %vm2456_vm5, %v4165_v38 }
 0x8e8   : > { %6816 = vmatmul.msk.f32.vlgmr.msrb.gmra.mxu2 %vm2456_vm5, %v4165_v38  ;;  %6818 = vmatmul.msk.f32.vlgmr.msrb.gmra.mxu3 %vm2456_vm5, %v4165_v38 }
 0x8e9   : > { %6831 = vmatpush.msk.msrb.mxu2 %vm2459_vm3, %v9014_v40  ;;  %6833 = vmatpush.msk.msrb.mxu3 %vm2459_vm3, %v9016_v41  ;;  %v9041_v40 = vld [vmem:[#allocation7 + $0x290] sm:$0x7f] }
 0x8ea   : > { %6827 = vmatpush.msk.msrb.mxu0 %vm2459_vm3, %v9020_v9  ;;  %6829 = vmatpush.msk.msrb.mxu1 %vm2459_vm3, %v9022_v17  ;;  %v9047_v9 = vld [vmem:[#allocation7 + $0x280] sm:$0x7f]  ;;  %v9049_v17 = vld [vmem:[#allocation7 + $0x288] sm:$0x7f] }
 0x8eb   : > { %v2625_v29 = vpop.f32.mrf.mxu2  ;;  %v2645_v58 = vpop.f32.mrf.mxu3  ;;  %9686 = vst [vmem:[#allocation63_spill] sm:$0xff] %v9047_v9 }
 0x8ec   : > { %v2626_v34 = vadd.f32 %v2625_v29, %v2529_v30  ;;  %v2646_v38 = vadd.f32 %v2645_v58, %v2549_v4  ;;  %v9036_v51 = vpop.f32.mrf.mxu0  ;;  %v9038_v2 = vpop.f32.mrf.mxu1  ;;  %9687 = vst [vmem:[#allocation64_spill] sm:$0xff] %v9049_v17  ;;  %v4365_v58 = vrot.slane %v8925_v8, 5  ;;  %v4366_v4 = vrot.slane %v8910_v54, 4 }
 0x8ee   : > { %v4367_v16 = vsel %vm2454_vm4, %v4366_v4, %v4365_v58 }
 0x8ef   : > { %6820 = vmatmul.msk.f32.vlgmr.msra.gmra.mxu0 %vm2456_vm5, %v4266_v25  ;;  %6822 = vmatmul.msk.f32.vlgmr.msra.gmra.mxu1 %vm2456_vm5, %v4266_v25 }
 0x8f0   : > { %6824 = vmatmul.msk.f32.vlgmr.msra.gmra.mxu2 %vm2456_vm5, %v4266_v25  ;;  %6826 = vmatmul.msk.f32.vlgmr.msra.gmra.mxu3 %vm2456_vm5, %v4266_v25 }
 0x8f1   : > { %6839 = vmatpush.msk.msra.mxu2 %vm2459_vm3, %v9041_v40  ;;  %6841 = vmatpush.msk.msra.mxu3 %vm2459_vm3, %v9043_v50 }
 0x8f2   : > { %6835 = vmatpush.msk.msra.mxu0 %vm2459_vm3, %v9047_v9  ;;  %6837 = vmatpush.msk.msra.mxu1 %vm2459_vm3, %v9049_v17  ;;  %v4466_v17 = vrot.slane %v8925_v8, 6  ;;  %v4467_v9 = vrot.slane %v8910_v54, 5 }
 0x8f3   : > { %v2722_v43 = vpop.f32.mrf.mxu2  ;;  %v2742_v30 = vpop.f32.mrf.mxu3 }
 0x8f4   : > { %v2747_v39 = vadd.f32 %v2722_v43, %v2626_v34  ;;  %v2748_v25 = vadd.f32 %v2742_v30, %v2646_v38  ;;  %v9063_v29 = vpop.f32.mrf.mxu0  ;;  %v9065_v41 = vpop.f32.mrf.mxu1  ;;  %v4468_v54 = vsel %vm2454_vm4, %v4467_v9, %v4466_v17 }
 0x8f7   : > { %6828 = vmatmul.msk.f32.vlgmr.msrb.gmra.mxu0 %vm2456_vm5, %v4367_v16  ;;  %6830 = vmatmul.msk.f32.vlgmr.msrb.gmra.mxu1 %vm2456_vm5, %v4367_v16 }
 0x8f8   : > { %6832 = vmatmul.msk.f32.vlgmr.msrb.gmra.mxu2 %vm2456_vm5, %v4367_v16  ;;  %6834 = vmatmul.msk.f32.vlgmr.msrb.gmra.mxu3 %vm2456_vm5, %v4367_v16 }
 0x8f9   : > { %6847 = vmatpush.msk.msrb.mxu2 %vm2459_vm3, %v8576_v42  ;;  %6849 = vmatpush.msk.msrb.mxu3 %vm2459_vm3, %v8578_v35  ;;  %v9087_v42 = vld [vmem:[#allocation3] sm:$0x7f] }
 0x8fa   : > { %6843 = vmatpush.msk.msrb.mxu0 %vm2459_vm3, %v8568_v19  ;;  %6845 = vmatpush.msk.msrb.mxu1 %vm2459_vm3, %v8570_v15  ;;  %v4617_v19 = vrot.slane %v9087_v42, 1  ;;  %v9094_v15 = vld [vmem:[#allocation3 + $0x18] sm:$0x7f] }
 0x8fb   : > { %v2823_v34 = vpop.f32.mrf.mxu2  ;;  %v2843_v38 = vpop.f32.mrf.mxu3 }
 0x8fc   : > { %v2848_v58 = vadd.f32 %v2823_v34, %v2747_v39  ;;  %v2849_v16 = vadd.f32 %v2843_v38, %v2748_v25  ;;  %v9082_v4 = vpop.f32.mrf.mxu0  ;;  %v9084_v8 = vpop.f32.mrf.mxu1  ;;  %v4618_v25 = vsel %vm2454_vm4, %v9094_v15, %v4617_v19 }
 0x8ff   : > { %6836 = vmatmul.msk.f32.vlgmr.msra.gmra.mxu0 %vm2456_vm5, %v4468_v54  ;;  %6838 = vmatmul.msk.f32.vlgmr.msra.gmra.mxu1 %vm2456_vm5, %v4468_v54 }
 0x900   : > { %6840 = vmatmul.msk.f32.vlgmr.msra.gmra.mxu2 %vm2456_vm5, %v4468_v54  ;;  %6842 = vmatmul.msk.f32.vlgmr.msra.gmra.mxu3 %vm2456_vm5, %v4468_v54 }
 0x901   : > { %6855 = vmatpush.msk.msra.mxu2 %vm2459_vm3, %v8589_v27  ;;  %6857 = vmatpush.msk.msra.mxu3 %vm2459_vm3, %v8593_v33  ;;  %v4701_v27 = vrot.slane %v9094_v15, 7 }
 0x902   : > { %6851 = vmatpush.msk.msra.mxu0 %vm2459_vm3, %v8595_v11  ;;  %6853 = vmatpush.msk.msra.mxu1 %vm2459_vm3, %v8603_v44 }
 0x903   : > { %v2924_v35 = vpop.f32.mrf.mxu2  ;;  %v2944_v17 = vpop.f32.mrf.mxu3 }
 0x904   : > { %v2949_v9 = vadd.f32 %v2924_v35, %v2848_v58  ;;  %v2950_v43 = vadd.f32 %v2944_v17, %v2849_v16  ;;  %v2985_v30 = vpop.f32.mrf.mxu0  ;;  %v3005_v39 = vpop.f32.mrf.mxu1  ;;  %v4702_v16 = vsel %vm2454_vm4, %v4701_v27, %v9087_v42 }
 0x907   : > { %6844 = vmatmul.msk.f32.vlgmr.msrb.gmra.mxu0 %vm2456_vm5, %v4618_v25  ;;  %6846 = vmatmul.msk.f32.vlgmr.msrb.gmra.mxu1 %vm2456_vm5, %v4618_v25 }
 0x908   : > { %6848 = vmatmul.msk.f32.vlgmr.msrb.gmra.mxu2 %vm2456_vm5, %v4618_v25  ;;  %6850 = vmatmul.msk.f32.vlgmr.msrb.gmra.mxu3 %vm2456_vm5, %v4618_v25  ;;  %v4875_v25 = vrot.slane %v9094_v15, 2 }
 0x909   : > { %6863 = vmatpush.msk.msrb.mxu2 %vm2459_vm3, %v8605_v36  ;;  %6865 = vmatpush.msk.msrb.mxu3 %vm2459_vm3, %v8609_v60  ;;  %v4785_v36 = vrot.slane %v9087_v42, 2  ;;  %v4786_v60 = vrot.slane %v9094_v15, 1 }
 0x90a   : > { %6859 = vmatpush.msk.msrb.mxu0 %vm2459_vm3, %v8611_v62  ;;  %6861 = vmatpush.msk.msrb.mxu1 %vm2459_vm3, %v8616_v28 }
 0x90b   : > { %v3025_v33 = vpop.f32.mrf.mxu2  ;;  %v3045_v11 = vpop.f32.mrf.mxu3 }
 0x90c   : > { %v3050_v44 = vadd.f32 %v3025_v33, %v2949_v9  ;;  %v3051_v34 = vadd.f32 %v3045_v11, %v2950_v43  ;;  %v3086_v38 = vpop.f32.mrf.mxu0  ;;  %v3106_v58 = vpop.f32.mrf.mxu1  ;;  %v4787_v9 = vsel %vm2454_vm4, %v4786_v60, %v4785_v36 }
 0x90f   : > { %6852 = vmatmul.msk.f32.vlgmr.msra.gmra.mxu0 %vm2456_vm5, %v4702_v16  ;;  %6854 = vmatmul.msk.f32.vlgmr.msra.gmra.mxu1 %vm2456_vm5, %v4702_v16 }
 0x910   : > { %6856 = vmatmul.msk.f32.vlgmr.msra.gmra.mxu2 %vm2456_vm5, %v4702_v16  ;;  %6858 = vmatmul.msk.f32.vlgmr.msra.gmra.mxu3 %vm2456_vm5, %v4702_v16 }
 0x911   : > { %6871 = vmatpush.msk.msra.mxu2 %vm2459_vm3, %v8630_v10  ;;  %6873 = vmatpush.msk.msra.mxu3 %vm2459_vm3, %v8632_v32  ;;  %v2586_v10 = vadd.f32 %v9009_v6, %v8982_v21  ;;  %v2606_v32 = vadd.f32 %v9011_v3, %v8984_v5 }
 0x912   : > { %6867 = vmatpush.msk.msra.mxu0 %vm2459_vm3, %v8636_v13  ;;  %6869 = vmatpush.msk.msra.mxu1 %vm2459_vm3, %v8638_v61  ;;  %v4874_v61 = vrot.slane %v9087_v42, 3 }
 0x913   : > { %v3126_v62 = vpop.f32.mrf.mxu2  ;;  %v3146_v28 = vpop.f32.mrf.mxu3  ;;  %v2745_v43 = vadd.f32 %v9036_v51, %v2586_v10  ;;  %v2746_v13 = vadd.f32 %v9038_v2, %v2606_v32 }
 0x914   : > { %v3151_v54 = vadd.f32 %v3126_v62, %v3050_v44  ;;  %v3152_v19 = vadd.f32 %v3146_v28, %v3051_v34  ;;  %v3188_v35 = vpop.f32.mrf.mxu0  ;;  %v3208_v17 = vpop.f32.mrf.mxu1 }
 0x915   : > { %v2846_v6 = vadd.f32 %v9063_v29, %v2745_v43  ;;  %v2847_v5 = vadd.f32 %v9065_v41, %v2746_v13 }
 0x917   : > { %6860 = vmatmul.msk.f32.vlgmr.msrb.gmra.mxu0 %vm2456_vm5, %v4787_v9  ;;  %6862 = vmatmul.msk.f32.vlgmr.msrb.gmra.mxu1 %vm2456_vm5, %v4787_v9  ;;  %v2947_v2 = vadd.f32 %v9082_v4, %v2846_v6  ;;  %v2948_v51 = vadd.f32 %v9084_v8, %v2847_v5 }
 0x918   : > { %6864 = vmatmul.msk.f32.vlgmr.msrb.gmra.mxu2 %vm2456_vm5, %v4787_v9  ;;  %6866 = vmatmul.msk.f32.vlgmr.msrb.gmra.mxu3 %vm2456_vm5, %v4787_v9 }
 0x919   : > { %6879 = vmatpush.msk.msrb.mxu2 %vm2459_vm3, %v8653_v46  ;;  %6881 = vmatpush.msk.msrb.mxu3 %vm2459_vm3, %v8655_v18  ;;  %v4876_v46 = vsel %vm2454_vm4, %v4875_v25, %v4874_v61  ;;  %v3048_v11 = vadd.f32 %v2985_v30, %v2947_v2  ;;  %v3049_v18 = vadd.f32 %v3005_v39, %v2948_v51  ;;  %v9689_v2 = vld [vmem:[#allocation25_spill] sm:$0xff]  ;;  %v9690_v51 = vld [vmem:[#allocation26_spill] sm:$0xff] }
 0x91a   : > { %6875 = vmatpush.msk.msrb.mxu0 %vm2459_vm3, %v8659_v47  ;;  %6877 = vmatpush.msk.msrb.mxu1 %vm2459_vm3, %v8661_v49  ;;  %v4963_v47 = vrot.slane %v9087_v42, 4  ;;  %v4964_v49 = vrot.slane %v9094_v15, 3 }
 0x91b   : > { %v3228_v21 = vpop.f32.mrf.mxu2  ;;  %v3248_v3 = vpop.f32.mrf.mxu3  ;;  %v3149_v44 = vadd.f32 %v3086_v38, %v3048_v11  ;;  %v3150_v34 = vadd.f32 %v3106_v58, %v3049_v18  ;;  %v9692_v11 = vld [vmem:[#allocation28_spill] sm:$0xff]  ;;  %v9693_v18 = vld [vmem:[#allocation29_spill] sm:$0xff] }
 0x91c   : > { %v3253_v29 = vadd.f32 %v3228_v21, %v3151_v54  ;;  %v3254_v41 = vadd.f32 %v3248_v3, %v3152_v19  ;;  %v3288_v27 = vpop.f32.mrf.mxu0  ;;  %v3308_v33 = vpop.f32.mrf.mxu1  ;;  %v4965_v28 = vsel %vm2454_vm4, %v4964_v49, %v4963_v47 }
 0x91d   : > { %v3251_v4 = vadd.f32 %v3188_v35, %v3149_v44  ;;  %v3252_v8 = vadd.f32 %v3208_v17, %v3150_v34  ;;  %v9694_v44 = vld [vmem:[#allocation30_spill] sm:$0xff] }
 0x91f   : > { %6868 = vmatmul.msk.f32.vlgmr.msra.gmra.mxu0 %vm2456_vm5, %v4876_v46  ;;  %6870 = vmatmul.msk.f32.vlgmr.msra.gmra.mxu1 %vm2456_vm5, %v4876_v46  ;;  %v3351_v30 = vadd.f32 %v3288_v27, %v3251_v4  ;;  %v3352_v39 = vadd.f32 %v3308_v33, %v3252_v8 }
 0x920   : > { %6872 = vmatmul.msk.f32.vlgmr.msra.gmra.mxu2 %vm2456_vm5, %v4876_v46  ;;  %6874 = vmatmul.msk.f32.vlgmr.msra.gmra.mxu3 %vm2456_vm5, %v4876_v46  ;;  %v9691_v46 = vld [vmem:[#allocation27_spill] sm:$0xff] }
 0x921   : > { %6887 = vmatpush.msk.msra.mxu2 %vm2459_vm3, %v8676_v48  ;;  %6889 = vmatpush.msk.msra.mxu3 %vm2459_vm3, %v8678_v45  ;;  %v5052_v45 = vrot.slane %v9087_v42, 5 }
 0x922   : > { %6883 = vmatpush.msk.msra.mxu0 %vm2459_vm3, %v8682_v24  ;;  %6885 = vmatpush.msk.msra.mxu1 %vm2459_vm3, %v8684_v22  ;;  %v5053_v24 = vrot.slane %v9094_v15, 4 }
 0x923   : > { %v3328_v38 = vpop.f32.mrf.mxu2  ;;  %v3348_v58 = vpop.f32.mrf.mxu3 }
 0x924   : > { %v3353_v16 = vadd.f32 %v3328_v38, %v3253_v29  ;;  %v3354_v36 = vadd.f32 %v3348_v58, %v3254_v41  ;;  %v3389_v60 = vpop.f32.mrf.mxu0  ;;  %v3409_v62 = vpop.f32.mrf.mxu1  ;;  %v9695_v38 = vld [vmem:[#allocation31_spill] sm:$0xff]  ;;  %v9696_v58 = vld [vmem:[#allocation32_spill] sm:$0xff] }
 0x925   : > { %v9176_v48 = vadd.f32 %v3389_v60, %v3351_v30  ;;  %v9178_v54 = vadd.f32 %v3409_v62, %v3352_v39 }
 0x927   : > { %6876 = vmatmul.msk.f32.vlgmr.msrb.gmra.mxu0 %vm2456_vm5, %v4965_v28  ;;  %6878 = vmatmul.msk.f32.vlgmr.msrb.gmra.mxu1 %vm2456_vm5, %v4965_v28 }
 0x928   : > { %6880 = vmatmul.msk.f32.vlgmr.msrb.gmra.mxu2 %vm2456_vm5, %v4965_v28  ;;  %6882 = vmatmul.msk.f32.vlgmr.msrb.gmra.mxu3 %vm2456_vm5, %v4965_v28 }
 0x929   : > { %6895 = vmatpush.msk.msrb.mxu2 %vm2459_vm3, %v8699_v59  ;;  %6897 = vmatpush.msk.msrb.mxu3 %vm2459_vm3, %v8701_v52  ;;  %v5054_v59 = vsel %vm2454_vm4, %v5053_v24, %v5052_v45  ;;  %v5141_v52 = vrot.slane %v9087_v42, 6 }
 0x92a   : > { %6891 = vmatpush.msk.msrb.mxu0 %vm2459_vm3, %v8705_v31  ;;  %6893 = vmatpush.msk.msrb.mxu1 %vm2459_vm3, %v8707_v26  ;;  %v5142_v31 = vrot.slane %v9094_v15, 5 }
 0x92b   : > { %v3429_v22 = vpop.f32.mrf.mxu2  ;;  %v3449_v19 = vpop.f32.mrf.mxu3 }
 0x92c   : > { %v9194_v35 = vadd.f32 %v3429_v22, %v3353_v16  ;;  %v9196_v17 = vadd.f32 %v3449_v19, %v3354_v36  ;;  %v9198_v9 = vpop.f32.mrf.mxu0  ;;  %v9200_v10 = vpop.f32.mrf.mxu1  ;;  %v5143_v15 = vsel %vm2454_vm4, %v5142_v31, %v5141_v52  ;;  %v9697_v16 = vld [vmem:[#allocation33_spill] sm:$0xff]  ;;  %v9698_v36 = vld [vmem:[#allocation34_spill] sm:$0xff]  ;;  %v9700_v52 = vld [vmem:[#allocation36_spill] sm:$0xff] }
 0x92d   : > { %v9701_v31 = vld [vmem:[#allocation37_spill] sm:$0xff] }
 0x92f   : > { %6884 = vmatmul.msk.f32.vlgmr.msra.gmra.mxu0 %vm2456_vm5, %v5054_v59  ;;  %6886 = vmatmul.msk.f32.vlgmr.msra.gmra.mxu1 %vm2456_vm5, %v5054_v59 }
 0x930   : > { %6888 = vmatmul.msk.f32.vlgmr.msra.gmra.mxu2 %vm2456_vm5, %v5054_v59  ;;  %6890 = vmatmul.msk.f32.vlgmr.msra.gmra.mxu3 %vm2456_vm5, %v5054_v59  ;;  %v9699_v59 = vld [vmem:[#allocation35_spill] sm:$0xff] }
 0x931   : > { %6903 = vmatpush.msk.msra.mxu2 %vm2459_vm3, %v8722_v12  ;;  %6905 = vmatpush.msk.msra.mxu3 %vm2459_vm3, %v8724_v56  ;;  %v9226_v12 = vld [vmem:[#allocation3 + $0x20] sm:$0x7f] }
 0x932   : > { %6899 = vmatpush.msk.msra.mxu0 %vm2459_vm3, %v8728_v63  ;;  %6901 = vmatpush.msk.msra.mxu1 %vm2459_vm3, %v8730_v1  ;;  %v5232_v56 = vrot.slane %v9226_v12, 7  ;;  %v9233_v63 = vld [vmem:[#allocation3 + $0x8] sm:$0x7f]  ;;  %v5498_v33 = vrot.slane %v9226_v12, 2  ;;  %v5587_v39 = vrot.slane %v9226_v12, 3  ;;  %v5676_v19 = vrot.slane %v9226_v12, 4 }
 0x933   : > { %v9217_v26 = vpop.f32.mrf.mxu2  ;;  %v9219_v32 = vpop.f32.mrf.mxu3  ;;  %v5586_v30 = vrot.slane %v9233_v63, 4  ;;  %v5675_v22 = vrot.slane %v9233_v63, 5 }
 0x934   : > { %v9221_v43 = vpop.f32.mrf.mxu0  ;;  %v9223_v42 = vpop.f32.mrf.mxu1 }
 0x935   : > { %v5588_v24 = vsel %vm2454_vm4, %v5587_v39, %v5586_v30  ;;  %v3555_v30 = vadd.f32 %v9217_v26, %v9194_v35  ;;  %v3556_v39 = vadd.f32 %v9219_v32, %v9196_v17  ;;  %v9709_v32 = vld [vmem:[#allocation45_spill] sm:$0xff] }
 0x937   : > { %6892 = vmatmul.msk.f32.vlgmr.msrb.gmra.mxu0 %vm2456_vm5, %v5143_v15  ;;  %6894 = vmatmul.msk.f32.vlgmr.msrb.gmra.mxu1 %vm2456_vm5, %v5143_v15 }
 0x938   : > { %6896 = vmatmul.msk.f32.vlgmr.msrb.gmra.mxu2 %vm2456_vm5, %v5143_v15  ;;  %6898 = vmatmul.msk.f32.vlgmr.msrb.gmra.mxu3 %vm2456_vm5, %v5143_v15  ;;  %v9702_v15 = vld [vmem:[#allocation38_spill] sm:$0xff] }
 0x939   : > { %6911 = vmatpush.msk.msrb.mxu2 %vm2459_vm3, %v8747_v53  ;;  %6913 = vmatpush.msk.msrb.mxu3 %vm2459_vm3, %v8749_v7  ;;  %v5233_v53 = vsel %vm2454_vm4, %v5232_v56, %v9233_v63  ;;  %v5320_v7 = vrot.slane %v9233_v63, 1 }
 0x93a   : > { %6907 = vmatpush.msk.msrb.mxu0 %vm2459_vm3, %v8753_v0  ;;  %6909 = vmatpush.msk.msrb.mxu1 %vm2459_vm3, %v8755_v55 }
 0x93b   : > { %v9243_v1 = vpop.f32.mrf.mxu2  ;;  %v9245_v13 = vpop.f32.mrf.mxu3 }
 0x93c   : > { %v9247_v61 = vpop.f32.mrf.mxu0  ;;  %v9249_v25 = vpop.f32.mrf.mxu1  ;;  %v3657_v17 = vadd.f32 %v9245_v13, %v3556_v39  ;;  %v9715_v39 = vld [vmem:[#allocation51_spill] sm:$0xff] }
 0x93f   : > { %6900 = vmatmul.msk.f32.vlgmr.msra.gmra.mxu0 %vm2456_vm5, %v5233_v53  ;;  %6902 = vmatmul.msk.f32.vlgmr.msra.gmra.mxu1 %vm2456_vm5, %v5233_v53 }
 0x940   : > { %6904 = vmatmul.msk.f32.vlgmr.msra.gmra.mxu2 %vm2456_vm5, %v5233_v53  ;;  %6906 = vmatmul.msk.f32.vlgmr.msra.gmra.mxu3 %vm2456_vm5, %v5233_v53 }
 0x941   : > { %6919 = vmatpush.msk.msra.mxu2 %vm2459_vm3, %v8772_v20  ;;  %6921 = vmatpush.msk.msra.mxu3 %vm2459_vm3, %v8774_v57  ;;  %v5321_v20 = vsel %vm2454_vm4, %v9226_v12, %v5320_v7  ;;  %v5408_v57 = vrot.slane %v9233_v63, 2 }
 0x942   : > { %6915 = vmatpush.msk.msra.mxu0 %vm2459_vm3, %v8778_v14  ;;  %6917 = vmatpush.msk.msra.mxu1 %vm2459_vm3, %v8780_v23  ;;  %v5409_v14 = vrot.slane %v9226_v12, 1  ;;  %v9688_v23 = vld [vmem:[#allocation24_spill] sm:$0xff] }
 0x943   : > { %v9266_v0 = vpop.f32.mrf.mxu2  ;;  %v9268_v55 = vpop.f32.mrf.mxu3 }
 0x944   : > { %v9270_v6 = vpop.f32.mrf.mxu0  ;;  %v9272_v5 = vpop.f32.mrf.mxu1  ;;  %v5410_v27 = vsel %vm2454_vm4, %v5409_v14, %v5408_v57  ;;  %v5677_v57 = vsel %vm2454_vm4, %v5676_v19, %v5675_v22  ;;  %v5764_v14 = vrot.slane %v9233_v63, 6 }
 0x947   : > { %6908 = vmatmul.msk.f32.vlgmr.msrb.gmra.mxu0 %vm2456_vm5, %v5321_v20  ;;  %6910 = vmatmul.msk.f32.vlgmr.msrb.gmra.mxu1 %vm2456_vm5, %v5321_v20 }
 0x948   : > { %6912 = vmatmul.msk.f32.vlgmr.msrb.gmra.mxu2 %vm2456_vm5, %v5321_v20  ;;  %6914 = vmatmul.msk.f32.vlgmr.msrb.gmra.mxu3 %vm2456_vm5, %v5321_v20 }
 0x949   : > { %6927 = vmatpush.msk.msrb.mxu2 %vm2459_vm3, %v8795_v37  ;;  %6929 = vmatpush.msk.msrb.mxu3 %vm2459_vm3, %v9688_v23  ;;  %v5497_v37 = vrot.slane %v9233_v63, 3  ;;  %v5765_v23 = vrot.slane %v9226_v12, 5 }
 0x94a   : > { %6923 = vmatpush.msk.msrb.mxu0 %vm2459_vm3, %v9689_v2  ;;  %6925 = vmatpush.msk.msrb.mxu1 %vm2459_vm3, %v9690_v51  ;;  %v3553_v2 = vadd.f32 %v9198_v9, %v9176_v48  ;;  %v3554_v51 = vadd.f32 %v9200_v10, %v9178_v54 }
 0x94b   : > { %v9290_v21 = vpop.f32.mrf.mxu2  ;;  %v9292_v3 = vpop.f32.mrf.mxu3  ;;  %v5499_v8 = vsel %vm2454_vm4, %v5498_v33, %v5497_v37  ;;  %v9704_v37 = vld [vmem:[#allocation40_spill] sm:$0xff]  ;;  %v9705_v33 = vld [vmem:[#allocation41_spill] sm:$0xff] }
 0x94c   : > { %v9294_v29 = vpop.f32.mrf.mxu0  ;;  %v9296_v41 = vpop.f32.mrf.mxu1  ;;  %v3654_v12 = vadd.f32 %v9221_v43, %v3553_v2  ;;  %v3655_v63 = vadd.f32 %v9223_v42, %v3554_v51 }
 0x94f   : > { %6916 = vmatmul.msk.f32.vlgmr.msra.gmra.mxu0 %vm2456_vm5, %v5410_v27  ;;  %6918 = vmatmul.msk.f32.vlgmr.msra.gmra.mxu1 %vm2456_vm5, %v5410_v27 }
 0x950   : > { %6920 = vmatmul.msk.f32.vlgmr.msra.gmra.mxu2 %vm2456_vm5, %v5410_v27  ;;  %6922 = vmatmul.msk.f32.vlgmr.msra.gmra.mxu3 %vm2456_vm5, %v5410_v27  ;;  %v9703_v27 = vld [vmem:[#allocation39_spill] sm:$0xff] }
 0x951   : > { %6935 = vmatpush.msk.msra.mxu2 %vm2459_vm3, %v9691_v46  ;;  %6937 = vmatpush.msk.msra.mxu3 %vm2459_vm3, %v9692_v11  ;;  %v9706_v46 = vld [vmem:[#allocation42_spill] sm:$0xff]  ;;  %v5766_v11 = vsel %vm2454_vm4, %v5765_v23, %v5764_v14  ;;  %v9713_v14 = vld [vmem:[#allocation49_spill] sm:$0xff] }
 0x952   : > { %6931 = vmatpush.msk.msra.mxu0 %vm2459_vm3, %v9693_v18  ;;  %6933 = vmatpush.msk.msra.mxu1 %vm2459_vm3, %v9694_v44  ;;  %v3755_v18 = vadd.f32 %v9247_v61, %v3654_v12  ;;  %v3756_v44 = vadd.f32 %v9249_v25, %v3655_v63  ;;  %v3656_v25 = vadd.f32 %v9243_v1, %v3555_v30  ;;  %v9714_v23 = vld [vmem:[#allocation50_spill] sm:$0xff] }
 0x953   : > { %v9313_v34 = vpop.f32.mrf.mxu2  ;;  %v9315_v47 = vpop.f32.mrf.mxu3 }
 0x954   : > { %v9317_v49 = vpop.f32.mrf.mxu0  ;;  %v9319_v4 = vpop.f32.mrf.mxu1  ;;  %v3856_v43 = vadd.f32 %v9270_v6, %v3755_v18  ;;  %v3857_v42 = vadd.f32 %v9272_v5, %v3756_v44  ;;  %v9407_v6 = vld [vmem:[#allocation3 + $0x10] sm:$0x7f]  ;;  %v9707_v5 = vld [vmem:[#allocation43_spill] sm:$0xff]  ;;  %v3757_v1 = vadd.f32 %v9266_v0, %v3656_v25 }
 0x956   : > { %v3958_v35 = vadd.f32 %v9294_v29, %v3856_v43  ;;  %v3959_v26 = vadd.f32 %v9296_v41, %v3857_v42 }
 0x957   : > { %6924 = vmatmul.msk.f32.vlgmr.msrb.gmra.mxu0 %vm2456_vm5, %v5499_v8  ;;  %6926 = vmatmul.msk.f32.vlgmr.msrb.gmra.mxu1 %vm2456_vm5, %v5499_v8 }
 0x958   : > { %6928 = vmatmul.msk.f32.vlgmr.msrb.gmra.mxu2 %vm2456_vm5, %v5499_v8  ;;  %6930 = vmatmul.msk.f32.vlgmr.msrb.gmra.mxu3 %vm2456_vm5, %v5499_v8  ;;  %v9391_v8 = vld [vmem:[#allocation3 + $0x28] sm:$0x7f]  ;;  %v4058_v29 = vadd.f32 %v9317_v49, %v3958_v35  ;;  %v4059_v41 = vadd.f32 %v9319_v4, %v3959_v26 }
 0x959   : > { %6943 = vmatpush.msk.msrb.mxu2 %vm2459_vm3, %v9695_v38  ;;  %6945 = vmatpush.msk.msrb.mxu3 %vm2459_vm3, %v9696_v58  ;;  %v5855_v61 = vrot.slane %v9391_v8, 7  ;;  %v9708_v38 = vld [vmem:[#allocation44_spill] sm:$0xff]  ;;  %v9710_v58 = vld [vmem:[#allocation46_spill] sm:$0xff] }
 0x95a   : > { %6939 = vmatpush.msk.msrb.mxu0 %vm2459_vm3, %v9697_v16  ;;  %6941 = vmatpush.msk.msrb.mxu1 %vm2459_vm3, %v9698_v36 }
 0x95b   : > { %v9336_v60 = vpop.f32.mrf.mxu2  ;;  %v9338_v62 = vpop.f32.mrf.mxu3  ;;  %v5856_v13 = vsel %vm2454_vm4, %v5855_v61, %v9407_v6  ;;  %v9716_v61 = vld [vmem:[#allocation52_spill] sm:$0xff] }
 0x95c   : > { %v9340_v28 = vpop.f32.mrf.mxu0  ;;  %v9342_v45 = vpop.f32.mrf.mxu1 }
 0x95f   : > { %6932 = vmatmul.msk.f32.vlgmr.msra.gmra.mxu0 %vm2456_vm5, %v5588_v24  ;;  %6934 = vmatmul.msk.f32.vlgmr.msra.gmra.mxu1 %vm2456_vm5, %v5588_v24 }
 0x960   : > { %6936 = vmatmul.msk.f32.vlgmr.msra.gmra.mxu2 %vm2456_vm5, %v5588_v24  ;;  %6938 = vmatmul.msk.f32.vlgmr.msra.gmra.mxu3 %vm2456_vm5, %v5588_v24  ;;  %v3758_v24 = vadd.f32 %v9268_v55, %v3657_v17  ;;  %v9431_v55 = vld [vmem:[#allocation9] sm:$0xf]  ;;  %v9718_v17 = vld [vmem:[#allocation54_spill] sm:$0xff] }
 0x961   : > { %6951 = vmatpush.msk.msra.mxu2 %vm2459_vm3, %v9699_v59  ;;  %6953 = vmatpush.msk.msra.mxu3 %vm2459_vm3, %v9700_v52  ;;  %v3858_v59 = vadd.f32 %v9290_v21, %v3757_v1  ;;  %v4159_v52 = vadd.f32 %v9340_v28, %v4058_v29  ;;  %v5943_v21 = vrot.slane %v9407_v6, 1  ;;  %v4570_v42 = vperm.slane %v9431_v55, 2 }
 0x962   : > { %6947 = vmatpush.msk.msra.mxu0 %vm2459_vm3, %v9701_v31  ;;  %6949 = vmatpush.msk.msra.mxu1 %vm2459_vm3, %v9702_v15  ;;  %v4160_v31 = vadd.f32 %v9342_v45, %v4059_v41  ;;  %v3859_v0 = vadd.f32 %v9292_v3, %v3758_v24  ;;  %v9711_v45 = vld [vmem:[#allocation47_spill] sm:$0xff] }
 0x963   : > { %v9359_v56 = vpop.f32.mrf.mxu2  ;;  %v9361_v53 = vpop.f32.mrf.mxu3  ;;  %v3960_v49 = vadd.f32 %v9313_v34, %v3858_v59  ;;  %v5944_v63 = vsel %vm2454_vm4, %v9391_v8, %v5943_v21  ;;  %v9721_v21 = vld [vmem:[#allocation57_spill] sm:$0xff] }
 0x964   : > { %v4197_v7 = vpop.f32.mrf.mxu0  ;;  %v4217_v20 = vpop.f32.mrf.mxu1 }
 0x965   : > { %v4260_v4 = vadd.f32 %v4197_v7, %v4159_v52  ;;  %v4261_v15 = vadd.f32 %v4217_v20, %v4160_v31  ;;  %v4060_v3 = vadd.f32 %v9336_v60, %v3960_v49  ;;  %v9712_v7 = vld [vmem:[#allocation48_spill] sm:$0xff]  ;;  %v6120_v31 = vrot.slane %v9407_v6, 3 }
 0x967   : > { %6940 = vmatmul.msk.f32.vlgmr.msrb.gmra.mxu0 %vm2456_vm5, %v5677_v57  ;;  %6942 = vmatmul.msk.f32.vlgmr.msrb.gmra.mxu1 %vm2456_vm5, %v5677_v57  ;;  %v4161_v60 = vadd.f32 %v9359_v56, %v4060_v3  ;;  %v9722_v3 = vld [vmem:[#allocation58_spill] sm:$0xff] }
 0x968   : > { %6944 = vmatmul.msk.f32.vlgmr.msrb.gmra.mxu2 %vm2456_vm5, %v5677_v57  ;;  %6946 = vmatmul.msk.f32.vlgmr.msrb.gmra.mxu3 %vm2456_vm5, %v5677_v57  ;;  %v3961_v57 = vadd.f32 %v9315_v47, %v3859_v0  ;;  %v4568_v47 = vperm.slane %v9431_v55, 0  ;;  %v6121_v0 = vrot.slane %v9391_v8, 2 }
 0x969   : > { %6959 = vmatpush.msk.msrb.mxu2 %vm2459_vm3, %v9703_v27  ;;  %6961 = vmatpush.msk.msrb.mxu3 %vm2459_vm3, %v9704_v37 }
 0x96a   : > { %6955 = vmatpush.msk.msrb.mxu0 %vm2459_vm3, %v9705_v33  ;;  %6957 = vmatpush.msk.msrb.mxu1 %vm2459_vm3, %v9706_v46  ;;  %v4061_v20 = vadd.f32 %v9338_v62, %v3961_v57  ;;  %v4569_v33 = vperm.slane %v9431_v55, 1 }
 0x96b   : > { %v9384_v48 = vpop.f32.mrf.mxu2  ;;  %v9386_v9 = vpop.f32.mrf.mxu3 }
 0x96c   : > { %v4298_v54 = vpop.f32.mrf.mxu0  ;;  %v4318_v10 = vpop.f32.mrf.mxu1  ;;  %v4162_v46 = vadd.f32 %v9361_v53, %v4061_v20 }
 0x96d   : > { %v4361_v28 = vadd.f32 %v4298_v54, %v4260_v4  ;;  %v4362_v34 = vadd.f32 %v4318_v10, %v4261_v15  ;;  %v4262_v54 = vadd.f32 %v9384_v48, %v4161_v60  ;;  %v6031_v48 = vrot.slane %v9407_v6, 2  ;;  %v9719_v4 = vld [vmem:[#allocation55_spill] sm:$0xff]  ;;  %v9720_v15 = vld [vmem:[#allocation56_spill] sm:$0xff] }
 0x96e   : > { %v4263_v18 = vadd.f32 %v9386_v9, %v4162_v46  ;;  %v6032_v9 = vrot.slane %v9391_v8, 1  ;;  %v9723_v46 = vld [vmem:[#allocation59_spill] sm:$0xff] }
 0x96f   : > { %6948 = vmatmul.msk.f32.vlgmr.msra.gmra.mxu0 %vm2456_vm5, %v5766_v11  ;;  %6950 = vmatmul.msk.f32.vlgmr.msra.gmra.mxu1 %vm2456_vm5, %v5766_v11 }
 0x970   : > { %6952 = vmatmul.msk.f32.vlgmr.msra.gmra.mxu2 %vm2456_vm5, %v5766_v11  ;;  %6954 = vmatmul.msk.f32.vlgmr.msra.gmra.mxu3 %vm2456_vm5, %v5766_v11 }
 0x971   : > { %6967 = vmatpush.msk.msra.mxu2 %vm2459_vm3, %v9707_v5  ;;  %6969 = vmatpush.msk.msra.mxu3 %vm2459_vm3, %v9708_v38  ;;  %v4571_v5 = vperm.slane %v9431_v55, 3  ;;  %v9717_v38 = vld [vmem:[#allocation53_spill] sm:$0xff] }
 0x972   : > { %6963 = vmatpush.msk.msra.mxu0 %vm2459_vm3, %v9709_v32  ;;  %6965 = vmatpush.msk.msra.mxu1 %vm2459_vm3, %v9710_v58 }
 0x973   : > { %v4338_v16 = vpop.f32.mrf.mxu2  ;;  %v4358_v36 = vpop.f32.mrf.mxu3 }
 0x974   : > { %v4399_v22 = vpop.f32.mrf.mxu0  ;;  %v4419_v19 = vpop.f32.mrf.mxu1  ;;  %v4363_v56 = vadd.f32 %v4338_v16, %v4262_v54  ;;  %v4364_v53 = vadd.f32 %v4358_v36, %v4263_v18  ;;  %v6033_v36 = vsel %vm2454_vm4, %v6032_v9, %v6031_v48 }
 0x975   : > { %v4462_v2 = vadd.f32 %v4399_v22, %v4361_v28  ;;  %v4463_v51 = vadd.f32 %v4419_v19, %v4362_v34 }
 0x977   : > { %6956 = vmatmul.msk.f32.vlgmr.msrb.gmra.mxu0 %vm2456_vm5, %v5856_v13  ;;  %6958 = vmatmul.msk.f32.vlgmr.msrb.gmra.mxu1 %vm2456_vm5, %v5856_v13 }
 0x978   : > { %6960 = vmatmul.msk.f32.vlgmr.msrb.gmra.mxu2 %vm2456_vm5, %v5856_v13  ;;  %6962 = vmatmul.msk.f32.vlgmr.msrb.gmra.mxu3 %vm2456_vm5, %v5856_v13 }
 0x979   : > { %6975 = vmatpush.msk.msrb.mxu2 %vm2459_vm3, %v9711_v45  ;;  %6977 = vmatpush.msk.msrb.mxu3 %vm2459_vm3, %v9712_v7 }
 0x97a   : > { %6971 = vmatpush.msk.msrb.mxu0 %vm2459_vm3, %v9713_v14  ;;  %6973 = vmatpush.msk.msrb.mxu1 %vm2459_vm3, %v9714_v23  ;;  %v6122_v23 = vsel %vm2454_vm4, %v6121_v0, %v6120_v31 }
 0x97b   : > { %v4439_v27 = vpop.f32.mrf.mxu2  ;;  %v4459_v37 = vpop.f32.mrf.mxu3 }
 0x97c   : > { %v4500_v12 = vpop.f32.mrf.mxu0  ;;  %v4520_v62 = vpop.f32.mrf.mxu1  ;;  %v4464_v43 = vadd.f32 %v4439_v27, %v4363_v56  ;;  %v4465_v25 = vadd.f32 %v4459_v37, %v4364_v53  ;;  %v6209_v27 = vrot.slane %v9407_v6, 4  ;;  %v6210_v37 = vrot.slane %v9391_v8, 3 }
 0x97d   : > { %v4563_v10 = vadd.f32 %v4500_v12, %v4462_v2  ;;  %v4564_v11 = vadd.f32 %v4520_v62, %v4463_v51  ;;  %v9724_v12 = vld [vmem:[#allocation60_spill] sm:$0xff]  ;;  %v9725_v62 = vld [vmem:[#allocation61_spill] sm:$0xff] }
 0x97e   : > { %v6211_v48 = vsel %vm2454_vm4, %v6210_v37, %v6209_v27 }
 0x97f   : > { %v9457_v44 = vadd.f32 %v4568_v47, %v4563_v10  ;;  %v9461_v30 = vadd.f32 %v4569_v33, %v4564_v11  ;;  %6964 = vmatmul.msk.f32.vlgmr.msra.gmra.mxu0 %vm2456_vm5, %v5944_v63  ;;  %6966 = vmatmul.msk.f32.vlgmr.msra.gmra.mxu1 %vm2456_vm5, %v5944_v63  ;;  %v9726_v10 = vld [vmem:[#allocation62_spill] sm:$0xff] }
 0x980   : > { %6968 = vmatmul.msk.f32.vlgmr.msra.gmra.mxu2 %vm2456_vm5, %v5944_v63  ;;  %6970 = vmatmul.msk.f32.vlgmr.msra.gmra.mxu3 %vm2456_vm5, %v5944_v63 }
 0x981   : > { %6983 = vmatpush.msk.msra.mxu2 %vm2459_vm3, %v9715_v39  ;;  %6985 = vmatpush.msk.msra.mxu3 %vm2459_vm3, %v9716_v61  ;;  %v4580_v35 = vmul.f32 %v9457_v44, %v9457_v44  ;;  %v4581_v26 = vmul.f32 %v9461_v30, %v9461_v30  ;;  %v6298_v39 = vrot.slane %v9407_v6, 5  ;;  %v6299_v61 = vrot.slane %v9391_v8, 4 }
 0x982   : > { %6979 = vmatpush.msk.msra.mxu0 %vm2459_vm3, %v9717_v38  ;;  %6981 = vmatpush.msk.msra.mxu1 %vm2459_vm3, %v9718_v17  ;;  %v9728_v38 = vld [vmem:[#allocation64_spill] sm:$0xff] }
 0x983   : > { %v4540_v32 = vpop.f32.mrf.mxu2  ;;  %v4560_v58 = vpop.f32.mrf.mxu3  ;;  %v4585_v19 = vsel %vm4584_vm6, %v4580_v35, 0.0  ;;  %v4586_v13 = vsel %vm4584_vm6, %v4581_v26, 0.0 }
 0x984   : > { %v4565_v1 = vadd.f32 %v4540_v32, %v4464_v43  ;;  %v4566_v29 = vadd.f32 %v4560_v58, %v4465_v25  ;;  %v4638_v41 = vpop.f32.mrf.mxu0  ;;  %v4658_v16 = vpop.f32.mrf.mxu1  ;;  %v4587_v49 = vadd.f32 %v4586_v13, %v4585_v19  ;;  %v9727_v25 = vld [vmem:[#allocation63_spill] sm:$0xff] }
 0x986   : > { %v9486_v24 = vadd.f32 %v4570_v42, %v4565_v1  ;;  %v9490_v22 = vadd.f32 %v4571_v5, %v4566_v29  ;;  %v6300_v29 = vsel %vm2454_vm4, %v6299_v61, %v6298_v39 }
 0x987   : > { %6972 = vmatmul.msk.f32.vlgmr.msrb.gmra.mxu0 %vm2456_vm5, %v6033_v36  ;;  %6974 = vmatmul.msk.f32.vlgmr.msrb.gmra.mxu1 %vm2456_vm5, %v6033_v36 }
 0x988   : > { %v4582_v59 = vmul.f32 %v9486_v24, %v9486_v24  ;;  %6976 = vmatmul.msk.f32.vlgmr.msrb.gmra.mxu2 %vm2456_vm5, %v6033_v36  ;;  %6978 = vmatmul.msk.f32.vlgmr.msrb.gmra.mxu3 %vm2456_vm5, %v6033_v36  ;;  %v4583_v52 = vmul.f32 %v9490_v22, %v9490_v22 }
 0x989   : > { %6991 = vmatpush.msk.msrb.mxu2 %vm2459_vm3, %v9719_v4  ;;  %6993 = vmatpush.msk.msrb.mxu3 %vm2459_vm3, %v9720_v15 }
 0x98a   : > { %v4588_v57 = vsel %vm4584_vm6, %v4582_v59, 0.0  ;;  %6987 = vmatpush.msk.msrb.mxu0 %vm2459_vm3, %v9721_v21  ;;  %6989 = vmatpush.msk.msrb.mxu1 %vm2459_vm3, %v9722_v3  ;;  %v4590_v14 = vsel %vm4584_vm6, %v4583_v52, 0.0 }
 0x98b   : > { %v4678_v28 = vpop.f32.mrf.mxu2  ;;  %v4698_v34 = vpop.f32.mrf.mxu3  ;;  %v4589_v45 = vadd.f32 %v4588_v57, %v4587_v49 }
 0x98c   : > { %v4722_v7 = vpop.f32.mrf.mxu0  ;;  %v4742_v20 = vpop.f32.mrf.mxu1 }
 0x98d   : > { %v4723_v60 = vadd.f32 %v4722_v7, %v4638_v41  ;;  %v4743_v2 = vadd.f32 %v4742_v20, %v4658_v16  ;;  %v4591_v51 = vadd.f32 %v4590_v14, %v4589_v45 }
 0x98f   : > { %4592 = vadd.xlane.f32.xlu0 %v4591_v51  ;;  %6980 = vmatmul.msk.f32.vlgmr.msra.gmra.mxu0 %vm2456_vm5, %v6122_v23 }
 0x990   : > { %6982 = vmatmul.msk.f32.vlgmr.msra.gmra.mxu1 %vm2456_vm5, %v6122_v23  ;;  %6984 = vmatmul.msk.f32.vlgmr.msra.gmra.mxu2 %vm2456_vm5, %v6122_v23 }
 0x991   : > { %6986 = vmatmul.msk.f32.vlgmr.msra.gmra.mxu3 %vm2456_vm5, %v6122_v23  ;;  %6999 = vmatpush.msk.msra.mxu2 %vm2459_vm3, %v9723_v46 }
 0x992   : > { %7001 = vmatpush.msk.msra.mxu3 %vm2459_vm3, %v9724_v12  ;;  %6995 = vmatpush.msk.msra.mxu0 %vm2459_vm3, %v9725_v62 }
 0x993   : > { %v4762_v63 = vpop.f32.mrf.mxu2  ;;  %v4782_v54 = vpop.f32.mrf.mxu3  ;;  %6997 = vmatpush.msk.msra.mxu1 %vm2459_vm3, %v9726_v10 }
 0x994   : > { %v4763_v11 = vadd.f32 %v4762_v63, %v4678_v28  ;;  %v4783_v18 = vadd.f32 %v4782_v54, %v4698_v34  ;;  %v4807_v56 = vpop.f32.mrf.mxu0  ;;  %v4827_v53 = vpop.f32.mrf.mxu1 }
 0x995   : > { %v4870_v9 = vadd.f32 %v4807_v56, %v4723_v60  ;;  %v4871_v43 = vadd.f32 %v4827_v53, %v4743_v2 }
 0x997   : > { %6988 = vmatmul.msk.f32.vlgmr.msrb.gmra.mxu0 %vm2456_vm5, %v6211_v48 }
 0x998   : > { %6990 = vmatmul.msk.f32.vlgmr.msrb.gmra.mxu1 %vm2456_vm5, %v6211_v48  ;;  %6992 = vmatmul.msk.f32.vlgmr.msrb.gmra.mxu2 %vm2456_vm5, %v6211_v48 }
 0x999   : > { %6994 = vmatmul.msk.f32.vlgmr.msrb.gmra.mxu3 %vm2456_vm5, %v6211_v48  ;;  %7007 = vmatpush.msk.msrb.mxu2 %vm2459_vm3, %v9041_v40  ;;  %v6388_v40 = vrot.slane %v9391_v8, 5 }
 0x99a   : > { %7009 = vmatpush.msk.msrb.mxu3 %vm2459_vm3, %v9043_v50  ;;  %7003 = vmatpush.msk.msrb.mxu0 %vm2459_vm3, %v9727_v25  ;;  %v6387_v50 = vrot.slane %v9407_v6, 6 }
 0x99b   : > { %v4847_v35 = vpop.f32.mrf.mxu2  ;;  %v4867_v26 = vpop.f32.mrf.mxu3  ;;  %7005 = vmatpush.msk.msrb.mxu1 %vm2459_vm3, %v9728_v38 }
 0x99c   : > { %v4872_v17 = vadd.f32 %v4847_v35, %v4763_v11  ;;  %v4873_v32 = vadd.f32 %v4867_v26, %v4783_v18  ;;  %v4896_v58 = vpop.f32.mrf.mxu0  ;;  %v4916_v1 = vpop.f32.mrf.mxu1  ;;  %v6389_v0 = vsel %vm2454_vm4, %v6388_v40, %v6387_v50 }
 0x99d   : > { %v4959_v41 = vadd.f32 %v4896_v58, %v4870_v9  ;;  %v4960_v16 = vadd.f32 %v4916_v1, %v4871_v43 }
 0x99f   : > { %6996 = vmatmul.msk.f32.vlgmr.msra.gmra.mxu0 %vm2456_vm5, %v6300_v29 }
 0x9a0   : > { %6998 = vmatmul.msk.f32.vlgmr.msra.gmra.mxu1 %vm2456_vm5, %v6300_v29  ;;  %7000 = vmatmul.msk.f32.vlgmr.msra.gmra.mxu2 %vm2456_vm5, %v6300_v29 }
 0x9a1   : > { %7002 = vmatmul.msk.f32.vlgmr.msra.gmra.mxu3 %vm2456_vm5, %v6300_v29 }
 0x9a3   : > { %v4936_v36 = vpop.f32.mrf.mxu2  ;;  %v4956_v19 = vpop.f32.mrf.mxu3 }
 0x9a4   : > { %v4961_v13 = vadd.f32 %v4936_v36, %v4872_v17  ;;  %v4962_v59 = vadd.f32 %v4956_v19, %v4873_v32  ;;  %v4985_v52 = vpop.f32.mrf.mxu0  ;;  %v5005_v31 = vpop.f32.mrf.mxu1 }
 0x9a5   : > { %v5048_v49 = vadd.f32 %v4985_v52, %v4959_v41  ;;  %v5049_v4 = vadd.f32 %v5005_v31, %v4960_v16 }
 0x9a7   : > { %7004 = vmatmul.msk.f32.vlgmr.msrb.gmra.mxu0 %vm2456_vm5, %v6389_v0 }
 0x9a8   : > { %7006 = vmatmul.msk.f32.vlgmr.msrb.gmra.mxu1 %vm2456_vm5, %v6389_v0  ;;  %7008 = vmatmul.msk.f32.vlgmr.msrb.gmra.mxu2 %vm2456_vm5, %v6389_v0 }
 0x9a9   : > { %7010 = vmatmul.msk.f32.vlgmr.msrb.gmra.mxu3 %vm2456_vm5, %v6389_v0 }
 0x9ab   : > { %v5025_v8 = vpop.f32.mrf.mxu2  ;;  %v5045_v6 = vpop.f32.mrf.mxu3 }
 0x9ac   : > { %v5050_v15 = vadd.f32 %v5025_v8, %v4961_v13  ;;  %v5051_v57 = vadd.f32 %v5045_v6, %v4962_v59  ;;  %v5074_v21 = vpop.f32.mrf.mxu0  ;;  %v5094_v3 = vpop.f32.mrf.mxu1 }
 0x9ad   : > { %v5137_v28 = vadd.f32 %v5074_v21, %v5048_v49  ;;  %v5138_v34 = vadd.f32 %v5094_v3, %v5049_v4 }
 0x9b3   : > { %v5114_v45 = vpop.f32.mrf.mxu2  ;;  %v5134_v7 = vpop.f32.mrf.mxu3 }
 0x9b4   : > { %v5139_v20 = vadd.f32 %v5114_v45, %v5050_v15  ;;  %v5140_v14 = vadd.f32 %v5134_v7, %v5051_v57  ;;  %v5163_v23 = vpop.f32.mrf.mxu0  ;;  %v5183_v60 = vpop.f32.mrf.mxu1 }
 0x9b5   : > { %v5226_v2 = vadd.f32 %v5163_v23, %v5137_v28  ;;  %v5227_v51 = vadd.f32 %v5183_v60, %v5138_v34 }
 0x9bb   : > { %v5203_v27 = vpop.f32.mrf.mxu2  ;;  %v5223_v37 = vpop.f32.mrf.mxu3 }
 0x9bc   : > { %v5228_v46 = vadd.f32 %v5203_v27, %v5139_v20  ;;  %v5229_v12 = vadd.f32 %v5223_v37, %v5140_v14  ;;  %v5253_v62 = vpop.f32.mrf.mxu0  ;;  %v5273_v63 = vpop.f32.mrf.mxu1 }
 0x9bd   : > { %v5316_v54 = vadd.f32 %v5253_v62, %v5226_v2  ;;  %v5317_v10 = vadd.f32 %v5273_v63, %v5227_v51 }
 0x9c3   : > { %v5293_v11 = vpop.f32.mrf.mxu2  ;;  %v5313_v18 = vpop.f32.mrf.mxu3 }
 0x9c4   : > { %v5318_v56 = vadd.f32 %v5293_v11, %v5228_v46  ;;  %v5319_v53 = vadd.f32 %v5313_v18, %v5229_v12  ;;  %v5341_v48 = vpop.f32.mrf.mxu0  ;;  %v5361_v9 = vpop.f32.mrf.mxu1 }
 0x9c5   : > { %v5404_v43 = vadd.f32 %v5341_v48, %v5316_v54  ;;  %v5405_v39 = vadd.f32 %v5361_v9, %v5317_v10 }
 0x9cb   : > { %v5381_v61 = vpop.f32.mrf.mxu2  ;;  %v5401_v25 = vpop.f32.mrf.mxu3 }
 0x9cc   : > { %v5406_v35 = vadd.f32 %v5381_v61, %v5318_v56  ;;  %v5407_v26 = vadd.f32 %v5401_v25, %v5319_v53  ;;  %v5430_v38 = vpop.f32.mrf.mxu0  ;;  %v5450_v17 = vpop.f32.mrf.mxu1 }
 0x9cd   : > { %v5493_v32 = vadd.f32 %v5430_v38, %v5404_v43  ;;  %v5494_v58 = vadd.f32 %v5450_v17, %v5405_v39 }
 0x9d3   : > { %v5470_v1 = vpop.f32.mrf.mxu2  ;;  %v5490_v29 = vpop.f32.mrf.mxu3 }
 0x9d4   : > { %v5495_v41 = vadd.f32 %v5470_v1, %v5406_v35  ;;  %v5496_v16 = vadd.f32 %v5490_v29, %v5407_v26  ;;  %v5519_v50 = vpop.f32.mrf.mxu0  ;;  %v5539_v40 = vpop.f32.mrf.mxu1 }
 0x9d5   : > { %v5582_v12 = vadd.f32 %v5519_v50, %v5493_v32  ;;  %v5583_v62 = vadd.f32 %v5539_v40, %v5494_v58 }
 0x9db   : > { %v5559_v36 = vpop.f32.mrf.mxu2  ;;  %v5579_v19 = vpop.f32.mrf.mxu3 }
 0x9dc   : > { %v5608_v13 = vpop.f32.mrf.mxu0  ;;  %v5628_v59 = vpop.f32.mrf.mxu1  ;;  %v5584_v43 = vadd.f32 %v5559_v36, %v5495_v41  ;;  %v5585_v61 = vadd.f32 %v5579_v19, %v5496_v16 }
 0x9dd   : > { %v5671_v63 = vadd.f32 %v5608_v13, %v5582_v12  ;;  %v5672_v10 = vadd.f32 %v5628_v59, %v5583_v62 }
 0x9e3   : > { %v5648_v52 = vpop.f32.mrf.mxu2  ;;  %v5668_v31 = vpop.f32.mrf.mxu3 }
 0x9e4   : > { %v5697_v0 = vpop.f32.mrf.mxu0  ;;  %v5717_v49 = vpop.f32.mrf.mxu1  ;;  %v5673_v35 = vadd.f32 %v5648_v52, %v5584_v43  ;;  %v5674_v38 = vadd.f32 %v5668_v31, %v5585_v61 }
 0x9e5   : > { %v5760_v56 = vadd.f32 %v5697_v0, %v5671_v63  ;;  %v5761_v48 = vadd.f32 %v5717_v49, %v5672_v10 }
 0x9eb   : > { %v5737_v4 = vpop.f32.mrf.mxu2  ;;  %v5757_v8 = vpop.f32.mrf.mxu3 }
 0x9ec   : > { %v5786_v6 = vpop.f32.mrf.mxu0  ;;  %v5806_v15 = vpop.f32.mrf.mxu1  ;;  %v5762_v32 = vadd.f32 %v5737_v4, %v5673_v35  ;;  %v5763_v40 = vadd.f32 %v5757_v8, %v5674_v38 }
 0x9ed   : > { %v5849_v9 = vadd.f32 %v5786_v6, %v5760_v56  ;;  %v5850_v39 = vadd.f32 %v5806_v15, %v5761_v48 }
 0x9f3   : > { %v5826_v57 = vpop.f32.mrf.mxu2  ;;  %v5846_v21 = vpop.f32.mrf.mxu3 }
 0x9f4   : > { %v5876_v3 = vpop.f32.mrf.mxu0  ;;  %v5896_v28 = vpop.f32.mrf.mxu1  ;;  %v5851_v0 = vadd.f32 %v5826_v57, %v5762_v32  ;;  %v5852_v49 = vadd.f32 %v5846_v21, %v5763_v40 }
 0x9f5   : > { %v5939_v25 = vadd.f32 %v5876_v3, %v5849_v9  ;;  %v5940_v26 = vadd.f32 %v5896_v28, %v5850_v39 }
 0x9fb   : > { %v5916_v34 = vpop.f32.mrf.mxu2  ;;  %v5936_v45 = vpop.f32.mrf.mxu3 }
 0x9fc   : > { %v5964_v7 = vpop.f32.mrf.mxu0  ;;  %v5984_v20 = vpop.f32.mrf.mxu1  ;;  %v5941_v41 = vadd.f32 %v5916_v34, %v5851_v0  ;;  %v5942_v16 = vadd.f32 %v5936_v45, %v5852_v49 }
 0x9fd   : > { %v6027_v17 = vadd.f32 %v5964_v7, %v5939_v25  ;;  %v6028_v58 = vadd.f32 %v5984_v20, %v5940_v26 }
 0xa02   : > { %v4593_v26 = vpop.xlane.xlu0 %4592 }
 0xa03   : > { %v6004_v14 = vpop.f32.mrf.mxu2  ;;  %v6024_v23 = vpop.f32.mrf.mxu3  ;;  %v4594_v38 = vadd.f32 1e-12, %v4593_v26 }
 0xa04   : > { %v6053_v60 = vpop.f32.mrf.mxu0  ;;  %v6073_v2 = vpop.f32.mrf.mxu1  ;;  %v6029_v52 = vadd.f32 %v6004_v14, %v5941_v41  ;;  %v6030_v31 = vadd.f32 %v6024_v23, %v5942_v16 }
 0xa05   : > { %v6116_v13 = vadd.f32 %v6053_v60, %v6027_v17  ;;  %v6117_v12 = vadd.f32 %v6073_v2, %v6028_v58  ;;  %7148 = vrsqrt.f32 %v4594_v38  ;;  %vm4601_vm8 = vweird.f32 %v4594_v38 }
 0xa0b   : > { %v6093_v51 = vpop.f32.mrf.mxu2  ;;  %v6113_v27 = vpop.f32.mrf.mxu3 }
 0xa0c   : > { %v6142_v37 = vpop.f32.mrf.mxu0  ;;  %v6118_v4 = vadd.f32 %v6093_v51, %v6029_v52  ;;  %v6119_v8 = vadd.f32 %v6113_v27, %v6030_v31 }
 0xa0d   : > { %v6162_v46 = vpop.f32.mrf.mxu1  ;;  %v6205_v6 = vadd.f32 %v6142_v37, %v6116_v13 }
 0xa0e   : > { %v6206_v36 = vadd.f32 %v6162_v46, %v6117_v12 }
 0xa13   : > { %v6182_v54 = vpop.f32.mrf.mxu2 }
 0xa14   : > { %v6202_v11 = vpop.f32.mrf.mxu3  ;;  %v6231_v18 = vpop.f32.mrf.mxu0  ;;  %v6207_v57 = vadd.f32 %v6182_v54, %v6118_v4 }
 0xa15   : > { %v6251_v53 = vpop.f32.mrf.mxu1  ;;  %v6294_v19 = vadd.f32 %v6231_v18, %v6205_v6  ;;  %v6208_v21 = vadd.f32 %v6202_v11, %v6119_v8 }
 0xa16   : > { %v6295_v15 = vadd.f32 %v6251_v53, %v6206_v36 }
 0xa1b   : > { %v6271_v1 = vpop.f32.mrf.mxu2 }
 0xa1c   : > { %v6291_v29 = vpop.f32.mrf.mxu3  ;;  %v6320_v50 = vpop.f32.mrf.mxu0  ;;  %v6296_v45 = vadd.f32 %v6271_v1, %v6207_v57 }
 0xa1d   : > { %v6340_v59 = vpop.f32.mrf.mxu1  ;;  %v6383_v3 = vadd.f32 %v6320_v50, %v6294_v19  ;;  %v6297_v23 = vadd.f32 %v6291_v29, %v6208_v21 }
 0xa1e   : > { %v6384_v7 = vadd.f32 %v6340_v59, %v6295_v15 }
 0xa23   : > { %v6360_v28 = vpop.f32.mrf.mxu2 }
 0xa24   : > { %v6380_v20 = vpop.f32.mrf.mxu3  ;;  %v6409_v62 = vpop.f32.mrf.mxu0  ;;  %v6385_v37 = vadd.f32 %v6360_v28, %v6296_v45 }
 0xa25   : > { %v6472_v60 = vadd.f32 %v6409_v62, %v6383_v3  ;;  %v6429_v63 = vpop.f32.mrf.mxu1  ;;  %v6386_v10 = vadd.f32 %v6380_v20, %v6297_v23 }
 0xa26   : > { %v6473_v2 = vadd.f32 %v6429_v63, %v6384_v7 }
 0xa27   : > { %v6476_v34 = vadd.f32 %v6472_v60, %v4568_v47 }
 0xa28   : > { %v6477_v14 = vadd.f32 %v6473_v2, %v4569_v33 }
 0xa29   : > { %v6480_v46 = vmul.f32 %v6476_v34, %v6476_v34 }
 0xa2a   : > { %v6481_v51 = vmul.f32 %v6477_v14, %v6477_v14 }
 0xa2b   : > { %v6449_v18 = vpop.f32.mrf.mxu2  ;;  %v6484_v11 = vsel %vm4584_vm6, %v6480_v46, 0.0 }
 0xa2c   : > { %v6474_v56 = vadd.f32 %v6449_v18, %v6385_v37  ;;  %v6469_v27 = vpop.f32.mrf.mxu3  ;;  %v6485_v47 = vsel %vm4584_vm6, %v6481_v51, 0.0 }
 0xa2d   : > { %v6475_v53 = vadd.f32 %v6469_v27, %v6386_v10  ;;  %v6486_v43 = vadd.f32 %v6485_v47, %v6484_v11 }
 0xa2e   : > { %v6478_v54 = vadd.f32 %v6474_v56, %v4570_v42  ;;  %v7149_v42 = vpop.eup %7148 }
 0xa2f   : > { %v6479_v48 = vadd.f32 %v6475_v53, %v4571_v5  ;;  %v4596_v17 = vmul.f32 %v7149_v42, %v4594_v38  ;;  %vm4602_vm7 = vweird.f32 %v7149_v42 }
 0xa30   : > { %v6482_v33 = vmul.f32 %v6478_v54, %v6478_v54  ;;  %vm4603_vm9 = vmor %vm4601_vm8, %vm4602_vm7 }
 0xa31   : > { %v6483_v9 = vmul.f32 %v6479_v48, %v6479_v48  ;;  %v4597_v32 = vmul.f32 %v7149_v42, %v4596_v17 }
 0xa32   : > { %v6487_v39 = vsel %vm4584_vm6, %v6482_v33, 0.0 }
 0xa33   : > { %v6488_v61 = vadd.f32 %v6487_v39, %v6486_v43  ;;  %v6489_v25 = vsel %vm4584_vm6, %v6483_v9, 0.0  ;;  %v4598_v55 = vmul.f32 0.5, %v4597_v32 }
 0xa35   : > { %v6490_v35 = vadd.f32 %v6489_v25, %v6488_v61  ;;  %v4599_v29 = vsub.f32 1.5, %v4598_v55 }
 0xa37   : > { %6491 = vadd.xlane.f32.xlu0 %v6490_v35  ;;  %v4600_v13 = vmul.f32 %v7149_v42, %v4599_v29 }
 0xa39   : > { %v4604_v12 = vsel %vm4603_vm9, %v7149_v42, %v4600_v13 }
 0xa3a   : > { %v4605_v41 = vmul.f32 %v4604_v12, %v9457_v44  ;;  %v4606_v36 = vmul.f32 %v4604_v12, %v9461_v30  ;;  %v4607_v16 = vmul.f32 %v4604_v12, %v9486_v24  ;;  %v4608_v3 = vmul.f32 %v4604_v12, %v9490_v22 }
 0xaaa   : > { %v6492_v1 = vpop.xlane.xlu0 %6491 }
 0xaab   : > { %v6493_v58 = vadd.f32 1e-12, %v6492_v1 }
 0xaad   : > { %7150 = vrsqrt.f32 %v6493_v58  ;;  %vm6500_vm11 = vweird.f32 %v6493_v58 }
 0xab3   : > { %v7151_v5 = vpop.eup %7150 }
 0xab4   : > { %v6495_v50 = vmul.f32 %v7151_v5, %v6493_v58  ;;  %vm6501_vm10 = vweird.f32 %v7151_v5 }
 0xab5   : > { %vm6502_vm12 = vmor %vm6500_vm11, %vm6501_vm10 }
 0xab6   : > { %v6496_v40 = vmul.f32 %v7151_v5, %v6495_v50 }
 0xab8   : > { %v6497_v59 = vmul.f32 0.5, %v6496_v40 }
 0xaba   : > { %v6498_v0 = vsub.f32 1.5, %v6497_v59 }
 0xabc   : > { %v6499_v49 = vmul.f32 %v7151_v5, %v6498_v0 }
 0xabe   : > { %v6503_v6 = vsel %vm6502_vm12, %v7151_v5, %v6499_v49 }
 0xabf   : > { %v6504_v19 = vmul.f32 %v6503_v6, %v6476_v34  ;;  %v6505_v52 = vmul.f32 %v6503_v6, %v6477_v14  ;;  %v6506_v15 = vmul.f32 %v6503_v6, %v6478_v54  ;;  %v6507_v31 = vmul.f32 %v6503_v6, %v6479_v48 }
 0xac1   : > { %v6508_v28 = vmul.f32 %v6504_v19, %v4605_v41  ;;  %v6509_v4 = vmul.f32 %v6505_v52, %v4606_v36  ;;  %v6510_v7 = vmul.f32 %v6506_v15, %v4607_v16  ;;  %v6511_v20 = vmul.f32 %v6507_v31, %v4608_v3 }
 0xac3   : > { %v6512_v62 = vsel %vm4584_vm6, %v6508_v28, 0.0  ;;  %v6513_v8 = vsel %vm4584_vm6, %v6509_v4, 0.0  ;;  %v6515_v44 = vsel %vm4584_vm6, %v6510_v7, 0.0  ;;  %v6517_v24 = vsel %vm4584_vm6, %v6511_v20, 0.0 }
 0xac4   : > { %v6514_v60 = vadd.f32 %v6513_v8, %v6512_v62 }
 0xac6   : > { %v6516_v30 = vadd.f32 %v6515_v44, %v6514_v60 }
 0xac8   : > { %v6518_v63 = vadd.f32 %v6517_v24, %v6516_v30 }
 0xaca   : > { %6519 = vadd.xlane.f32.xlu1 %v6518_v63 }
 0xb3d   : > { %v6520_v57 = vpop.xlane.xlu1 %6519 }
 0xb3e   : > { %v6521_v2 = vsub.f32 1.0, %v6520_v57 }
 0xb40   : > { %v6522_v22 = vsel %vm4584_vm6, %v6521_v2, 0.0 }
 0xb41   : > { %v6523_v21 = vrot.slane %v6522_v22, 4 }
 0xb43   : > { %v6524_v34 = vadd.f32 %v6523_v21, %v6522_v22 }
 0xb45   : > { %v6525_v45 = vrot.slane %v6524_v34, 2 }
 0xb47   : > { %v6526_v14 = vadd.f32 %v6525_v45, %v6524_v34 }
 0xb49   : > { %v6527_v23 = vrot.slane %v6526_v14, 1 }
 0xb4b   : > { %v6528_v37 = vadd.f32 %v6527_v23, %v6526_v14 }
 0xb4d   : > { %6530 = vst.msk [vmem:[#allocation13] sm:$0x1] %vm6529_vm13, %v6528_v37 }
 0xb4e PF: > { %p7065_p5 = scmp.eq.s32.totalorder %s7386_s25, 1  ;;  %s7331_s12 = smov [#allocation13]  }
 0xb4f   : > { %s6537_s18 = sshll.u32 %s7331_s12, 4  ;;  %s6539_s10 = sshll.u32 %s9600_s6, 4  ;;  %s6538_s18 = int_to_ptr.vmem [resolvable:$true] %s6537_s18  ;;  %s6540_s10 = int_to_ptr.hbm [resolvable:$true] %s6539_s10 }
 0xb50   : > { %7051 = dma.vmem_to_hbm [thread:$0]  (%p7065_p5), %s6538_s18, 16, %s6540_s10, [#allocation6]  }
 0xb51   : > { %7297 = dma.done.wait (%p7065_p5), [#allocation6], 16  }
 0xb52   : > { %7299 = vsyncadd (%p7065_p5), [#allocation6], 4294967280 }
 0xb53 PF: > { %p21_p8 = scmp.ge.s32.totalorder %s7389_s26, 4   ;;  %s9729_s21 = smov %s7306_s22 }
 0xb54   : > { %s9730_s22 = smov %s7310_s23  ;;  %s9731_s23 = smov %s7399_s29 }
 0xb55   : > { %s9732_s24 = smov %s7389_s26  ;;  %23 = sbr.rel (!%p21_p8) target bundleno = 9 (0x9), region = 131 }
 0xb5a   :  { %6553 = vsyncpa [#allocation5], 1 }
 0xb5b   :  { %6555 = vsyncpa [#allocation5 + $0x1], 1 }
 0xb5c   :  { %6556 = vsyncpa [#allocation8], 1 }
 0xb5d   :  { %6557 = vsyncpa [#allocation11], 1 }
 0xb5e   :  { %6559 = vsyncpa [#allocation11 + $0x1], 1 }
 0xb5f   :  { %6560 = vsyncpa [#allocation6], 1 }
 0xb60   :  { %6562 = vsyncpa [#allocation6 + $0x1], 1 }

</bundles_post_ra>
